<compile_context>
chip_gen: v5e
topology: v5e:2x2
jax: 0.10.0
libtpu: 0.0.40
codegen_flags: <defaults>
</compile_context>

<pallas_src>
import numpy as np
import jax
import jax.numpy as jnp
from jax.experimental import pallas as pl
from jax.experimental.pallas import tpu as pltpu

PAD = 3      # max K//2 over the stages (7, 5, 3)
GT = 8       # global top pad rows of the scratch   (>= PAD, multiple of 8)
GAP = 8      # zero rows appended after each image  (>= PAD, multiple of 8)
BOT = 8      # global bottom pad rows               (>= PAD, multiple of 8)
REF_PREC = jax.lax.Precision.HIGHEST   # reference (ground truth) precision


def _round_up(x, m):
    return (x + m - 1) // m * m


def _choose_b_tile(n, h, target_rows=256):
    """Largest divisor of n with M = d*(h+GAP) <= target_rows; prefer >=2 grid
    steps (v7x megacore) when that still keeps M >= 128."""
    divisors = [d for d in range(1, n + 1) if n % d == 0]
    fit = [d for d in divisors if d * (h + GAP) <= target_rows] or [1]
    b = max(fit)
    if n // b < 2:
        alt = [d for d in fit if n // d >= 2 and d * (h + GAP) >= 128]
        if alt:
            b = max(alt)
    return b


# --------------------------------------------------------------------------
# Fused Pallas kernel (one grid step = B_TILE batch elements)
# --------------------------------------------------------------------------
def intra_cl_kernel(x_ref, red_w, red_b, s7_w, s7_b, s5_w, s5_b, s3_w, s3_b,
                    ret_w, ret_b, o_ref, xp_ref):
    # x_ref / o_ref : (B_TILE, H, W*C)  lane-dense (256-lane) activations, f32
    # red_w : (W*C, L) bf16,   red_b : (1, L) f32      1x1 reduce (block diag)
    # sK_w  : (K, L, L) bf16,  sK_b  : (1, L) f32      banded stages (v/q folded)
    # ret_w : (L, W*C) bf16,   ret_b : (1, W*C) f32    1x1 return conv + BN
    # xp_ref: (GT + B_TILE*(H+GAP) + BOT, L) bf16 scratch, zero-padded slab
    B, H, WC = x_ref.shape
    L = xp_ref.shape[1]
    Hseg = H + GAP
    M = B * Hseg                       # slab rows driven through the stage dots

    # --- zero only the pad / gap rows (image interiors are rewritten below) --
    xp_ref[pl.ds(0, GT), :] = jnp.zeros((GT, L), xp_ref.dtype)
    xp_ref[pl.ds(GT + M, BOT), :] = jnp.zeros((BOT, L), xp_ref.dtype)
    gap_zeros = jnp.zeros((GAP, L), xp_ref.dtype)
    for b in range(B):
        xp_ref[pl.ds(GT + b * Hseg + H, GAP), :] = gap_zeros

    def bdot(a, w):
        # single-pass bf16 MXU matmul, f32 accumulation
        return jnp.dot(a.astype(jnp.bfloat16), w,
                       preferred_element_type=jnp.float32)

    # --- 1x1 channel reduce:  (B*H, W*C) @ (W*C, L), per-image aligned store --
    x2 = x_ref[...].reshape(B * H, WC)
    hred = bdot(x2, red_w[...]) + red_b[...]               # f32 elementwise
    for b in range(B):
        xp_ref[pl.ds(GT + b * Hseg, H), :] = \
            hred[b * H:(b + 1) * H, :].astype(xp_ref.dtype)

    # --- banded stages (KxK with Kx1 / 1xK folded in host-side) --------------
    def stage(w_ref, b_ref, store):
        K = w_ref.shape[0]
        off = GT - K // 2
        # running accumulator: at most 2 live (M, L) f32 partials
        acc = bdot(xp_ref[pl.ds(off, M), :], w_ref[0])
        for dy in range(1, K):
            acc = acc + bdot(xp_ref[pl.ds(off + dy, M), :], w_ref[dy])
        acc = acc + b_ref[...]
        if store:
            # per-image interior store: full 128-lane width, 8-row aligned;
            # gap/border rows are never touched so the zero padding stays exact.
            for b in range(B):
                xp_ref[pl.ds(GT + b * Hseg, H), :] = \
                    acc[b * Hseg:b * Hseg + H, :].astype(xp_ref.dtype)
        return acc

    stage(s7_w, s7_b, store=True)
    stage(s5_w, s5_b, store=True)
    h3 = stage(s3_w, s3_b, store=False)          # consumed directly (f32 value)

    # --- 1x1 return conv (inference BN folded) -> ReLU -> residual -----------
    y = bdot(h3, ret_w[...]) + ret_b[...]                  # (M, W*C) f32
    for b in range(B):
        o_ref[b] = x_ref[b] + jnp.maximum(y[b * Hseg:b * Hseg + H, :], 0.0)


# --------------------------------------------------------------------------
# Wrapper
# --------------------------------------------------------------------------
def intra_cl_block_pallas(x_nhwc, packed, b_tile=None):
    N, H, W, C = x_nhwc.shape
    L = packed["red_w"].shape[1]                 # padded lane width (mult of 128)
    if b_tile is None:
        b_tile = _choose_b_tile(N, H)
    assert N % b_tile == 0
    Hseg = H + GAP
    r_total = GT + b_tile * Hseg + BOT
    x_flat = x_nhwc.reshape(N, H, W * C)

    weights = (packed["red_w"], packed["red_b"],
               packed["s7_w"], packed["s7_b"],
               packed["s5_w"], packed["s5_b"],
               packed["s3_w"], packed["s3_b"],
               packed["ret_w"], packed["ret_b"])

    def build(single_buffer_consts):
        def const_spec(a):
            nd = a.ndim
            kwargs = {}
            if single_buffer_consts:
                # constants never change block index -> single-buffer them
                kwargs["pipeline_mode"] = pl.Buffered(1)
            return pl.BlockSpec(a.shape, lambda n, _nd=nd: (0,) * _nd, **kwargs)

        return pl.pallas_call(
            intra_cl_kernel,
            out_shape=jax.ShapeDtypeStruct((N, H, W * C), x_flat.dtype),
            grid=(N // b_tile,),
            in_specs=[pl.BlockSpec((b_tile, H, W * C), lambda n: (n, 0, 0))]
                     + [const_spec(w) for w in weights],
            out_specs=pl.BlockSpec((b_tile, H, W * C), lambda n: (n, 0, 0)),
            scratch_shapes=[pltpu.VMEM((r_total, L), jnp.bfloat16)],
            compiler_params=pltpu.CompilerParams(
                dimension_semantics=("parallel",),       # batch across both TCs
                vmem_limit_bytes=64 * 1024 * 1024),
        )

    try:
        out = build(True)(x_flat, *weights)
    except Exception:
        # pipeline_mode=pl.Buffered(1) not accepted on this jax version;
        # fall back to default (double-buffered) constant operands.
        out = build(False)(x_flat, *weights)
    return out.reshape(N, H, W, C)


# --------------------------------------------------------------------------
# Parameter construction (deterministic, synthetic) + host-side packing
# --------------------------------------------------------------------------
def make_params(key, in_ch=16, reduce_factor=4):
    hidden = in_ch // reduce_factor
    keys = iter(jax.random.split(key, 64))

    def conv_w(kh, kw, cin, cout):
        # PyTorch layout (Cout, Cin, kh, kw) -> HWIO (kh, kw, Cin, Cout)
        w = 0.1 * jax.random.normal(next(keys), (cout, cin, kh, kw), jnp.float32)
        b = 0.1 * jax.random.normal(next(keys), (cout,), jnp.float32)
        return jnp.transpose(w, (2, 3, 1, 0)), b.reshape(1, cout)

    p = {}
    p["reduce_w"], p["reduce_b"] = conv_w(1, 1, in_ch, hidden)
    for K, name in ((7, "7"), (5, "5"), (3, "3")):
        p[f"c{name}_w"], p[f"c{name}_b"] = conv_w(K, K, hidden, hidden)
        p[f"v{name}_w"], p[f"v{name}_b"] = conv_w(K, 1, hidden, hidden)
        p[f"q{name}_w"], p[f"q{name}_b"] = conv_w(1, K, hidden, hidden)
    p["ret_w"], p["ret_b"] = conv_w(1, 1, hidden, in_ch)

    p["bn_gamma"] = 1.0 + 0.1 * jax.random.normal(next(keys), (in_ch,), jnp.float32)
    p["bn_beta"] = 0.1 * jax.random.normal(next(keys), (in_ch,), jnp.float32)
    p["bn_mean"] = 0.1 * jax.random.normal(next(keys), (in_ch,), jnp.float32)
    p["bn_var"] = 0.5 + jnp.abs(jax.random.normal(next(keys), (in_ch,), jnp.float32))
    return p


def pack_params(p, W, in_ch, hidden, eps=1e-5):
    """Host-side weight folding into lane-dense banded / block-diagonal bf16
    matrices laid out in the 128-lane padded-W scratch layout."""
    Wp = W + 2 * PAD
    L = _round_up(Wp * hidden, 128)              # lane-dense scratch width
    q = {k: np.asarray(v, np.float32) for k, v in p.items()}
    packed = {}

    def pblock(j):                               # lanes of padded W-position j
        return slice(j * hidden, (j + 1) * hidden)

    # --- 1x1 reduce: dense (W*in_ch) lanes -> padded (L) lanes ---------------
    rw = np.zeros((W * in_ch, L), np.float32)
    rb = np.zeros((1, L), np.float32)
    w2 = q["reduce_w"][0, 0]                                  # (in_ch, hidden)
    rbias = q["reduce_b"].reshape(-1)
    for w in range(W):
        rw[w * in_ch:(w + 1) * in_ch, pblock(PAD + w)] = w2
        rb[0, pblock(PAD + w)] = rbias
    packed["red_w"] = jnp.asarray(rw, jnp.bfloat16)
    packed["red_b"] = jnp.asarray(rb, jnp.float32)

    # --- stages: fold Kx1 / 1xK into the KxK weight, band over padded W ------
    for K, name in ((7, "7"), (5, "5"), (3, "3")):
        pd = K // 2
        wc = q[f"c{name}_w"].copy()                           # (K, K, hid, hid)
        wc[:, pd, :, :] += q[f"v{name}_w"][:, 0, :, :]        # exact fold
        wc[pd, :, :, :] += q[f"q{name}_w"][0, :, :, :]        # (same padding)
        bsum = (q[f"c{name}_b"] + q[f"v{name}_b"] + q[f"q{name}_b"]).reshape(hidden)

        band = np.zeros((K, L, L), np.float32)
        bb = np.zeros((1, L), np.float32)
        for w in range(W):
            bb[0, pblock(PAD + w)] = bsum
            for dy in range(K):
                for dx in range(K):
                    j = w + dx + (PAD - pd)                   # padded input pos
                    band[dy, pblock(j), pblock(PAD + w)] = wc[dy, dx]
        packed[f"s{name}_w"] = jnp.asarray(band, jnp.bfloat16)
        packed[f"s{name}_b"] = jnp.asarray(bb, jnp.float32)

    # --- return 1x1 conv with inference BatchNorm folded in ------------------
    scale = q["bn_gamma"] / np.sqrt(q["bn_var"] + eps)
    wf = q["ret_w"][0, 0] * scale[None, :]                    # (hidden, in_ch)
    bf = (q["ret_b"].reshape(-1) - q["bn_mean"]) * scale + q["bn_beta"]
    tw = np.zeros((L, W * in_ch), np.float32)
    tb = np.zeros((1, W * in_ch), np.float32)
    for w in range(W):
        tw[pblock(PAD + w), w * in_ch:(w + 1) * in_ch] = wf
        tb[0, w * in_ch:(w + 1) * in_ch] = bf
    packed["ret_w"] = jnp.asarray(tw, jnp.bfloat16)
    packed["ret_b"] = jnp.asarray(tb, jnp.float32)
    return packed


# --------------------------------------------------------------------------
# Pure-JAX reference (unfused, full precision)
# --------------------------------------------------------------------------
def _conv_ref(x, w, b, pad_h, pad_w):
    y = jax.lax.conv_general_dilated(
        x, w, window_strides=(1, 1),
        padding=((pad_h, pad_h), (pad_w, pad_w)),
        dimension_numbers=("NHWC", "HWIO", "NHWC"),
        precision=REF_PREC)
    return y + b.reshape(1, 1, 1, -1)


def intra_cl_block_ref(x, p):
    x_new = _conv_ref(x, p["reduce_w"], p["reduce_b"], 0, 0)
    h = x_new
    for K, n in ((7, "7"), (5, "5"), (3, "3")):
        pd = K // 2
        h = (_conv_ref(h, p[f"c{n}_w"], p[f"c{n}_b"], pd, pd)
             + _conv_ref(h, p[f"v{n}_w"], p[f"v{n}_b"], pd, 0)
             + _conv_ref(h, p[f"q{n}_w"], p[f"q{n}_b"], 0, pd))
    y = _conv_ref(h, p["ret_w"], p["ret_b"], 0, 0)
    eps = 1e-5
    scale = p["bn_gamma"] / jnp.sqrt(p["bn_var"] + eps)
    y = (y - p["bn_mean"].reshape(1, 1, 1, -1)) * scale.reshape(1, 1, 1, -1) \
        + p["bn_beta"].reshape(1, 1, 1, -1)
    y = jnp.maximum(y, 0.0)
    return x + y


# --------------------------------------------------------------------------
if __name__ == "__main__":
    # Small shapes consistent with the module (in_ch divisible by reduce_factor=4).
    N, C, H, W = 2, 16, 16, 16
    hidden = C // 4
    key = jax.random.PRNGKey(0)
    kx, kp = jax.random.split(key)

    x_nchw = jax.random.normal(kx, (N, C, H, W), jnp.float32)   # PyTorch-style input
    x_nhwc = jnp.transpose(x_nchw, (0, 2, 3, 1))                # kernel layout: NHWC

    params = make_params(kp, in_ch=C, reduce_factor=4)
    packed = pack_params(params, W, C, hidden)

    out_nhwc = jax.block_until_ready(intra_cl_block_pallas(x_nhwc, packed))
    ref_nhwc = jax.block_until_ready(intra_cl_block_ref(x_nhwc, params))
    out_nchw = jnp.transpose(out_nhwc, (0, 3, 1, 2))            # back to NCHW
    assert out_nchw.shape == (N, C, H, W)

    # Single-pass bf16 MXU operands (f32 accumulation) across 5 chained convs:
    # expected error ~1e-3..3e-3 absolute; validate at 1e-2 against the
    # HIGHEST-precision reference (still catches any structural/layout bug).
    np.testing.assert_allclose(np.asarray(out_nhwc), np.asarray(ref_nhwc),
                               rtol=1e-2, atol=1e-2)
    print("KERNEL_OK")
</pallas_src>

<mosaic_0001>
module attributes {stable_mosaic.version = 11 : i64} {
  func.func @intra_cl_kernel(%arg0: i32, %arg1: memref<2x16x256xf32, #tpu.memory_space<vmem>>, %arg2: memref<256x128xbf16, #tpu.memory_space<vmem>>, %arg3: memref<1x128xf32, #tpu.memory_space<vmem>>, %arg4: memref<7x128x128xbf16, #tpu.memory_space<vmem>>, %arg5: memref<1x128xf32, #tpu.memory_space<vmem>>, %arg6: memref<5x128x128xbf16, #tpu.memory_space<vmem>>, %arg7: memref<1x128xf32, #tpu.memory_space<vmem>>, %arg8: memref<3x128x128xbf16, #tpu.memory_space<vmem>>, %arg9: memref<1x128xf32, #tpu.memory_space<vmem>>, %arg10: memref<128x256xbf16, #tpu.memory_space<vmem>>, %arg11: memref<1x256xf32, #tpu.memory_space<vmem>>, %arg12: memref<2x16x256xf32, #tpu.memory_space<vmem>>, %arg13: memref<64x128xbf16, #tpu.memory_space<vmem>>) attributes {dimension_semantics = [#tpu.dimension_semantics<parallel>], iteration_bounds = array<i64: 1>, scalar_prefetch = 0 : i64, scratch_operands = 1 : i64, tpu.core_type = #tpu.core_type<tc>, window_params = [{transform_indices = @transform_0, window_bounds = array<i64: 2, 16, 256>}, {pipeline_mode = #tpu.pipeline_mode<synchronous>, transform_indices = @transform_1, window_bounds = array<i64: 256, 128>}, {pipeline_mode = #tpu.pipeline_mode<synchronous>, transform_indices = @transform_2, window_bounds = array<i64: 1, 128>}, {pipeline_mode = #tpu.pipeline_mode<synchronous>, transform_indices = @transform_3, window_bounds = array<i64: 7, 128, 128>}, {pipeline_mode = #tpu.pipeline_mode<synchronous>, transform_indices = @transform_4, window_bounds = array<i64: 1, 128>}, {pipeline_mode = #tpu.pipeline_mode<synchronous>, transform_indices = @transform_5, window_bounds = array<i64: 5, 128, 128>}, {pipeline_mode = #tpu.pipeline_mode<synchronous>, transform_indices = @transform_6, window_bounds = array<i64: 1, 128>}, {pipeline_mode = #tpu.pipeline_mode<synchronous>, transform_indices = @transform_7, window_bounds = array<i64: 3, 128, 128>}, {pipeline_mode = #tpu.pipeline_mode<synchronous>, transform_indices = @transform_8, window_bounds = array<i64: 1, 128>}, {pipeline_mode = #tpu.pipeline_mode<synchronous>, transform_indices = @transform_9, window_bounds = array<i64: 128, 256>}, {pipeline_mode = #tpu.pipeline_mode<synchronous>, transform_indices = @transform_10, window_bounds = array<i64: 1, 256>}, {transform_indices = @transform_11, window_bounds = array<i64: 2, 16, 256>}]} {
    %cst = arith.constant 0.000000e+00 : bf16
    %0 = vector.broadcast %cst : bf16 to vector<8x128xbf16>
    %c0 = arith.constant 0 : index
    %c0_0 = arith.constant 0 : index
    %1 = vector.load %arg13[%c0, %c0_0] : memref<64x128xbf16, #tpu.memory_space<vmem>>, vector<8x128xbf16>
    tpu.vector_store %arg13[%c0, %c0_0], %0 {strides = array<i32>} : memref<64x128xbf16, #tpu.memory_space<vmem>>, vector<8x128xbf16>,
    %cst_1 = arith.constant 0.000000e+00 : bf16
    %2 = vector.broadcast %cst_1 : bf16 to vector<8x128xbf16>
    %c56 = arith.constant 56 : index
    %c0_2 = arith.constant 0 : index
    %3 = vector.load %arg13[%c56, %c0_2] : memref<64x128xbf16, #tpu.memory_space<vmem>>, vector<8x128xbf16>
    tpu.vector_store %arg13[%c56, %c0_2], %2 {strides = array<i32>} : memref<64x128xbf16, #tpu.memory_space<vmem>>, vector<8x128xbf16>,
    %cst_3 = arith.constant 0.000000e+00 : bf16
    %4 = vector.broadcast %cst_3 : bf16 to vector<8x128xbf16>
    %c24 = arith.constant 24 : index
    %c0_4 = arith.constant 0 : index
    %5 = vector.load %arg13[%c24, %c0_4] : memref<64x128xbf16, #tpu.memory_space<vmem>>, vector<8x128xbf16>
    tpu.vector_store %arg13[%c24, %c0_4], %4 {strides = array<i32>} : memref<64x128xbf16, #tpu.memory_space<vmem>>, vector<8x128xbf16>,
    %c48 = arith.constant 48 : index
    %c0_5 = arith.constant 0 : index
    %6 = vector.load %arg13[%c48, %c0_5] : memref<64x128xbf16, #tpu.memory_space<vmem>>, vector<8x128xbf16>
    tpu.vector_store %arg13[%c48, %c0_5], %4 {strides = array<i32>} : memref<64x128xbf16, #tpu.memory_space<vmem>>, vector<8x128xbf16>,
    %c0_6 = arith.constant 0 : index
    %c0_7 = arith.constant 0 : index
    %c0_8 = arith.constant 0 : index
    %7 = vector.load %arg1[%c0_6, %c0_7, %c0_8] : memref<2x16x256xf32, #tpu.memory_space<vmem>>, vector<2x16x256xf32>
    %8 = vector.shape_cast %7 : vector<2x16x256xf32> to vector<32x256xf32>
    %c0_9 = arith.constant 0 : index
    %c0_10 = arith.constant 0 : index
    %9 = vector.load %arg2[%c0_9, %c0_10] : memref<256x128xbf16, #tpu.memory_space<vmem>>, vector<256x128xbf16>
    %10 = arith.truncf %8 : vector<32x256xf32> to vector<32x256xbf16>
    %cst_11 = arith.constant dense<0.000000e+00> : vector<32x128xf32>
    %11 = tpu.matmul %10, %9, %cst_11 {dimension_numbers = #tpu.dot_dimension_numbers<[1], [0], [0], [1], [0, 0, 1, 1], [], []>} : vector<32x256xbf16>, vector<256x128xbf16>, vector<32x128xf32> -> vector<32x128xf32>
    %c0_12 = arith.constant 0 : index
    %c0_13 = arith.constant 0 : index
    %12 = vector.load %arg3[%c0_12, %c0_13] : memref<1x128xf32, #tpu.memory_space<vmem>>, vector<1x128xf32>
    %13 = vector.broadcast %12 : vector<1x128xf32> to vector<32x128xf32>
    %14 = arith.addf %11, %13 : vector<32x128xf32>
    %15 = vector.extract_strided_slice %14 {offsets = [0, 0], sizes = [16, 128], strides = [1, 1]} : vector<32x128xf32> to vector<16x128xf32>
    %16 = arith.truncf %15 : vector<16x128xf32> to vector<16x128xbf16>
    %c8 = arith.constant 8 : index
    %c0_14 = arith.constant 0 : index
    %17 = vector.load %arg13[%c8, %c0_14] : memref<64x128xbf16, #tpu.memory_space<vmem>>, vector<16x128xbf16>
    tpu.vector_store %arg13[%c8, %c0_14], %16 {strides = array<i32>} : memref<64x128xbf16, #tpu.memory_space<vmem>>, vector<16x128xbf16>,
    %18 = vector.extract_strided_slice %14 {offsets = [16, 0], sizes = [16, 128], strides = [1, 1]} : vector<32x128xf32> to vector<16x128xf32>
    %19 = arith.truncf %18 : vector<16x128xf32> to vector<16x128xbf16>
    %c32 = arith.constant 32 : index
    %c0_15 = arith.constant 0 : index
    %20 = vector.load %arg13[%c32, %c0_15] : memref<64x128xbf16, #tpu.memory_space<vmem>>, vector<16x128xbf16>
    tpu.vector_store %arg13[%c32, %c0_15], %19 {strides = array<i32>} : memref<64x128xbf16, #tpu.memory_space<vmem>>, vector<16x128xbf16>,
    %c5 = arith.constant 5 : index
    %c0_16 = arith.constant 0 : index
    %21 = vector.load %arg13[%c5, %c0_16] : memref<64x128xbf16, #tpu.memory_space<vmem>>, vector<48x128xbf16>
    %c0_17 = arith.constant 0 : index
    %c0_18 = arith.constant 0 : index
    %c0_19 = arith.constant 0 : index
    %22 = vector.load %arg4[%c0_17, %c0_18, %c0_19] : memref<7x128x128xbf16, #tpu.memory_space<vmem>>, vector<1x128x128xbf16>
    %23 = vector.shape_cast %22 : vector<1x128x128xbf16> to vector<128x128xbf16>
    %cst_20 = arith.constant dense<0.000000e+00> : vector<48x128xf32>
    %24 = tpu.matmul %21, %23, %cst_20 {dimension_numbers = #tpu.dot_dimension_numbers<[1], [0], [0], [1], [0, 0, 1, 1], [], []>} : vector<48x128xbf16>, vector<128x128xbf16>, vector<48x128xf32> -> vector<48x128xf32>
    %c6 = arith.constant 6 : index
    %c0_21 = arith.constant 0 : index
    %25 = vector.load %arg13[%c6, %c0_21] : memref<64x128xbf16, #tpu.memory_space<vmem>>, vector<48x128xbf16>
    %c1 = arith.constant 1 : index
    %c0_22 = arith.constant 0 : index
    %c0_23 = arith.constant 0 : index
    %26 = vector.load %arg4[%c1, %c0_22, %c0_23] : memref<7x128x128xbf16, #tpu.memory_space<vmem>>, vector<1x128x128xbf16>
    %27 = vector.shape_cast %26 : vector<1x128x128xbf16> to vector<128x128xbf16>
    %cst_24 = arith.constant dense<0.000000e+00> : vector<48x128xf32>
    %28 = tpu.matmul %25, %27, %cst_24 {dimension_numbers = #tpu.dot_dimension_numbers<[1], [0], [0], [1], [0, 0, 1, 1], [], []>} : vector<48x128xbf16>, vector<128x128xbf16>, vector<48x128xf32> -> vector<48x128xf32>
    %29 = arith.addf %24, %28 : vector<48x128xf32>
    %c7 = arith.constant 7 : index
    %c0_25 = arith.constant 0 : index
    %30 = vector.load %arg13[%c7, %c0_25] : memref<64x128xbf16, #tpu.memory_space<vmem>>, vector<48x128xbf16>
    %c2 = arith.constant 2 : index
    %c0_26 = arith.constant 0 : index
    %c0_27 = arith.constant 0 : index
    %31 = vector.load %arg4[%c2, %c0_26, %c0_27] : memref<7x128x128xbf16, #tpu.memory_space<vmem>>, vector<1x128x128xbf16>
    %32 = vector.shape_cast %31 : vector<1x128x128xbf16> to vector<128x128xbf16>
    %cst_28 = arith.constant dense<0.000000e+00> : vector<48x128xf32>
    %33 = tpu.matmul %30, %32, %cst_28 {dimension_numbers = #tpu.dot_dimension_numbers<[1], [0], [0], [1], [0, 0, 1, 1], [], []>} : vector<48x128xbf16>, vector<128x128xbf16>, vector<48x128xf32> -> vector<48x128xf32>
    %34 = arith.addf %29, %33 : vector<48x128xf32>
    %c8_29 = arith.constant 8 : index
    %c0_30 = arith.constant 0 : index
    %35 = vector.load %arg13[%c8_29, %c0_30] : memref<64x128xbf16, #tpu.memory_space<vmem>>, vector<48x128xbf16>
    %c3 = arith.constant 3 : index
    %c0_31 = arith.constant 0 : index
    %c0_32 = arith.constant 0 : index
    %36 = vector.load %arg4[%c3, %c0_31, %c0_32] : memref<7x128x128xbf16, #tpu.memory_space<vmem>>, vector<1x128x128xbf16>
    %37 = vector.shape_cast %36 : vector<1x128x128xbf16> to vector<128x128xbf16>
    %cst_33 = arith.constant dense<0.000000e+00> : vector<48x128xf32>
    %38 = tpu.matmul %35, %37, %cst_33 {dimension_numbers = #tpu.dot_dimension_numbers<[1], [0], [0], [1], [0, 0, 1, 1], [], []>} : vector<48x128xbf16>, vector<128x128xbf16>, vector<48x128xf32> -> vector<48x128xf32>
    %39 = arith.addf %34, %38 : vector<48x128xf32>
    %c9 = arith.constant 9 : index
    %c0_34 = arith.constant 0 : index
    %40 = vector.load %arg13[%c9, %c0_34] : memref<64x128xbf16, #tpu.memory_space<vmem>>, vector<48x128xbf16>
    %c4 = arith.constant 4 : index
    %c0_35 = arith.constant 0 : index
    %c0_36 = arith.constant 0 : index
    %41 = vector.load %arg4[%c4, %c0_35, %c0_36] : memref<7x128x128xbf16, #tpu.memory_space<vmem>>, vector<1x128x128xbf16>
    %42 = vector.shape_cast %41 : vector<1x128x128xbf16> to vector<128x128xbf16>
    %cst_37 = arith.constant dense<0.000000e+00> : vector<48x128xf32>
    %43 = tpu.matmul %40, %42, %cst_37 {dimension_numbers = #tpu.dot_dimension_numbers<[1], [0], [0], [1], [0, 0, 1, 1], [], []>} : vector<48x128xbf16>, vector<128x128xbf16>, vector<48x128xf32> -> vector<48x128xf32>
    %44 = arith.addf %39, %43 : vector<48x128xf32>
    %c10 = arith.constant 10 : index
    %c0_38 = arith.constant 0 : index
    %45 = vector.load %arg13[%c10, %c0_38] : memref<64x128xbf16, #tpu.memory_space<vmem>>, vector<48x128xbf16>
    %c5_39 = arith.constant 5 : index
    %c0_40 = arith.constant 0 : index
    %c0_41 = arith.constant 0 : index
    %46 = vector.load %arg4[%c5_39, %c0_40, %c0_41] : memref<7x128x128xbf16, #tpu.memory_space<vmem>>, vector<1x128x128xbf16>
    %47 = vector.shape_cast %46 : vector<1x128x128xbf16> to vector<128x128xbf16>
    %cst_42 = arith.constant dense<0.000000e+00> : vector<48x128xf32>
    %48 = tpu.matmul %45, %47, %cst_42 {dimension_numbers = #tpu.dot_dimension_numbers<[1], [0], [0], [1], [0, 0, 1, 1], [], []>} : vector<48x128xbf16>, vector<128x128xbf16>, vector<48x128xf32> -> vector<48x128xf32>
    %49 = arith.addf %44, %48 : vector<48x128xf32>
    %c11 = arith.constant 11 : index
    %c0_43 = arith.constant 0 : index
    %50 = vector.load %arg13[%c11, %c0_43] : memref<64x128xbf16, #tpu.memory_space<vmem>>, vector<48x128xbf16>
    %c6_44 = arith.constant 6 : index
    %c0_45 = arith.constant 0 : index
    %c0_46 = arith.constant 0 : index
    %51 = vector.load %arg4[%c6_44, %c0_45, %c0_46] : memref<7x128x128xbf16, #tpu.memory_space<vmem>>, vector<1x128x128xbf16>
    %52 = vector.shape_cast %51 : vector<1x128x128xbf16> to vector<128x128xbf16>
    %cst_47 = arith.constant dense<0.000000e+00> : vector<48x128xf32>
    %53 = tpu.matmul %50, %52, %cst_47 {dimension_numbers = #tpu.dot_dimension_numbers<[1], [0], [0], [1], [0, 0, 1, 1], [], []>} : vector<48x128xbf16>, vector<128x128xbf16>, vector<48x128xf32> -> vector<48x128xf32>
    %54 = arith.addf %49, %53 : vector<48x128xf32>
    %c0_48 = arith.constant 0 : index
    %c0_49 = arith.constant 0 : index
    %55 = vector.load %arg5[%c0_48, %c0_49] : memref<1x128xf32, #tpu.memory_space<vmem>>, vector<1x128xf32>
    %56 = vector.broadcast %55 : vector<1x128xf32> to vector<48x128xf32>
    %57 = arith.addf %54, %56 : vector<48x128xf32>
    %58 = vector.extract_strided_slice %57 {offsets = [0, 0], sizes = [16, 128], strides = [1, 1]} : vector<48x128xf32> to vector<16x128xf32>
    %59 = arith.truncf %58 : vector<16x128xf32> to vector<16x128xbf16>
    %c8_50 = arith.constant 8 : index
    %c0_51 = arith.constant 0 : index
    %60 = vector.load %arg13[%c8_50, %c0_51] : memref<64x128xbf16, #tpu.memory_space<vmem>>, vector<16x128xbf16>
    tpu.vector_store %arg13[%c8_50, %c0_51], %59 {strides = array<i32>} : memref<64x128xbf16, #tpu.memory_space<vmem>>, vector<16x128xbf16>,
    %61 = vector.extract_strided_slice %57 {offsets = [24, 0], sizes = [16, 128], strides = [1, 1]} : vector<48x128xf32> to vector<16x128xf32>
    %62 = arith.truncf %61 : vector<16x128xf32> to vector<16x128xbf16>
    %c32_52 = arith.constant 32 : index
    %c0_53 = arith.constant 0 : index
    %63 = vector.load %arg13[%c32_52, %c0_53] : memref<64x128xbf16, #tpu.memory_space<vmem>>, vector<16x128xbf16>
    tpu.vector_store %arg13[%c32_52, %c0_53], %62 {strides = array<i32>} : memref<64x128xbf16, #tpu.memory_space<vmem>>, vector<16x128xbf16>,
    %c6_54 = arith.constant 6 : index
    %c0_55 = arith.constant 0 : index
    %64 = vector.load %arg13[%c6_54, %c0_55] : memref<64x128xbf16, #tpu.memory_space<vmem>>, vector<48x128xbf16>
    %c0_56 = arith.constant 0 : index
    %c0_57 = arith.constant 0 : index
    %c0_58 = arith.constant 0 : index
    %65 = vector.load %arg6[%c0_56, %c0_57, %c0_58] : memref<5x128x128xbf16, #tpu.memory_space<vmem>>, vector<1x128x128xbf16>
    %66 = vector.shape_cast %65 : vector<1x128x128xbf16> to vector<128x128xbf16>
    %cst_59 = arith.constant dense<0.000000e+00> : vector<48x128xf32>
    %67 = tpu.matmul %64, %66, %cst_59 {dimension_numbers = #tpu.dot_dimension_numbers<[1], [0], [0], [1], [0, 0, 1, 1], [], []>} : vector<48x128xbf16>, vector<128x128xbf16>, vector<48x128xf32> -> vector<48x128xf32>
    %c7_60 = arith.constant 7 : index
    %c0_61 = arith.constant 0 : index
    %68 = vector.load %arg13[%c7_60, %c0_61] : memref<64x128xbf16, #tpu.memory_space<vmem>>, vector<48x128xbf16>
    %c1_62 = arith.constant 1 : index
    %c0_63 = arith.constant 0 : index
    %c0_64 = arith.constant 0 : index
    %69 = vector.load %arg6[%c1_62, %c0_63, %c0_64] : memref<5x128x128xbf16, #tpu.memory_space<vmem>>, vector<1x128x128xbf16>
    %70 = vector.shape_cast %69 : vector<1x128x128xbf16> to vector<128x128xbf16>
    %cst_65 = arith.constant dense<0.000000e+00> : vector<48x128xf32>
    %71 = tpu.matmul %68, %70, %cst_65 {dimension_numbers = #tpu.dot_dimension_numbers<[1], [0], [0], [1], [0, 0, 1, 1], [], []>} : vector<48x128xbf16>, vector<128x128xbf16>, vector<48x128xf32> -> vector<48x128xf32>
    %72 = arith.addf %67, %71 : vector<48x128xf32>
    %c8_66 = arith.constant 8 : index
    %c0_67 = arith.constant 0 : index
    %73 = vector.load %arg13[%c8_66, %c0_67] : memref<64x128xbf16, #tpu.memory_space<vmem>>, vector<48x128xbf16>
    %c2_68 = arith.constant 2 : index
    %c0_69 = arith.constant 0 : index
    %c0_70 = arith.constant 0 : index
    %74 = vector.load %arg6[%c2_68, %c0_69, %c0_70] : memref<5x128x128xbf16, #tpu.memory_space<vmem>>, vector<1x128x128xbf16>
    %75 = vector.shape_cast %74 : vector<1x128x128xbf16> to vector<128x128xbf16>
    %cst_71 = arith.constant dense<0.000000e+00> : vector<48x128xf32>
    %76 = tpu.matmul %73, %75, %cst_71 {dimension_numbers = #tpu.dot_dimension_numbers<[1], [0], [0], [1], [0, 0, 1, 1], [], []>} : vector<48x128xbf16>, vector<128x128xbf16>, vector<48x128xf32> -> vector<48x128xf32>
    %77 = arith.addf %72, %76 : vector<48x128xf32>
    %c9_72 = arith.constant 9 : index
    %c0_73 = arith.constant 0 : index
    %78 = vector.load %arg13[%c9_72, %c0_73] : memref<64x128xbf16, #tpu.memory_space<vmem>>, vector<48x128xbf16>
    %c3_74 = arith.constant 3 : index
    %c0_75 = arith.constant 0 : index
    %c0_76 = arith.constant 0 : index
    %79 = vector.load %arg6[%c3_74, %c0_75, %c0_76] : memref<5x128x128xbf16, #tpu.memory_space<vmem>>, vector<1x128x128xbf16>
    %80 = vector.shape_cast %79 : vector<1x128x128xbf16> to vector<128x128xbf16>
    %cst_77 = arith.constant dense<0.000000e+00> : vector<48x128xf32>
    %81 = tpu.matmul %78, %80, %cst_77 {dimension_numbers = #tpu.dot_dimension_numbers<[1], [0], [0], [1], [0, 0, 1, 1], [], []>} : vector<48x128xbf16>, vector<128x128xbf16>, vector<48x128xf32> -> vector<48x128xf32>
    %82 = arith.addf %77, %81 : vector<48x128xf32>
    %c10_78 = arith.constant 10 : index
    %c0_79 = arith.constant 0 : index
    %83 = vector.load %arg13[%c10_78, %c0_79] : memref<64x128xbf16, #tpu.memory_space<vmem>>, vector<48x128xbf16>
    %c4_80 = arith.constant 4 : index
    %c0_81 = arith.constant 0 : index
    %c0_82 = arith.constant 0 : index
    %84 = vector.load %arg6[%c4_80, %c0_81, %c0_82] : memref<5x128x128xbf16, #tpu.memory_space<vmem>>, vector<1x128x128xbf16>
    %85 = vector.shape_cast %84 : vector<1x128x128xbf16> to vector<128x128xbf16>
    %cst_83 = arith.constant dense<0.000000e+00> : vector<48x128xf32>
    %86 = tpu.matmul %83, %85, %cst_83 {dimension_numbers = #tpu.dot_dimension_numbers<[1], [0], [0], [1], [0, 0, 1, 1], [], []>} : vector<48x128xbf16>, vector<128x128xbf16>, vector<48x128xf32> -> vector<48x128xf32>
    %87 = arith.addf %82, %86 : vector<48x128xf32>
    %c0_84 = arith.constant 0 : index
    %c0_85 = arith.constant 0 : index
    %88 = vector.load %arg7[%c0_84, %c0_85] : memref<1x128xf32, #tpu.memory_space<vmem>>, vector<1x128xf32>
    %89 = vector.broadcast %88 : vector<1x128xf32> to vector<48x128xf32>
    %90 = arith.addf %87, %89 : vector<48x128xf32>
    %91 = vector.extract_strided_slice %90 {offsets = [0, 0], sizes = [16, 128], strides = [1, 1]} : vector<48x128xf32> to vector<16x128xf32>
    %92 = arith.truncf %91 : vector<16x128xf32> to vector<16x128xbf16>
    %c8_86 = arith.constant 8 : index
    %c0_87 = arith.constant 0 : index
    %93 = vector.load %arg13[%c8_86, %c0_87] : memref<64x128xbf16, #tpu.memory_space<vmem>>, vector<16x128xbf16>
    tpu.vector_store %arg13[%c8_86, %c0_87], %92 {strides = array<i32>} : memref<64x128xbf16, #tpu.memory_space<vmem>>, vector<16x128xbf16>,
    %94 = vector.extract_strided_slice %90 {offsets = [24, 0], sizes = [16, 128], strides = [1, 1]} : vector<48x128xf32> to vector<16x128xf32>
    %95 = arith.truncf %94 : vector<16x128xf32> to vector<16x128xbf16>
    %c32_88 = arith.constant 32 : index
    %c0_89 = arith.constant 0 : index
    %96 = vector.load %arg13[%c32_88, %c0_89] : memref<64x128xbf16, #tpu.memory_space<vmem>>, vector<16x128xbf16>
    tpu.vector_store %arg13[%c32_88, %c0_89], %95 {strides = array<i32>} : memref<64x128xbf16, #tpu.memory_space<vmem>>, vector<16x128xbf16>,
    %c7_90 = arith.constant 7 : index
    %c0_91 = arith.constant 0 : index
    %97 = vector.load %arg13[%c7_90, %c0_91] : memref<64x128xbf16, #tpu.memory_space<vmem>>, vector<48x128xbf16>
    %c0_92 = arith.constant 0 : index
    %c0_93 = arith.constant 0 : index
    %c0_94 = arith.constant 0 : index
    %98 = vector.load %arg8[%c0_92, %c0_93, %c0_94] : memref<3x128x128xbf16, #tpu.memory_space<vmem>>, vector<1x128x128xbf16>
    %99 = vector.shape_cast %98 : vector<1x128x128xbf16> to vector<128x128xbf16>
    %cst_95 = arith.constant dense<0.000000e+00> : vector<48x128xf32>
    %100 = tpu.matmul %97, %99, %cst_95 {dimension_numbers = #tpu.dot_dimension_numbers<[1], [0], [0], [1], [0, 0, 1, 1], [], []>} : vector<48x128xbf16>, vector<128x128xbf16>, vector<48x128xf32> -> vector<48x128xf32>
    %c8_96 = arith.constant 8 : index
    %c0_97 = arith.constant 0 : index
    %101 = vector.load %arg13[%c8_96, %c0_97] : memref<64x128xbf16, #tpu.memory_space<vmem>>, vector<48x128xbf16>
    %c1_98 = arith.constant 1 : index
    %c0_99 = arith.constant 0 : index
    %c0_100 = arith.constant 0 : index
    %102 = vector.load %arg8[%c1_98, %c0_99, %c0_100] : memref<3x128x128xbf16, #tpu.memory_space<vmem>>, vector<1x128x128xbf16>
    %103 = vector.shape_cast %102 : vector<1x128x128xbf16> to vector<128x128xbf16>
    %cst_101 = arith.constant dense<0.000000e+00> : vector<48x128xf32>
    %104 = tpu.matmul %101, %103, %cst_101 {dimension_numbers = #tpu.dot_dimension_numbers<[1], [0], [0], [1], [0, 0, 1, 1], [], []>} : vector<48x128xbf16>, vector<128x128xbf16>, vector<48x128xf32> -> vector<48x128xf32>
    %105 = arith.addf %100, %104 : vector<48x128xf32>
    %c9_102 = arith.constant 9 : index
    %c0_103 = arith.constant 0 : index
    %106 = vector.load %arg13[%c9_102, %c0_103] : memref<64x128xbf16, #tpu.memory_space<vmem>>, vector<48x128xbf16>
    %c2_104 = arith.constant 2 : index
    %c0_105 = arith.constant 0 : index
    %c0_106 = arith.constant 0 : index
    %107 = vector.load %arg8[%c2_104, %c0_105, %c0_106] : memref<3x128x128xbf16, #tpu.memory_space<vmem>>, vector<1x128x128xbf16>
    %108 = vector.shape_cast %107 : vector<1x128x128xbf16> to vector<128x128xbf16>
    %cst_107 = arith.constant dense<0.000000e+00> : vector<48x128xf32>
    %109 = tpu.matmul %106, %108, %cst_107 {dimension_numbers = #tpu.dot_dimension_numbers<[1], [0], [0], [1], [0, 0, 1, 1], [], []>} : vector<48x128xbf16>, vector<128x128xbf16>, vector<48x128xf32> -> vector<48x128xf32>
    %110 = arith.addf %105, %109 : vector<48x128xf32>
    %c0_108 = arith.constant 0 : index
    %c0_109 = arith.constant 0 : index
    %111 = vector.load %arg9[%c0_108, %c0_109] : memref<1x128xf32, #tpu.memory_space<vmem>>, vector<1x128xf32>
    %112 = vector.broadcast %111 : vector<1x128xf32> to vector<48x128xf32>
    %113 = arith.addf %110, %112 : vector<48x128xf32>
    %c0_110 = arith.constant 0 : index
    %c0_111 = arith.constant 0 : index
    %114 = vector.load %arg10[%c0_110, %c0_111] : memref<128x256xbf16, #tpu.memory_space<vmem>>, vector<128x256xbf16>
    %115 = arith.truncf %113 : vector<48x128xf32> to vector<48x128xbf16>
    %cst_112 = arith.constant dense<0.000000e+00> : vector<48x256xf32>
    %116 = tpu.matmul %115, %114, %cst_112 {dimension_numbers = #tpu.dot_dimension_numbers<[1], [0], [0], [1], [0, 0, 1, 1], [], []>} : vector<48x128xbf16>, vector<128x256xbf16>, vector<48x256xf32> -> vector<48x256xf32>
    %c0_113 = arith.constant 0 : index
    %c0_114 = arith.constant 0 : index
    %117 = vector.load %arg11[%c0_113, %c0_114] : memref<1x256xf32, #tpu.memory_space<vmem>>, vector<1x256xf32>
    %118 = vector.broadcast %117 : vector<1x256xf32> to vector<48x256xf32>
    %119 = arith.addf %116, %118 : vector<48x256xf32>
    %c0_115 = arith.constant 0 : index
    %c0_116 = arith.constant 0 : index
    %c0_117 = arith.constant 0 : index
    %120 = vector.load %arg1[%c0_115, %c0_116, %c0_117] : memref<2x16x256xf32, #tpu.memory_space<vmem>>, vector<1x16x256xf32>
    %121 = vector.shape_cast %120 : vector<1x16x256xf32> to vector<16x256xf32>
    %122 = vector.extract_strided_slice %119 {offsets = [0, 0], sizes = [16, 256], strides = [1, 1]} : vector<48x256xf32> to vector<16x256xf32>
    %cst_118 = arith.constant 0.000000e+00 : f32
    %123 = vector.broadcast %cst_118 : f32 to vector<16x256xf32>
    %124 = arith.maximumf %122, %123 : vector<16x256xf32>
    %125 = arith.addf %121, %124 : vector<16x256xf32>
    %c0_119 = arith.constant 0 : index
    %c0_120 = arith.constant 0 : index
    %c0_121 = arith.constant 0 : index
    %126 = vector.load %arg12[%c0_119, %c0_120, %c0_121] : memref<2x16x256xf32, #tpu.memory_space<vmem>>, vector<1x16x256xf32>
    %127 = vector.shape_cast %126 : vector<1x16x256xf32> to vector<16x256xf32>
    %128 = vector.shape_cast %125 : vector<16x256xf32> to vector<1x16x256xf32>
    tpu.vector_store %arg12[%c0_119, %c0_120, %c0_121], %128 {strides = array<i32>} : memref<2x16x256xf32, #tpu.memory_space<vmem>>, vector<1x16x256xf32>,
    %c1_122 = arith.constant 1 : index
    %c0_123 = arith.constant 0 : index
    %c0_124 = arith.constant 0 : index
    %129 = vector.load %arg1[%c1_122, %c0_123, %c0_124] : memref<2x16x256xf32, #tpu.memory_space<vmem>>, vector<1x16x256xf32>
    %130 = vector.shape_cast %129 : vector<1x16x256xf32> to vector<16x256xf32>
    %131 = vector.extract_strided_slice %119 {offsets = [24, 0], sizes = [16, 256], strides = [1, 1]} : vector<48x256xf32> to vector<16x256xf32>
    %cst_125 = arith.constant 0.000000e+00 : f32
    %132 = vector.broadcast %cst_125 : f32 to vector<16x256xf32>
    %133 = arith.maximumf %131, %132 : vector<16x256xf32>
    %134 = arith.addf %130, %133 : vector<16x256xf32>
    %c1_126 = arith.constant 1 : index
    %c0_127 = arith.constant 0 : index
    %c0_128 = arith.constant 0 : index
    %135 = vector.load %arg12[%c1_126, %c0_127, %c0_128] : memref<2x16x256xf32, #tpu.memory_space<vmem>>, vector<1x16x256xf32>
    %136 = vector.shape_cast %135 : vector<1x16x256xf32> to vector<16x256xf32>
    %137 = vector.shape_cast %134 : vector<16x256xf32> to vector<1x16x256xf32>
    tpu.vector_store %arg12[%c1_126, %c0_127, %c0_128], %137 {strides = array<i32>} : memref<2x16x256xf32, #tpu.memory_space<vmem>>, vector<1x16x256xf32>,
    return
  }
  func.func @transform_0(%arg0: i32) -> (i32, i32, i32) {
    %c0_i32 = arith.constant 0 : i32
    %c0_i32_0 = arith.constant 0 : i32
    %c0_i32_1 = arith.constant 0 : i32
    return %arg0, %c0_i32, %c0_i32_0 : i32, i32, i32
  }
  func.func @transform_1(%arg0: i32) -> (i32, i32) {
    %c0_i32 = arith.constant 0 : i32
    %c0_i32_0 = arith.constant 0 : i32
    %c0_i32_1 = arith.constant 0 : i32
    return %c0_i32, %c0_i32_0 : i32, i32
  }
  func.func @transform_2(%arg0: i32) -> (i32, i32) {
    %c0_i32 = arith.constant 0 : i32
    %c0_i32_0 = arith.constant 0 : i32
    %c0_i32_1 = arith.constant 0 : i32
    return %c0_i32, %c0_i32_0 : i32, i32
  }
  func.func @transform_3(%arg0: i32) -> (i32, i32, i32) {
    %c0_i32 = arith.constant 0 : i32
    %c0_i32_0 = arith.constant 0 : i32
    %c0_i32_1 = arith.constant 0 : i32
    %c0_i32_2 = arith.constant 0 : i32
    return %c0_i32, %c0_i32_0, %c0_i32_1 : i32, i32, i32
  }
  func.func @transform_4(%arg0: i32) -> (i32, i32) {
    %c0_i32 = arith.constant 0 : i32
    %c0_i32_0 = arith.constant 0 : i32
    %c0_i32_1 = arith.constant 0 : i32
    return %c0_i32, %c0_i32_0 : i32, i32
  }
  func.func @transform_5(%arg0: i32) -> (i32, i32, i32) {
    %c0_i32 = arith.constant 0 : i32
    %c0_i32_0 = arith.constant 0 : i32
    %c0_i32_1 = arith.constant 0 : i32
    %c0_i32_2 = arith.constant 0 : i32
    return %c0_i32, %c0_i32_0, %c0_i32_1 : i32, i32, i32
  }
  func.func @transform_6(%arg0: i32) -> (i32, i32) {
    %c0_i32 = arith.constant 0 : i32
    %c0_i32_0 = arith.constant 0 : i32
    %c0_i32_1 = arith.constant 0 : i32
    return %c0_i32, %c0_i32_0 : i32, i32
  }
  func.func @transform_7(%arg0: i32) -> (i32, i32, i32) {
    %c0_i32 = arith.constant 0 : i32
    %c0_i32_0 = arith.constant 0 : i32
    %c0_i32_1 = arith.constant 0 : i32
    %c0_i32_2 = arith.constant 0 : i32
    return %c0_i32, %c0_i32_0, %c0_i32_1 : i32, i32, i32
  }
  func.func @transform_8(%arg0: i32) -> (i32, i32) {
    %c0_i32 = arith.constant 0 : i32
    %c0_i32_0 = arith.constant 0 : i32
    %c0_i32_1 = arith.constant 0 : i32
    return %c0_i32, %c0_i32_0 : i32, i32
  }
  func.func @transform_9(%arg0: i32) -> (i32, i32) {
    %c0_i32 = arith.constant 0 : i32
    %c0_i32_0 = arith.constant 0 : i32
    %c0_i32_1 = arith.constant 0 : i32
    return %c0_i32, %c0_i32_0 : i32, i32
  }
  func.func @transform_10(%arg0: i32) -> (i32, i32) {
    %c0_i32 = arith.constant 0 : i32
    %c0_i32_0 = arith.constant 0 : i32
    %c0_i32_1 = arith.constant 0 : i32
    return %c0_i32, %c0_i32_0 : i32, i32
  }
  func.func @transform_11(%arg0: i32) -> (i32, i32, i32) {
    %c0_i32 = arith.constant 0 : i32
    %c0_i32_0 = arith.constant 0 : i32
    %c0_i32_1 = arith.constant 0 : i32
    return %arg0, %c0_i32, %c0_i32_0 : i32, i32, i32
  }
}

module attributes {stable_mosaic.version = 11 : i64} {
  func.func @intra_cl_kernel(%arg0: i32, %arg1: memref<2x16x256xf32, #tpu.memory_space<vmem>>, %arg2: memref<256x128xbf16, #tpu.memory_space<vmem>>, %arg3: memref<1x128xf32, #tpu.memory_space<vmem>>, %arg4: memref<7x128x128xbf16, #tpu.memory_space<vmem>>, %arg5: memref<1x128xf32, #tpu.memory_space<vmem>>, %arg6: memref<5x128x128xbf16, #tpu.memory_space<vmem>>, %arg7: memref<1x128xf32, #tpu.memory_space<vmem>>, %arg8: memref<3x128x128xbf16, #tpu.memory_space<vmem>>, %arg9: memref<1x128xf32, #tpu.memory_space<vmem>>, %arg10: memref<128x256xbf16, #tpu.memory_space<vmem>>, %arg11: memref<1x256xf32, #tpu.memory_space<vmem>>, %arg12: memref<2x16x256xf32, #tpu.memory_space<vmem>>, %arg13: memref<64x128xbf16, #tpu.memory_space<vmem>>) attributes {dimension_semantics = [#tpu.dimension_semantics<parallel>], iteration_bounds = array<i64: 1>, scalar_prefetch = 0 : i64, scratch_operands = 1 : i64, tpu.core_type = #tpu.core_type<tc>, window_params = [{transform_indices = @transform_0, window_bounds = array<i64: 2, 16, 256>}, {pipeline_mode = #tpu.pipeline_mode<synchronous>, transform_indices = @transform_1, window_bounds = array<i64: 256, 128>}, {pipeline_mode = #tpu.pipeline_mode<synchronous>, transform_indices = @transform_2, window_bounds = array<i64: 1, 128>}, {pipeline_mode = #tpu.pipeline_mode<synchronous>, transform_indices = @transform_3, window_bounds = array<i64: 7, 128, 128>}, {pipeline_mode = #tpu.pipeline_mode<synchronous>, transform_indices = @transform_4, window_bounds = array<i64: 1, 128>}, {pipeline_mode = #tpu.pipeline_mode<synchronous>, transform_indices = @transform_5, window_bounds = array<i64: 5, 128, 128>}, {pipeline_mode = #tpu.pipeline_mode<synchronous>, transform_indices = @transform_6, window_bounds = array<i64: 1, 128>}, {pipeline_mode = #tpu.pipeline_mode<synchronous>, transform_indices = @transform_7, window_bounds = array<i64: 3, 128, 128>}, {pipeline_mode = #tpu.pipeline_mode<synchronous>, transform_indices = @transform_8, window_bounds = array<i64: 1, 128>}, {pipeline_mode = #tpu.pipeline_mode<synchronous>, transform_indices = @transform_9, window_bounds = array<i64: 128, 256>}, {pipeline_mode = #tpu.pipeline_mode<synchronous>, transform_indices = @transform_10, window_bounds = array<i64: 1, 256>}, {transform_indices = @transform_11, window_bounds = array<i64: 2, 16, 256>}]} {
    %cst = arith.constant 0.000000e+00 : bf16
    %0 = vector.broadcast %cst : bf16 to vector<8x128xbf16>
    %c0 = arith.constant 0 : index
    %c0_0 = arith.constant 0 : index
    %1 = vector.load %arg13[%c0, %c0_0] : memref<64x128xbf16, #tpu.memory_space<vmem>>, vector<8x128xbf16>
    tpu.vector_store %arg13[%c0, %c0_0], %0 {strides = array<i32>} : memref<64x128xbf16, #tpu.memory_space<vmem>>, vector<8x128xbf16>,
    %cst_1 = arith.constant 0.000000e+00 : bf16
    %2 = vector.broadcast %cst_1 : bf16 to vector<8x128xbf16>
    %c56 = arith.constant 56 : index
    %c0_2 = arith.constant 0 : index
    %3 = vector.load %arg13[%c56, %c0_2] : memref<64x128xbf16, #tpu.memory_space<vmem>>, vector<8x128xbf16>
    tpu.vector_store %arg13[%c56, %c0_2], %2 {strides = array<i32>} : memref<64x128xbf16, #tpu.memory_space<vmem>>, vector<8x128xbf16>,
    %cst_3 = arith.constant 0.000000e+00 : bf16
    %4 = vector.broadcast %cst_3 : bf16 to vector<8x128xbf16>
    %c24 = arith.constant 24 : index
    %c0_4 = arith.constant 0 : index
    %5 = vector.load %arg13[%c24, %c0_4] : memref<64x128xbf16, #tpu.memory_space<vmem>>, vector<8x128xbf16>
    tpu.vector_store %arg13[%c24, %c0_4], %4 {strides = array<i32>} : memref<64x128xbf16, #tpu.memory_space<vmem>>, vector<8x128xbf16>,
    %c48 = arith.constant 48 : index
    %c0_5 = arith.constant 0 : index
    %6 = vector.load %arg13[%c48, %c0_5] : memref<64x128xbf16, #tpu.memory_space<vmem>>, vector<8x128xbf16>
    tpu.vector_store %arg13[%c48, %c0_5], %4 {strides = array<i32>} : memref<64x128xbf16, #tpu.memory_space<vmem>>, vector<8x128xbf16>,
    %c0_6 = arith.constant 0 : index
    %c0_7 = arith.constant 0 : index
    %c0_8 = arith.constant 0 : index
    %7 = vector.load %arg1[%c0_6, %c0_7, %c0_8] : memref<2x16x256xf32, #tpu.memory_space<vmem>>, vector<2x16x256xf32>
    %8 = vector.shape_cast %7 : vector<2x16x256xf32> to vector<32x256xf32>
    %c0_9 = arith.constant 0 : index
    %c0_10 = arith.constant 0 : index
    %9 = vector.load %arg2[%c0_9, %c0_10] : memref<256x128xbf16, #tpu.memory_space<vmem>>, vector<256x128xbf16>
    %10 = arith.truncf %8 : vector<32x256xf32> to vector<32x256xbf16>
    %cst_11 = arith.constant dense<0.000000e+00> : vector<32x128xf32>
    %11 = tpu.matmul %10, %9, %cst_11 {dimension_numbers = #tpu.dot_dimension_numbers<[1], [0], [0], [1], [0, 0, 1, 1], [], []>} : vector<32x256xbf16>, vector<256x128xbf16>, vector<32x128xf32> -> vector<32x128xf32>
    %c0_12 = arith.constant 0 : index
    %c0_13 = arith.constant 0 : index
    %12 = vector.load %arg3[%c0_12, %c0_13] : memref<1x128xf32, #tpu.memory_space<vmem>>, vector<1x128xf32>
    %13 = vector.broadcast %12 : vector<1x128xf32> to vector<32x128xf32>
    %14 = arith.addf %11, %13 : vector<32x128xf32>
    %15 = vector.extract_strided_slice %14 {offsets = [0, 0], sizes = [16, 128], strides = [1, 1]} : vector<32x128xf32> to vector<16x128xf32>
    %16 = arith.truncf %15 : vector<16x128xf32> to vector<16x128xbf16>
    %c8 = arith.constant 8 : index
    %c0_14 = arith.constant 0 : index
    %17 = vector.load %arg13[%c8, %c0_14] : memref<64x128xbf16, #tpu.memory_space<vmem>>, vector<16x128xbf16>
    tpu.vector_store %arg13[%c8, %c0_14], %16 {strides = array<i32>} : memref<64x128xbf16, #tpu.memory_space<vmem>>, vector<16x128xbf16>,
    %18 = vector.extract_strided_slice %14 {offsets = [16, 0], sizes = [16, 128], strides = [1, 1]} : vector<32x128xf32> to vector<16x128xf32>
    %19 = arith.truncf %18 : vector<16x128xf32> to vector<16x128xbf16>
    %c32 = arith.constant 32 : index
    %c0_15 = arith.constant 0 : index
    %20 = vector.load %arg13[%c32, %c0_15] : memref<64x128xbf16, #tpu.memory_space<vmem>>, vector<16x128xbf16>
    tpu.vector_store %arg13[%c32, %c0_15], %19 {strides = array<i32>} : memref<64x128xbf16, #tpu.memory_space<vmem>>, vector<16x128xbf16>,
    %c5 = arith.constant 5 : index
    %c0_16 = arith.constant 0 : index
    %21 = vector.load %arg13[%c5, %c0_16] : memref<64x128xbf16, #tpu.memory_space<vmem>>, vector<48x128xbf16>
    %c0_17 = arith.constant 0 : index
    %c0_18 = arith.constant 0 : index
    %c0_19 = arith.constant 0 : index
    %22 = vector.load %arg4[%c0_17, %c0_18, %c0_19] : memref<7x128x128xbf16, #tpu.memory_space<vmem>>, vector<1x128x128xbf16>
    %23 = vector.shape_cast %22 : vector<1x128x128xbf16> to vector<128x128xbf16>
    %cst_20 = arith.constant dense<0.000000e+00> : vector<48x128xf32>
    %24 = tpu.matmul %21, %23, %cst_20 {dimension_numbers = #tpu.dot_dimension_numbers<[1], [0], [0], [1], [0, 0, 1, 1], [], []>} : vector<48x128xbf16>, vector<128x128xbf16>, vector<48x128xf32> -> vector<48x128xf32>
    %c6 = arith.constant 6 : index
    %c0_21 = arith.constant 0 : index
    %25 = vector.load %arg13[%c6, %c0_21] : memref<64x128xbf16, #tpu.memory_space<vmem>>, vector<48x128xbf16>
    %c1 = arith.constant 1 : index
    %c0_22 = arith.constant 0 : index
    %c0_23 = arith.constant 0 : index
    %26 = vector.load %arg4[%c1, %c0_22, %c0_23] : memref<7x128x128xbf16, #tpu.memory_space<vmem>>, vector<1x128x128xbf16>
    %27 = vector.shape_cast %26 : vector<1x128x128xbf16> to vector<128x128xbf16>
    %cst_24 = arith.constant dense<0.000000e+00> : vector<48x128xf32>
    %28 = tpu.matmul %25, %27, %cst_24 {dimension_numbers = #tpu.dot_dimension_numbers<[1], [0], [0], [1], [0, 0, 1, 1], [], []>} : vector<48x128xbf16>, vector<128x128xbf16>, vector<48x128xf32> -> vector<48x128xf32>
    %29 = arith.addf %24, %28 : vector<48x128xf32>
    %c7 = arith.constant 7 : index
    %c0_25 = arith.constant 0 : index
    %30 = vector.load %arg13[%c7, %c0_25] : memref<64x128xbf16, #tpu.memory_space<vmem>>, vector<48x128xbf16>
    %c2 = arith.constant 2 : index
    %c0_26 = arith.constant 0 : index
    %c0_27 = arith.constant 0 : index
    %31 = vector.load %arg4[%c2, %c0_26, %c0_27] : memref<7x128x128xbf16, #tpu.memory_space<vmem>>, vector<1x128x128xbf16>
    %32 = vector.shape_cast %31 : vector<1x128x128xbf16> to vector<128x128xbf16>
    %cst_28 = arith.constant dense<0.000000e+00> : vector<48x128xf32>
    %33 = tpu.matmul %30, %32, %cst_28 {dimension_numbers = #tpu.dot_dimension_numbers<[1], [0], [0], [1], [0, 0, 1, 1], [], []>} : vector<48x128xbf16>, vector<128x128xbf16>, vector<48x128xf32> -> vector<48x128xf32>
    %34 = arith.addf %29, %33 : vector<48x128xf32>
    %c8_29 = arith.constant 8 : index
    %c0_30 = arith.constant 0 : index
    %35 = vector.load %arg13[%c8_29, %c0_30] : memref<64x128xbf16, #tpu.memory_space<vmem>>, vector<48x128xbf16>
    %c3 = arith.constant 3 : index
    %c0_31 = arith.constant 0 : index
    %c0_32 = arith.constant 0 : index
    %36 = vector.load %arg4[%c3, %c0_31, %c0_32] : memref<7x128x128xbf16, #tpu.memory_space<vmem>>, vector<1x128x128xbf16>
    %37 = vector.shape_cast %36 : vector<1x128x128xbf16> to vector<128x128xbf16>
    %cst_33 = arith.constant dense<0.000000e+00> : vector<48x128xf32>
    %38 = tpu.matmul %35, %37, %cst_33 {dimension_numbers = #tpu.dot_dimension_numbers<[1], [0], [0], [1], [0, 0, 1, 1], [], []>} : vector<48x128xbf16>, vector<128x128xbf16>, vector<48x128xf32> -> vector<48x128xf32>
    %39 = arith.addf %34, %38 : vector<48x128xf32>
    %c9 = arith.constant 9 : index
    %c0_34 = arith.constant 0 : index
    %40 = vector.load %arg13[%c9, %c0_34] : memref<64x128xbf16, #tpu.memory_space<vmem>>, vector<48x128xbf16>
    %c4 = arith.constant 4 : index
    %c0_35 = arith.constant 0 : index
    %c0_36 = arith.constant 0 : index
    %41 = vector.load %arg4[%c4, %c0_35, %c0_36] : memref<7x128x128xbf16, #tpu.memory_space<vmem>>, vector<1x128x128xbf16>
    %42 = vector.shape_cast %41 : vector<1x128x128xbf16> to vector<128x128xbf16>
    %cst_37 = arith.constant dense<0.000000e+00> : vector<48x128xf32>
    %43 = tpu.matmul %40, %42, %cst_37 {dimension_numbers = #tpu.dot_dimension_numbers<[1], [0], [0], [1], [0, 0, 1, 1], [], []>} : vector<48x128xbf16>, vector<128x128xbf16>, vector<48x128xf32> -> vector<48x128xf32>
    %44 = arith.addf %39, %43 : vector<48x128xf32>
    %c10 = arith.constant 10 : index
    %c0_38 = arith.constant 0 : index
    %45 = vector.load %arg13[%c10, %c0_38] : memref<64x128xbf16, #tpu.memory_space<vmem>>, vector<48x128xbf16>
    %c5_39 = arith.constant 5 : index
    %c0_40 = arith.constant 0 : index
    %c0_41 = arith.constant 0 : index
    %46 = vector.load %arg4[%c5_39, %c0_40, %c0_41] : memref<7x128x128xbf16, #tpu.memory_space<vmem>>, vector<1x128x128xbf16>
    %47 = vector.shape_cast %46 : vector<1x128x128xbf16> to vector<128x128xbf16>
    %cst_42 = arith.constant dense<0.000000e+00> : vector<48x128xf32>
    %48 = tpu.matmul %45, %47, %cst_42 {dimension_numbers = #tpu.dot_dimension_numbers<[1], [0], [0], [1], [0, 0, 1, 1], [], []>} : vector<48x128xbf16>, vector<128x128xbf16>, vector<48x128xf32> -> vector<48x128xf32>
    %49 = arith.addf %44, %48 : vector<48x128xf32>
    %c11 = arith.constant 11 : index
    %c0_43 = arith.constant 0 : index
    %50 = vector.load %arg13[%c11, %c0_43] : memref<64x128xbf16, #tpu.memory_space<vmem>>, vector<48x128xbf16>
    %c6_44 = arith.constant 6 : index
    %c0_45 = arith.constant 0 : index
    %c0_46 = arith.constant 0 : index
    %51 = vector.load %arg4[%c6_44, %c0_45, %c0_46] : memref<7x128x128xbf16, #tpu.memory_space<vmem>>, vector<1x128x128xbf16>
    %52 = vector.shape_cast %51 : vector<1x128x128xbf16> to vector<128x128xbf16>
    %cst_47 = arith.constant dense<0.000000e+00> : vector<48x128xf32>
    %53 = tpu.matmul %50, %52, %cst_47 {dimension_numbers = #tpu.dot_dimension_numbers<[1], [0], [0], [1], [0, 0, 1, 1], [], []>} : vector<48x128xbf16>, vector<128x128xbf16>, vector<48x128xf32> -> vector<48x128xf32>
    %54 = arith.addf %49, %53 : vector<48x128xf32>
    %c0_48 = arith.constant 0 : index
    %c0_49 = arith.constant 0 : index
    %55 = vector.load %arg5[%c0_48, %c0_49] : memref<1x128xf32, #tpu.memory_space<vmem>>, vector<1x128xf32>
    %56 = vector.broadcast %55 : vector<1x128xf32> to vector<48x128xf32>
    %57 = arith.addf %54, %56 : vector<48x128xf32>
    %58 = vector.extract_strided_slice %57 {offsets = [0, 0], sizes = [16, 128], strides = [1, 1]} : vector<48x128xf32> to vector<16x128xf32>
    %59 = arith.truncf %58 : vector<16x128xf32> to vector<16x128xbf16>
    %c8_50 = arith.constant 8 : index
    %c0_51 = arith.constant 0 : index
    %60 = vector.load %arg13[%c8_50, %c0_51] : memref<64x128xbf16, #tpu.memory_space<vmem>>, vector<16x128xbf16>
    tpu.vector_store %arg13[%c8_50, %c0_51], %59 {strides = array<i32>} : memref<64x128xbf16, #tpu.memory_space<vmem>>, vector<16x128xbf16>,
    %61 = vector.extract_strided_slice %57 {offsets = [24, 0], sizes = [16, 128], strides = [1, 1]} : vector<48x128xf32> to vector<16x128xf32>
    %62 = arith.truncf %61 : vector<16x128xf32> to vector<16x128xbf16>
    %c32_52 = arith.constant 32 : index
    %c0_53 = arith.constant 0 : index
    %63 = vector.load %arg13[%c32_52, %c0_53] : memref<64x128xbf16, #tpu.memory_space<vmem>>, vector<16x128xbf16>
    tpu.vector_store %arg13[%c32_52, %c0_53], %62 {strides = array<i32>} : memref<64x128xbf16, #tpu.memory_space<vmem>>, vector<16x128xbf16>,
    %c6_54 = arith.constant 6 : index
    %c0_55 = arith.constant 0 : index
    %64 = vector.load %arg13[%c6_54, %c0_55] : memref<64x128xbf16, #tpu.memory_space<vmem>>, vector<48x128xbf16>
    %c0_56 = arith.constant 0 : index
    %c0_57 = arith.constant 0 : index
    %c0_58 = arith.constant 0 : index
    %65 = vector.load %arg6[%c0_56, %c0_57, %c0_58] : memref<5x128x128xbf16, #tpu.memory_space<vmem>>, vector<1x128x128xbf16>
    %66 = vector.shape_cast %65 : vector<1x128x128xbf16> to vector<128x128xbf16>
    %cst_59 = arith.constant dense<0.000000e+00> : vector<48x128xf32>
    %67 = tpu.matmul %64, %66, %cst_59 {dimension_numbers = #tpu.dot_dimension_numbers<[1], [0], [0], [1], [0, 0, 1, 1], [], []>} : vector<48x128xbf16>, vector<128x128xbf16>, vector<48x128xf32> -> vector<48x128xf32>
    %c7_60 = arith.constant 7 : index
    %c0_61 = arith.constant 0 : index
    %68 = vector.load %arg13[%c7_60, %c0_61] : memref<64x128xbf16, #tpu.memory_space<vmem>>, vector<48x128xbf16>
    %c1_62 = arith.constant 1 : index
    %c0_63 = arith.constant 0 : index
    %c0_64 = arith.constant 0 : index
    %69 = vector.load %arg6[%c1_62, %c0_63, %c0_64] : memref<5x128x128xbf16, #tpu.memory_space<vmem>>, vector<1x128x128xbf16>
    %70 = vector.shape_cast %69 : vector<1x128x128xbf16> to vector<128x128xbf16>
    %cst_65 = arith.constant dense<0.000000e+00> : vector<48x128xf32>
    %71 = tpu.matmul %68, %70, %cst_65 {dimension_numbers = #tpu.dot_dimension_numbers<[1], [0], [0], [1], [0, 0, 1, 1], [], []>} : vector<48x128xbf16>, vector<128x128xbf16>, vector<48x128xf32> -> vector<48x128xf32>
    %72 = arith.addf %67, %71 : vector<48x128xf32>
    %c8_66 = arith.constant 8 : index
    %c0_67 = arith.constant 0 : index
    %73 = vector.load %arg13[%c8_66, %c0_67] : memref<64x128xbf16, #tpu.memory_space<vmem>>, vector<48x128xbf16>
    %c2_68 = arith.constant 2 : index
    %c0_69 = arith.constant 0 : index
    %c0_70 = arith.constant 0 : index
    %74 = vector.load %arg6[%c2_68, %c0_69, %c0_70] : memref<5x128x128xbf16, #tpu.memory_space<vmem>>, vector<1x128x128xbf16>
    %75 = vector.shape_cast %74 : vector<1x128x128xbf16> to vector<128x128xbf16>
    %cst_71 = arith.constant dense<0.000000e+00> : vector<48x128xf32>
    %76 = tpu.matmul %73, %75, %cst_71 {dimension_numbers = #tpu.dot_dimension_numbers<[1], [0], [0], [1], [0, 0, 1, 1], [], []>} : vector<48x128xbf16>, vector<128x128xbf16>, vector<48x128xf32> -> vector<48x128xf32>
    %77 = arith.addf %72, %76 : vector<48x128xf32>
    %c9_72 = arith.constant 9 : index
    %c0_73 = arith.constant 0 : index
    %78 = vector.load %arg13[%c9_72, %c0_73] : memref<64x128xbf16, #tpu.memory_space<vmem>>, vector<48x128xbf16>
    %c3_74 = arith.constant 3 : index
    %c0_75 = arith.constant 0 : index
    %c0_76 = arith.constant 0 : index
    %79 = vector.load %arg6[%c3_74, %c0_75, %c0_76] : memref<5x128x128xbf16, #tpu.memory_space<vmem>>, vector<1x128x128xbf16>
    %80 = vector.shape_cast %79 : vector<1x128x128xbf16> to vector<128x128xbf16>
    %cst_77 = arith.constant dense<0.000000e+00> : vector<48x128xf32>
    %81 = tpu.matmul %78, %80, %cst_77 {dimension_numbers = #tpu.dot_dimension_numbers<[1], [0], [0], [1], [0, 0, 1, 1], [], []>} : vector<48x128xbf16>, vector<128x128xbf16>, vector<48x128xf32> -> vector<48x128xf32>
    %82 = arith.addf %77, %81 : vector<48x128xf32>
    %c10_78 = arith.constant 10 : index
    %c0_79 = arith.constant 0 : index
    %83 = vector.load %arg13[%c10_78, %c0_79] : memref<64x128xbf16, #tpu.memory_space<vmem>>, vector<48x128xbf16>
    %c4_80 = arith.constant 4 : index
    %c0_81 = arith.constant 0 : index
    %c0_82 = arith.constant 0 : index
    %84 = vector.load %arg6[%c4_80, %c0_81, %c0_82] : memref<5x128x128xbf16, #tpu.memory_space<vmem>>, vector<1x128x128xbf16>
    %85 = vector.shape_cast %84 : vector<1x128x128xbf16> to vector<128x128xbf16>
    %cst_83 = arith.constant dense<0.000000e+00> : vector<48x128xf32>
    %86 = tpu.matmul %83, %85, %cst_83 {dimension_numbers = #tpu.dot_dimension_numbers<[1], [0], [0], [1], [0, 0, 1, 1], [], []>} : vector<48x128xbf16>, vector<128x128xbf16>, vector<48x128xf32> -> vector<48x128xf32>
    %87 = arith.addf %82, %86 : vector<48x128xf32>
    %c0_84 = arith.constant 0 : index
    %c0_85 = arith.constant 0 : index
    %88 = vector.load %arg7[%c0_84, %c0_85] : memref<1x128xf32, #tpu.memory_space<vmem>>, vector<1x128xf32>
    %89 = vector.broadcast %88 : vector<1x128xf32> to vector<48x128xf32>
    %90 = arith.addf %87, %89 : vector<48x128xf32>
    %91 = vector.extract_strided_slice %90 {offsets = [0, 0], sizes = [16, 128], strides = [1, 1]} : vector<48x128xf32> to vector<16x128xf32>
    %92 = arith.truncf %91 : vector<16x128xf32> to vector<16x128xbf16>
    %c8_86 = arith.constant 8 : index
    %c0_87 = arith.constant 0 : index
    %93 = vector.load %arg13[%c8_86, %c0_87] : memref<64x128xbf16, #tpu.memory_space<vmem>>, vector<16x128xbf16>
    tpu.vector_store %arg13[%c8_86, %c0_87], %92 {strides = array<i32>} : memref<64x128xbf16, #tpu.memory_space<vmem>>, vector<16x128xbf16>,
    %94 = vector.extract_strided_slice %90 {offsets = [24, 0], sizes = [16, 128], strides = [1, 1]} : vector<48x128xf32> to vector<16x128xf32>
    %95 = arith.truncf %94 : vector<16x128xf32> to vector<16x128xbf16>
    %c32_88 = arith.constant 32 : index
    %c0_89 = arith.constant 0 : index
    %96 = vector.load %arg13[%c32_88, %c0_89] : memref<64x128xbf16, #tpu.memory_space<vmem>>, vector<16x128xbf16>
    tpu.vector_store %arg13[%c32_88, %c0_89], %95 {strides = array<i32>} : memref<64x128xbf16, #tpu.memory_space<vmem>>, vector<16x128xbf16>,
    %c7_90 = arith.constant 7 : index
    %c0_91 = arith.constant 0 : index
    %97 = vector.load %arg13[%c7_90, %c0_91] : memref<64x128xbf16, #tpu.memory_space<vmem>>, vector<48x128xbf16>
    %c0_92 = arith.constant 0 : index
    %c0_93 = arith.constant 0 : index
    %c0_94 = arith.constant 0 : index
    %98 = vector.load %arg8[%c0_92, %c0_93, %c0_94] : memref<3x128x128xbf16, #tpu.memory_space<vmem>>, vector<1x128x128xbf16>
    %99 = vector.shape_cast %98 : vector<1x128x128xbf16> to vector<128x128xbf16>
    %cst_95 = arith.constant dense<0.000000e+00> : vector<48x128xf32>
    %100 = tpu.matmul %97, %99, %cst_95 {dimension_numbers = #tpu.dot_dimension_numbers<[1], [0], [0], [1], [0, 0, 1, 1], [], []>} : vector<48x128xbf16>, vector<128x128xbf16>, vector<48x128xf32> -> vector<48x128xf32>
    %c8_96 = arith.constant 8 : index
    %c0_97 = arith.constant 0 : index
    %101 = vector.load %arg13[%c8_96, %c0_97] : memref<64x128xbf16, #tpu.memory_space<vmem>>, vector<48x128xbf16>
    %c1_98 = arith.constant 1 : index
    %c0_99 = arith.constant 0 : index
    %c0_100 = arith.constant 0 : index
    %102 = vector.load %arg8[%c1_98, %c0_99, %c0_100] : memref<3x128x128xbf16, #tpu.memory_space<vmem>>, vector<1x128x128xbf16>
    %103 = vector.shape_cast %102 : vector<1x128x128xbf16> to vector<128x128xbf16>
    %cst_101 = arith.constant dense<0.000000e+00> : vector<48x128xf32>
    %104 = tpu.matmul %101, %103, %cst_101 {dimension_numbers = #tpu.dot_dimension_numbers<[1], [0], [0], [1], [0, 0, 1, 1], [], []>} : vector<48x128xbf16>, vector<128x128xbf16>, vector<48x128xf32> -> vector<48x128xf32>
    %105 = arith.addf %100, %104 : vector<48x128xf32>
    %c9_102 = arith.constant 9 : index
    %c0_103 = arith.constant 0 : index
    %106 = vector.load %arg13[%c9_102, %c0_103] : memref<64x128xbf16, #tpu.memory_space<vmem>>, vector<48x128xbf16>
    %c2_104 = arith.constant 2 : index
    %c0_105 = arith.constant 0 : index
    %c0_106 = arith.constant 0 : index
    %107 = vector.load %arg8[%c2_104, %c0_105, %c0_106] : memref<3x128x128xbf16, #tpu.memory_space<vmem>>, vector<1x128x128xbf16>
    %108 = vector.shape_cast %107 : vector<1x128x128xbf16> to vector<128x128xbf16>
    %cst_107 = arith.constant dense<0.000000e+00> : vector<48x128xf32>
    %109 = tpu.matmul %106, %108, %cst_107 {dimension_numbers = #tpu.dot_dimension_numbers<[1], [0], [0], [1], [0, 0, 1, 1], [], []>} : vector<48x128xbf16>, vector<128x128xbf16>, vector<48x128xf32> -> vector<48x128xf32>
    %110 = arith.addf %105, %109 : vector<48x128xf32>
    %c0_108 = arith.constant 0 : index
    %c0_109 = arith.constant 0 : index
    %111 = vector.load %arg9[%c0_108, %c0_109] : memref<1x128xf32, #tpu.memory_space<vmem>>, vector<1x128xf32>
    %112 = vector.broadcast %111 : vector<1x128xf32> to vector<48x128xf32>
    %113 = arith.addf %110, %112 : vector<48x128xf32>
    %c0_110 = arith.constant 0 : index
    %c0_111 = arith.constant 0 : index
    %114 = vector.load %arg10[%c0_110, %c0_111] : memref<128x256xbf16, #tpu.memory_space<vmem>>, vector<128x256xbf16>
    %115 = arith.truncf %113 : vector<48x128xf32> to vector<48x128xbf16>
    %cst_112 = arith.constant dense<0.000000e+00> : vector<48x256xf32>
    %116 = tpu.matmul %115, %114, %cst_112 {dimension_numbers = #tpu.dot_dimension_numbers<[1], [0], [0], [1], [0, 0, 1, 1], [], []>} : vector<48x128xbf16>, vector<128x256xbf16>, vector<48x256xf32> -> vector<48x256xf32>
    %c0_113 = arith.constant 0 : index
    %c0_114 = arith.constant 0 : index
    %117 = vector.load %arg11[%c0_113, %c0_114] : memref<1x256xf32, #tpu.memory_space<vmem>>, vector<1x256xf32>
    %118 = vector.broadcast %117 : vector<1x256xf32> to vector<48x256xf32>
    %119 = arith.addf %116, %118 : vector<48x256xf32>
    %c0_115 = arith.constant 0 : index
    %c0_116 = arith.constant 0 : index
    %c0_117 = arith.constant 0 : index
    %120 = vector.load %arg1[%c0_115, %c0_116, %c0_117] : memref<2x16x256xf32, #tpu.memory_space<vmem>>, vector<1x16x256xf32>
    %121 = vector.shape_cast %120 : vector<1x16x256xf32> to vector<16x256xf32>
    %122 = vector.extract_strided_slice %119 {offsets = [0, 0], sizes = [16, 256], strides = [1, 1]} : vector<48x256xf32> to vector<16x256xf32>
    %cst_118 = arith.constant 0.000000e+00 : f32
    %123 = vector.broadcast %cst_118 : f32 to vector<16x256xf32>
    %124 = arith.maximumf %122, %123 : vector<16x256xf32>
    %125 = arith.addf %121, %124 : vector<16x256xf32>
    %c0_119 = arith.constant 0 : index
    %c0_120 = arith.constant 0 : index
    %c0_121 = arith.constant 0 : index
    %126 = vector.load %arg12[%c0_119, %c0_120, %c0_121] : memref<2x16x256xf32, #tpu.memory_space<vmem>>, vector<1x16x256xf32>
    %127 = vector.shape_cast %126 : vector<1x16x256xf32> to vector<16x256xf32>
    %128 = vector.shape_cast %125 : vector<16x256xf32> to vector<1x16x256xf32>
    tpu.vector_store %arg12[%c0_119, %c0_120, %c0_121], %128 {strides = array<i32>} : memref<2x16x256xf32, #tpu.memory_space<vmem>>, vector<1x16x256xf32>,
    %c1_122 = arith.constant 1 : index
    %c0_123 = arith.constant 0 : index
    %c0_124 = arith.constant 0 : index
    %129 = vector.load %arg1[%c1_122, %c0_123, %c0_124] : memref<2x16x256xf32, #tpu.memory_space<vmem>>, vector<1x16x256xf32>
    %130 = vector.shape_cast %129 : vector<1x16x256xf32> to vector<16x256xf32>
    %131 = vector.extract_strided_slice %119 {offsets = [24, 0], sizes = [16, 256], strides = [1, 1]} : vector<48x256xf32> to vector<16x256xf32>
    %cst_125 = arith.constant 0.000000e+00 : f32
    %132 = vector.broadcast %cst_125 : f32 to vector<16x256xf32>
    %133 = arith.maximumf %131, %132 : vector<16x256xf32>
    %134 = arith.addf %130, %133 : vector<16x256xf32>
    %c1_126 = arith.constant 1 : index
    %c0_127 = arith.constant 0 : index
    %c0_128 = arith.constant 0 : index
    %135 = vector.load %arg12[%c1_126, %c0_127, %c0_128] : memref<2x16x256xf32, #tpu.memory_space<vmem>>, vector<1x16x256xf32>
    %136 = vector.shape_cast %135 : vector<1x16x256xf32> to vector<16x256xf32>
    %137 = vector.shape_cast %134 : vector<16x256xf32> to vector<1x16x256xf32>
    tpu.vector_store %arg12[%c1_126, %c0_127, %c0_128], %137 {strides = array<i32>} : memref<2x16x256xf32, #tpu.memory_space<vmem>>, vector<1x16x256xf32>,
    return
  }
  func.func @transform_0(%arg0: i32) -> (i32, i32, i32) {
    %c0_i32 = arith.constant 0 : i32
    %c0_i32_0 = arith.constant 0 : i32
    %c0_i32_1 = arith.constant 0 : i32
    return %arg0, %c0_i32, %c0_i32_0 : i32, i32, i32
  }
  func.func @transform_1(%arg0: i32) -> (i32, i32) {
    %c0_i32 = arith.constant 0 : i32
    %c0_i32_0 = arith.constant 0 : i32
    %c0_i32_1 = arith.constant 0 : i32
    return %c0_i32, %c0_i32_0 : i32, i32
  }
  func.func @transform_2(%arg0: i32) -> (i32, i32) {
    %c0_i32 = arith.constant 0 : i32
    %c0_i32_0 = arith.constant 0 : i32
    %c0_i32_1 = arith.constant 0 : i32
    return %c0_i32, %c0_i32_0 : i32, i32
  }
  func.func @transform_3(%arg0: i32) -> (i32, i32, i32) {
    %c0_i32 = arith.constant 0 : i32
    %c0_i32_0 = arith.constant 0 : i32
    %c0_i32_1 = arith.constant 0 : i32
    %c0_i32_2 = arith.constant 0 : i32
    return %c0_i32, %c0_i32_0, %c0_i32_1 : i32, i32, i32
  }
  func.func @transform_4(%arg0: i32) -> (i32, i32) {
    %c0_i32 = arith.constant 0 : i32
    %c0_i32_0 = arith.constant 0 : i32
    %c0_i32_1 = arith.constant 0 : i32
    return %c0_i32, %c0_i32_0 : i32, i32
  }
  func.func @transform_5(%arg0: i32) -> (i32, i32, i32) {
    %c0_i32 = arith.constant 0 : i32
    %c0_i32_0 = arith.constant 0 : i32
    %c0_i32_1 = arith.constant 0 : i32
    %c0_i32_2 = arith.constant 0 : i32
    return %c0_i32, %c0_i32_0, %c0_i32_1 : i32, i32, i32
  }
  func.func @transform_6(%arg0: i32) -> (i32, i32) {
    %c0_i32 = arith.constant 0 : i32
    %c0_i32_0 = arith.constant 0 : i32
    %c0_i32_1 = arith.constant 0 : i32
    return %c0_i32, %c0_i32_0 : i32, i32
  }
  func.func @transform_7(%arg0: i32) -> (i32, i32, i32) {
    %c0_i32 = arith.constant 0 : i32
    %c0_i32_0 = arith.constant 0 : i32
    %c0_i32_1 = arith.constant 0 : i32
    %c0_i32_2 = arith.constant 0 : i32
    return %c0_i32, %c0_i32_0, %c0_i32_1 : i32, i32, i32
  }
  func.func @transform_8(%arg0: i32) -> (i32, i32) {
    %c0_i32 = arith.constant 0 : i32
    %c0_i32_0 = arith.constant 0 : i32
    %c0_i32_1 = arith.constant 0 : i32
    return %c0_i32, %c0_i32_0 : i32, i32
  }
  func.func @transform_9(%arg0: i32) -> (i32, i32) {
    %c0_i32 = arith.constant 0 : i32
    %c0_i32_0 = arith.constant 0 : i32
    %c0_i32_1 = arith.constant 0 : i32
    return %c0_i32, %c0_i32_0 : i32, i32
  }
  func.func @transform_10(%arg0: i32) -> (i32, i32) {
    %c0_i32 = arith.constant 0 : i32
    %c0_i32_0 = arith.constant 0 : i32
    %c0_i32_1 = arith.constant 0 : i32
    return %c0_i32, %c0_i32_0 : i32, i32
  }
  func.func @transform_11(%arg0: i32) -> (i32, i32, i32) {
    %c0_i32 = arith.constant 0 : i32
    %c0_i32_0 = arith.constant 0 : i32
    %c0_i32_1 = arith.constant 0 : i32
    return %arg0, %c0_i32, %c0_i32_0 : i32, i32, i32
  }
}

</mosaic_0001>

<bundles_post_ra>
// kernel: tpu_custom_call.1
= control target key start
LH: loop header
LB: loop body
LE: loop exit
PB: predicated region body
PF: predicated region fallthrough
CT: control target
= control target key end

     0   :  { %16 = vsyncpa [#allocation4], 0  ;;  %s3790_s0 = inlined_call_operand.hbm [shape: f32[2,16,256], index: 0, kind: input, shape index: {}]   ;;  %s3791_s1 = inlined_call_operand.hbm [shape: bf16[256,128], index: 1, kind: input, shape index: {}]   ;;  %s3792_s2 = inlined_call_operand.vmem [shape: f32[1,128], index: 2, kind: input, shape index: {}]   ;;  %s3793_s3 = inlined_call_operand.hbm [shape: bf16[7,128,128], index: 3, kind: input, shape index: {}]   ;;  %s3794_s4 = inlined_call_operand.hbm [shape: f32[1,128], index: 4, kind: input, shape index: {}]   ;;  %s3795_s5 = inlined_call_operand.hbm [shape: bf16[5,128,128], index: 5, kind: input, shape index: {}]   ;;  %s3796_s6 = inlined_call_operand.vmem [shape: f32[1,128], index: 6, kind: input, shape index: {}]   ;;  %s3797_s7 = inlined_call_operand.hbm [shape: bf16[3,128,128], index: 7, kind: input, shape index: {}]   ;;  %s3798_s8 = inlined_call_operand.vmem [shape: f32[1,128], index: 8, kind: input, shape index: {}]   ;;  %s3799_s9 = inlined_call_operand.hbm [shape: bf16[128,256], index: 9, kind: input, shape index: {}]   ;;  %s3800_s10 = inlined_call_operand.vmem [shape: f32[1,256], index: 10, kind: input, shape index: {}]   ;;  %s3801_s11 = inlined_call_operand.hbm [shape: f32[2,16,256], index: 11, kind: output, shape index: {}]  }
   0x1   :  { %17 = vsyncpa [#allocation7], 0 }
   0x2   :  { %18 = vsyncpa [#allocation10], 0 }
   0x3   :  { %19 = vsyncpa [#allocation13], 0  ;;  %s38_s19 = sshll.u32 %s3791_s1, 4  ;;  %s39_s19 = int_to_ptr.hbm [resolvable:$true] %s38_s19 }
   0x4   :  { %20 = vsyncpa [#allocation5], 0  ;;  %s3528_s20 = smov [#allocation6]   ;;  %s67_s24 = sshll.u32 %s3794_s4, 4  ;;  %s68_s24 = int_to_ptr.hbm [resolvable:$true] %s67_s24 }
   0x5   :  { %s40_s21 = sshll.u32 %s3528_s20, 4  ;;  %s3529_s25 = smov 64   ;;  %s41_s21 = int_to_ptr.vmem [resolvable:$true] %s40_s21 }
   0x6   :  { %s3530_s26 = smov 4   ;;  %s3531_s27 = smov [#allocation9]  }
   0x7   :  { %46 = dma.hbm_to_vmem [thread:$0]  %s39_s19, 2048, %s41_s21, [#allocation7], %s3529_s25, %s3529_s25, %s3530_s26  }
   0x8   :  { %s69_s28 = sshll.u32 %s3531_s27, 4  ;;  %s92_s30 = sshll.u32 %s3797_s7, 4  ;;  %s70_s28 = int_to_ptr.vmem [resolvable:$true] %s69_s28  ;;  %s93_s30 = int_to_ptr.hbm [resolvable:$true] %s92_s30 }
   0x9   :  { %72 = dma.hbm_to_vmem [thread:$0]  %s68_s24, 16, %s70_s28, [#allocation10]  }
   0xa   :  { %s25_s4 = sshll.u32 %s3790_s0, 4  ;;  %s3532_s14 = smov [#allocation12]   ;;  %s26_s4 = int_to_ptr.hbm [resolvable:$true] %s25_s4 }
   0xb   :  { %s94_s15 = sshll.u32 %s3532_s14, 4  ;;  %s3533_s16 = smov [#allocation3]   ;;  %s95_s15 = int_to_ptr.vmem [resolvable:$true] %s94_s15 }
   0xc   :  { %100 = dma.hbm_to_vmem [thread:$0]  %s93_s30, 3072, %s95_s15, [#allocation13], %s3529_s25, %s3529_s25, %s3530_s26  }
   0xd   :  { %s27_s17 = sshll.u32 %s3533_s16, 4  ;;  %s3534_s18 = smov 256   ;;  %s28_s17 = int_to_ptr.vmem [resolvable:$true] %s27_s17 }
   0xe   :  { %s3535_s7 = smov 16   ;;  %s53_s0 = sshll.u32 %s3793_s3, 4  ;;  %s54_s0 = int_to_ptr.hbm [resolvable:$true] %s53_s0 }
   0xf   :  { %33 = dma.hbm_to_vmem [thread:$0]  %s26_s4, 1024, %s28_s17, [#allocation4], %s3534_s18, %s3534_s18, %s3535_s7  }
  0x10   :  { %s3536_s21 = smov [#allocation8]   ;;  %s77_s27 = sshll.u32 %s3795_s5, 4  ;;  %s78_s27 = int_to_ptr.hbm [resolvable:$true] %s77_s27 }
  0x11   :  { %s55_s22 = sshll.u32 %s3536_s21, 4  ;;  %s3537_s28 = smov [#allocation11]   ;;  %s56_s22 = int_to_ptr.vmem [resolvable:$true] %s55_s22 }
  0x12   :  { %61 = dma.hbm_to_vmem [thread:$0]  %s54_s0, 7168, %s56_s22, [#allocation7], %s3529_s25, %s3529_s25, %s3530_s26  }
  0x13   :  { %s79_s29 = sshll.u32 %s3537_s28, 4  ;;  %s107_s12 = sshll.u32 %s3799_s9, 4  ;;  %s80_s29 = int_to_ptr.vmem [resolvable:$true] %s79_s29  ;;  %s108_s12 = int_to_ptr.hbm [resolvable:$true] %s107_s12 }
  0x14   :  { %85 = dma.hbm_to_vmem [thread:$0]  %s78_s27, 5120, %s80_s29, [#allocation10], %s3529_s25, %s3529_s25, %s3530_s26  }
  0x15   :  { %s3538_s3 = smov [#allocation14]   ;;  %s3539_s5 = smov 128  }
  0x16   :  { %s109_s13 = sshll.u32 %s3538_s3, 4  ;;  %s3540_s4 = smov 8   ;;  %s110_s13 = int_to_ptr.vmem [resolvable:$true] %s109_s13 }
  0x17   :  { %115 = dma.hbm_to_vmem [thread:$0]  %s108_s12, 2048, %s110_s13, [#allocation13], %s3539_s5, %s3539_s5, %s3540_s4  }
  0x18   :  { %3518 = dma.done.wait [#allocation4], 1024  }
  0x19   :  { %3519 = vsyncadd [#allocation4], 4294966272 }
  0x1a   :  { %3520 = dma.done.wait [#allocation7], 9216  }
  0x1b   :  { %3521 = vsyncadd [#allocation7], 4294958080 }
  0x1c   :  { %3522 = dma.done.wait [#allocation10], 5136  }
  0x1d   :  { %3523 = vsyncadd [#allocation10], 4294962160 }
  0x1e   :  { %3524 = dma.done.wait [#allocation13], 5120  }
  0x1f   :  { %3525 = vsyncadd [#allocation13], 4294962176  ;;  %v3078_v0 = vld [vmem:[#allocation6 + $0x38] sm:$0xff]  ;;  %v3077_v2 = vld [vmem:[#allocation6 + $0x30] sm:$0xff]  ;;  %v3541_v46 = vmov 0   ;;  %vm400_vm0 = vcmask 1044480  }
  0x20   :  { %v3086_v1 = vld [vmem:[#allocation6 + $0x78] sm:$0xff]  ;;  %295 = vmatpush.bf16.msra.mxu0 %v3078_v0  ;;  %v3085_v3 = vld [vmem:[#allocation6 + $0x70] sm:$0xff]  ;;  %v3076_v4 = vld [vmem:[#allocation6 + $0x28] sm:$0xff]  ;;  %147 = vst [vmem:[#allocation2] sm:$0xf] %v3541_v46  ;;  %vm983_vm5 = vcmask 1046528  }
  0x21   :  { %314 = vmatpush.bf16.msra.mxu1 %v3086_v1  ;;  %v3084_v5 = vld [vmem:[#allocation6 + $0x68] sm:$0xff]  ;;  %v3075_v6 = vld [vmem:[#allocation6 + $0x20] sm:$0xff]  ;;  %v3074_v8 = vld [vmem:[#allocation6 + $0x18] sm:$0xff]  ;;  %149 = vst [vmem:[#allocation2 + $0xc] sm:$0xf] %v3541_v46  ;;  %s2419_s20 = sshll.u32 %s3801_s11, 4  ;;  %s2420_s20 = int_to_ptr.hbm [resolvable:$true] %s2419_s20 }
  0x22   :  { %v3083_v7 = vld [vmem:[#allocation6 + $0x60] sm:$0xff]  ;;  %v3082_v9 = vld [vmem:[#allocation6 + $0x58] sm:$0xff]  ;;  %v3073_v11 = vld [vmem:[#allocation6 + $0x10] sm:$0xff]  ;;  %148 = vst [vmem:[#allocation2 + $0x1c] sm:$0xf] %v3541_v46 }
  0x23   :  { %v3102_v10 = vld [vmem:[#allocation8 + $0x78] sm:$0xff]  ;;  %v3081_v12 = vld [vmem:[#allocation6 + $0x50] sm:$0xff]  ;;  %v3072_v14 = vld [vmem:[#allocation6 + $0x8] sm:$0xff]  ;;  %150 = vst [vmem:[#allocation2 + $0x18] sm:$0xf] %v3541_v46 }
  0x24   :  { %296 = vmatpush.bf16.msra.mxu0 %v3077_v2  ;;  %459 = vmatpush.bf16.msra.mxu2 %v3102_v10  ;;  %v3101_v13 = vld [vmem:[#allocation8 + $0x70] sm:$0xff]  ;;  %v3080_v15 = vld [vmem:[#allocation6 + $0x48] sm:$0xff]  ;;  %v3071_v16 = vld [vmem:[#allocation6] sm:$0xff]  ;;  %vm614_vm1 = vsmask.f32 4352 }
  0x25   :  { %315 = vmatpush.bf16.msra.mxu1 %v3085_v3  ;;  %3297 = vmatpush.bf16.msra.mxu3 %v3102_v10  ;;  %v3079_v17 = vld [vmem:[#allocation6 + $0x40] sm:$0xff]  ;;  %v153_v19 = vld [vmem:[#allocation3 + $0x10] sm:$0xff]  ;;  %v152_v20 = vld [vmem:[#allocation3 + $0x8] sm:$0xff]  ;;  %vm484_vm2 = vsmask.f32 5376 }
  0x26   :  { %v151_v18 = vld [vmem:[#allocation3] sm:$0xff]  ;;  %v154_v21 = vld [vmem:[#allocation3 + $0x18] sm:$0xff]  ;;  %v157_v27 = vld [vmem:[#allocation3 + $0x30] sm:$0xff]  ;;  %vm856_vm3 = vsmask.f32 7424 }
  0x27   :  { %v3118_v22 = vld [vmem:[#allocation8 + $0xf8] sm:$0xff]  ;;  %v191_v24 = vpack.c.bf16 %v153_v19, %v151_v18  ;;  %v192_v25 = vpack.c.bf16 %v154_v21, %v152_v20  ;;  %v155_v26 = vld [vmem:[#allocation3 + $0x20] sm:$0xff]  ;;  %v156_v28 = vld [vmem:[#allocation3 + $0x28] sm:$0xff]  ;;  %vm1089_vm4 = vsmask.f32 6400 }
  0x28   :  { %297 = vmatpush.bf16.msra.mxu0 %v3076_v4  ;;  %460 = vmatpush.bf16.msra.mxu2 %v3101_v13  ;;  %v3110_v23 = vld [vmem:[#allocation8 + $0xb8] sm:$0xff]  ;;  %v193_v30 = vpack.c.bf16 %v157_v27, %v155_v26  ;;  %v3100_v32 = vld [vmem:[#allocation8 + $0x68] sm:$0xff]  ;;  %v3117_v33 = vld [vmem:[#allocation8 + $0xf0] sm:$0xff] }
  0x29   :  { %316 = vmatpush.bf16.msra.mxu1 %v3084_v5  ;;  %3298 = vmatpush.bf16.msra.mxu3 %v3101_v13  ;;  %v158_v29 = vld [vmem:[#allocation3 + $0x38] sm:$0xff]  ;;  %v3099_v34 = vld [vmem:[#allocation8 + $0x60] sm:$0xff]  ;;  %v3116_v35 = vld [vmem:[#allocation8 + $0xe8] sm:$0xff] }
  0x2a   :  { %v194_v31 = vpack.c.bf16 %v158_v29, %v156_v28  ;;  %v3098_v36 = vld [vmem:[#allocation8 + $0x58] sm:$0xff]  ;;  %v3109_v37 = vld [vmem:[#allocation8 + $0xb0] sm:$0xff]  ;;  %v3115_v38 = vld [vmem:[#allocation8 + $0xe0] sm:$0xff] }
  0x2b   :  { %v3108_v39 = vld [vmem:[#allocation8 + $0xa8] sm:$0xff]  ;;  %v3097_v40 = vld [vmem:[#allocation8 + $0x50] sm:$0xff]  ;;  %v3114_v41 = vld [vmem:[#allocation8 + $0xd8] sm:$0xff] }
  0x2c   :  { %298 = vmatpush.bf16.msra.mxu0 %v3075_v6  ;;  %461 = vmatpush.bf16.msra.mxu2 %v3100_v32  ;;  %v3096_v42 = vld [vmem:[#allocation8 + $0x48] sm:$0xff]  ;;  %v3107_v43 = vld [vmem:[#allocation8 + $0xa0] sm:$0xff]  ;;  %v3113_v44 = vld [vmem:[#allocation8 + $0xd0] sm:$0xff] }
  0x2d   :  { %317 = vmatpush.bf16.msra.mxu1 %v3083_v7  ;;  %3299 = vmatpush.bf16.msra.mxu3 %v3100_v32  ;;  %v3106_v45 = vld [vmem:[#allocation8 + $0x98] sm:$0xff]  ;;  %v3095_v47 = vld [vmem:[#allocation8 + $0x40] sm:$0xff]  ;;  %v3112_v49 = vld [vmem:[#allocation8 + $0xc8] sm:$0xff] }
  0x2e   :  { %v3094_v48 = vld [vmem:[#allocation8 + $0x38] sm:$0xff]  ;;  %v3105_v50 = vld [vmem:[#allocation8 + $0x90] sm:$0xff]  ;;  %v3111_v51 = vld [vmem:[#allocation8 + $0xc0] sm:$0xff] }
  0x2f   :  { %v3093_v52 = vld [vmem:[#allocation8 + $0x30] sm:$0xff]  ;;  %v3104_v53 = vld [vmem:[#allocation8 + $0x88] sm:$0xff]  ;;  %v3322_v55 = vld [vmem:[%s3792_s2] ss:$0 sm:$0xff] }
  0x30   :  { %299 = vmatpush.bf16.msra.mxu0 %v3074_v8  ;;  %462 = vmatpush.bf16.msra.mxu2 %v3099_v34  ;;  %v3092_v54 = vld [vmem:[#allocation8 + $0x28] sm:$0xff]  ;;  %v3103_v56 = vld [vmem:[#allocation8 + $0x80] sm:$0xff]  ;;  %v3128_v57 = vld [vmem:[#allocation8 + $0x138] sm:$0xff] }
  0x31   :  { %318 = vmatpush.bf16.msra.mxu1 %v3082_v9  ;;  %3300 = vmatpush.bf16.msra.mxu3 %v3099_v34  ;;  %v3091_v58 = vld [vmem:[#allocation8 + $0x20] sm:$0xff]  ;;  %v3127_v62 = vld [vmem:[#allocation8 + $0x130] sm:$0xff]  ;;  %v3090_v0 = vld [vmem:[#allocation8 + $0x18] sm:$0xff] }
  0x32   :  { %v3126_v1 = vld [vmem:[#allocation8 + $0x128] sm:$0xff]  ;;  %v3089_v3 = vld [vmem:[#allocation8 + $0x10] sm:$0xff]  ;;  %v3125_v6 = vld [vmem:[#allocation8 + $0x120] sm:$0xff] }
  0x33   :  { %v3088_v8 = vld [vmem:[#allocation8 + $0x8] sm:$0xff]  ;;  %v3144_v18 = vld [vmem:[#allocation8 + $0x1b8] sm:$0xff]  ;;  %v3143_v21 = vld [vmem:[#allocation8 + $0x1b0] sm:$0xff] }
  0x34   :  { %300 = vmatpush.bf16.msra.mxu0 %v3073_v11  ;;  %463 = vmatpush.bf16.msra.mxu2 %v3098_v36  ;;  %v3124_v11 = vld [vmem:[#allocation8 + $0x118] sm:$0xff]  ;;  %v3122_v20 = vld [vmem:[#allocation8 + $0x108] sm:$0xff]  ;;  %v3121_v32 = vld [vmem:[#allocation8 + $0x100] sm:$0xff] }
  0x35   :  { %319 = vmatpush.bf16.msra.mxu1 %v3081_v12  ;;  %3301 = vmatpush.bf16.msra.mxu3 %v3098_v36  ;;  %v3087_v12 = vld [vmem:[#allocation8] sm:$0xff] }
  0x38   :  { %301 = vmatpush.bf16.msra.mxu0 %v3072_v14  ;;  %464 = vmatpush.bf16.msra.mxu2 %v3097_v40 }
  0x39   :  { %320 = vmatpush.bf16.msra.mxu1 %v3080_v15  ;;  %3302 = vmatpush.bf16.msra.mxu3 %v3097_v40  ;;  %v347_v15 = vld [vmem:[#allocation2 + $0x18] sm:$0x7] }
  0x3a   :  { %v395_v19 = vunpack.c.l.b16 %v347_v15 }
  0x3c   :  { %302 = vmatpush.bf16.msra.mxu0 %v3071_v16  ;;  %465 = vmatpush.bf16.msra.mxu2 %v3096_v42  ;;  %v364_v16 = vld [vmem:[#allocation2] sm:$0x8] }
  0x3d   :  { %321 = vmatpush.bf16.msra.mxu1 %v3079_v17  ;;  %3303 = vmatpush.bf16.msra.mxu3 %v3096_v42  ;;  %v3123_v17 = vld [vmem:[#allocation8 + $0x110] sm:$0xff] }
  0x3f   :  { %303 = vmatmul.bf16.vlgmr.msra.gmra.mxu0 %v191_v24 }
  0x40   :  { %691 = vmatpush.bf16.msrb.mxu0 %v3110_v23  ;;  %322 = vmatmul.bf16.vlgmr.msra.gmra.mxu1 %v192_v25 }
  0x41   :  { %788 = vmatpush.bf16.msrb.mxu1 %v3118_v22  ;;  %466 = vmatpush.bf16.msra.mxu2 %v3095_v47  ;;  %v389_v22 = vunpack.c.l.b16 %v364_v16 }
  0x42   :  { %3304 = vmatpush.bf16.msra.mxu3 %v3095_v47 }
  0x44   :  { %692 = vmatpush.bf16.msrb.mxu0 %v3109_v37  ;;  %v341_v37 = vld [vmem:[#allocation2] sm:$0xc] }
  0x45   :  { %789 = vmatpush.bf16.msrb.mxu1 %v3117_v33  ;;  %936 = vmatpush.bf16.msrb.mxu2 %v3128_v57  ;;  %v3142_v33 = vld [vmem:[#allocation8 + $0x1a8] sm:$0xff]  ;;  %v3136_v57 = vld [vmem:[#allocation8 + $0x178] sm:$0xff] }
  0x46   :  { %571 = vmatpush.bf16.msrb.mxu3 %v3094_v48  ;;  %v482_v48 = vunpack.c.l.b16 %v341_v37 }
  0x48   :  { %693 = vmatpush.bf16.msrb.mxu0 %v3108_v39 }
  0x49   :  { %790 = vmatpush.bf16.msrb.mxu1 %v3116_v35  ;;  %937 = vmatpush.bf16.msrb.mxu2 %v3127_v62  ;;  %v3135_v62 = vld [vmem:[#allocation8 + $0x170] sm:$0xff] }
  0x4a   :  { %572 = vmatpush.bf16.msrb.mxu3 %v3093_v52 }
  0x4c   :  { %694 = vmatpush.bf16.msrb.mxu0 %v3107_v43 }
  0x4d   :  { %791 = vmatpush.bf16.msrb.mxu1 %v3115_v38  ;;  %938 = vmatpush.bf16.msrb.mxu2 %v3126_v1 }
  0x4e   :  { %573 = vmatpush.bf16.msrb.mxu3 %v3092_v54 }
  0x4f   :  { %308 = vmatmul.bf16.gmra.mxu0 %v193_v30 }
  0x50   :  { %327 = vmatmul.bf16.gmra.mxu1 %v194_v31  ;;  %695 = vmatpush.bf16.msrb.mxu0 %v3106_v45  ;;  %v3650_v31 = vpack.c.b16 %v395_v19, %v395_v19 }
  0x51   :  { %792 = vmatpush.bf16.msrb.mxu1 %v3114_v41  ;;  %939 = vmatpush.bf16.msrb.mxu2 %v3125_v6  ;;  %v3138_v6 = vld [vmem:[#allocation8 + $0x188] sm:$0xff] }
  0x52   :  { %574 = vmatpush.bf16.msrb.mxu3 %v3091_v58  ;;  %v406_v47 = vrot.slane %v3650_v31, 3 }
  0x54   :  { %696 = vmatpush.bf16.msrb.mxu0 %v3105_v50 }
  0x55   :  { %793 = vmatpush.bf16.msrb.mxu1 %v3113_v44  ;;  %940 = vmatpush.bf16.msrb.mxu2 %v3124_v11 }
  0x56   :  { %575 = vmatpush.bf16.msrb.mxu3 %v3090_v0 }
  0x58   :  { %697 = vmatpush.bf16.msrb.mxu0 %v3104_v53  ;;  %v3141_v53 = vld [vmem:[#allocation8 + $0x1a0] sm:$0xff] }
  0x59   :  { %794 = vmatpush.bf16.msrb.mxu1 %v3112_v49  ;;  %941 = vmatpush.bf16.msrb.mxu2 %v3123_v17 }
  0x5a   :  { %576 = vmatpush.bf16.msrb.mxu3 %v3089_v3 }
  0x5c   :  { %698 = vmatpush.bf16.msrb.mxu0 %v3103_v56 }
  0x5d   :  { %795 = vmatpush.bf16.msrb.mxu1 %v3111_v51  ;;  %942 = vmatpush.bf16.msrb.mxu2 %v3122_v20 }
  0x5e   :  { %577 = vmatpush.bf16.msrb.mxu3 %v3088_v8 }
  0x60   :  { %1166 = vmatpush.bf16.msra.mxu0 %v3144_v18 }
  0x61   :  { %943 = vmatpush.bf16.msrb.mxu2 %v3121_v32 }
  0x62   :  { %578 = vmatpush.bf16.msrb.mxu3 %v3087_v12 }
  0x64   :  { %1167 = vmatpush.bf16.msra.mxu0 %v3143_v21  ;;  %v3137_v21 = vld [vmem:[#allocation8 + $0x180] sm:$0xff] }
  0x68   :  { %1168 = vmatpush.bf16.msra.mxu0 %v3142_v33 }
  0x6c   :  { %1169 = vmatpush.bf16.msra.mxu0 %v3141_v53 }
  0xbc   :  { %v304_v59 = vpop.f32.mrf.mxu0 }
  0xbd   :  { %v323_v60 = vpop.f32.mrf.mxu1  ;;  %v305_v61 = vadd.f32 %v3322_v55, %v304_v59 }
  0xbf   :  { %v324_v63 = vadd.f32 %v323_v60, %v305_v61  ;;  %v3140_v61 = vld [vmem:[#allocation8 + $0x198] sm:$0xff] }
  0xc0   :  { %1170 = vmatpush.bf16.msra.mxu0 %v3140_v61 }
  0xc1   :  { %v333_v2 = vpack.c.bf16 %v324_v63, %v324_v63  ;;  %v3139_v63 = vld [vmem:[#allocation8 + $0x190] sm:$0xff] }
  0xc3   :  { %335 = vst [vmem:[#allocation2 + $0x4] sm:$0xf] %v333_v2 }
  0xc4   :  { %v306_v4 = vpop.f32.mrf.mxu0  ;;  %1171 = vmatpush.bf16.msra.mxu0 %v3139_v63 }
  0xc5   :  { %v325_v5 = vpop.f32.mrf.mxu1  ;;  %v307_v7 = vadd.f32 %v3322_v55, %v306_v4  ;;  %v3134_v4 = vld [vmem:[#allocation8 + $0x168] sm:$0xff] }
  0xc7   :  { %v326_v9 = vadd.f32 %v325_v5, %v307_v7  ;;  %v593_v5 = vld [vmem:[#allocation2 + $0x18] sm:$0xf] }
  0xc8   :  { %v612_v16 = vunpack.c.l.b16 %v593_v5  ;;  %1172 = vmatpush.bf16.msra.mxu0 %v3138_v6 }
  0xc9   :  { %v334_v10 = vpack.c.bf16 %v326_v9, %v326_v9 }
  0xca   :  { %v814_v12 = vld [vmem:[#allocation2 + $0x4] sm:$0xf] }
  0xcb   :  { %336 = vst [vmem:[#allocation2 + $0x8] sm:$0xf] %v334_v10  ;;  %v845_v20 = vunpack.c.l.b16 %v814_v12 }
  0xcc   :  { %v309_v13 = vpop.f32.mrf.mxu0  ;;  %1173 = vmatpush.bf16.msra.mxu0 %v3137_v21  ;;  %v1068_v21 = vld [vmem:[#allocation2 + $0x1c] sm:$0x3] }
  0xcd   :  { %v328_v14 = vpop.f32.mrf.mxu1  ;;  %v310_v23 = vadd.f32 %v3322_v55, %v309_v13 }
  0xcf   :  { %v329_v38 = vadd.f32 %v328_v14, %v310_v23 }
  0xd2   :  { %v3642_v24 = vld [vmem:[#allocation2 + $0x4] sm:$0xff]  }
  0xd3   :  { %v3644_v25 = vld [vmem:[#allocation2 + $0x8] sm:$0xff]   ;;  %v390_v26 = vunpack.c.l.b16 %v3642_v24  ;;  %v846_v15 = vunpack.c.h.b16 %v3642_v24 }
  0xd4   :  { %v3237_v27 = vunpack.c.l.b16 %v3644_v25  ;;  %v494_v28 = vshrl.u32 %v3644_v25, 16  ;;  %v311_v29 = vpop.f32.mrf.mxu0  ;;  %v497_v30 = vshll.u32 %v3644_v25, 16  ;;  %v402_v40 = vrot.slane %v3644_v25, 3 }
  0xd5   :  { %v312_v34 = vadd.f32 %v3322_v55, %v311_v29  ;;  %v396_v35 = vpack.c.b16 %v390_v26, %v389_v22  ;;  %v330_v39 = vpop.f32.mrf.mxu1  ;;  %v483_v60 = vpack.c.b16 %v390_v26, %v482_v48  ;;  %v3133_v22 = vld [vmem:[#allocation8 + $0x160] sm:$0xff]  ;;  %v3132_v29 = vld [vmem:[#allocation8 + $0x158] sm:$0xff] }
  0xd6   :  { %v734_v36 = vpack.c.b16 %v3237_v27, %v390_v26  ;;  %v623_v41 = vrot.slane %v494_v28, 3  ;;  %v624_v42 = vrot.slane %v497_v30, 4  ;;  %v496_v13 = vrot.slane %v494_v28, 2 }
  0xd7   :  { %v331_v43 = vadd.f32 %v330_v39, %v312_v34  ;;  %v401_v44 = vrot.slane %v396_v35, 3  ;;  %v616_v45 = vshrl.u32 %v396_v35, 16  ;;  %v619_v46 = vshll.u32 %v396_v35, 16  ;;  %v3131_v34 = vld [vmem:[#allocation8 + $0x150] sm:$0xff] }
  0xd8   :  { %796 = vmatmul.bf16.vlgmr.msrb.gmra.mxu1 %v734_v36  ;;  %v625_v55 = vor.u32 %v624_v42, %v623_v41  ;;  %v486_v2 = vshrl.u32 %v483_v60, 16  ;;  %v489_v3 = vshll.u32 %v483_v60, 16  ;;  %v499_v14 = vrot.slane %v497_v30, 3 }
  0xd9   :  { %v3658_v49 = vpack.c.bf16 %v331_v43, %v329_v38  ;;  %v403_v50 = vsel %vm400_vm0, %v401_v44, %v402_v40  ;;  %v618_v51 = vrot.slane %v616_v45, 3  ;;  %v621_v52 = vrot.slane %v619_v46, 4 }
  0xda   :  { %467 = vmatmul.bf16.vlgmr.msra.gmra.mxu2 %v403_v50  ;;  %v488_v10 = vrot.slane %v486_v2, 2  ;;  %v491_v11 = vrot.slane %v489_v3, 3  ;;  %v500_v23 = vor.u32 %v499_v14, %v496_v13  ;;  %v852_v26 = vpack.c.b16 %v846_v15, %v845_v20  ;;  %v962_v50 = vld [vmem:[#allocation2 + $0x4] sm:$0xe] }
  0xdb   :  { %3269 = vst [vmem:[#allocation2 + $0x10] sm:$0xff] %v3658_v49   ;;  %v622_v54 = vor.u32 %v621_v52, %v618_v51  ;;  %v404_v56 = vrot.slane %v3658_v49, 3  ;;  %v503_v0 = vshrl.u32 %v3658_v49, 16  ;;  %v506_v1 = vshll.u32 %v3658_v49, 16  ;;  %v3130_v51 = vld [vmem:[#allocation8 + $0x148] sm:$0xff] }
  0xdc   :  { %v492_v19 = vor.u32 %v491_v11, %v488_v10  ;;  %v613_v27 = vpack.c.b16 %v612_v16, %v612_v16  ;;  %v860_v30 = vshll.u32 %v852_v26, 16  ;;  %v3242_v36 = vunpack.c.h.b16 %v3658_v49 }
  0xdd   :  { %v626_v58 = vsel %vm614_vm1, %v622_v54, %v625_v55  ;;  %v407_v59 = vsel %vm400_vm0, %v404_v56, %v406_v47  ;;  %v627_v8 = vrot.slane %v503_v0, 3  ;;  %v628_v9 = vrot.slane %v506_v1, 4  ;;  %v3129_v54 = vld [vmem:[#allocation8 + $0x140] sm:$0xff] }
  0xde   :  { %699 = vmatmul.bf16.vlgmr.msrb.gmra.mxu0 %v626_v58  ;;  %476 = vmatmul.bf16.vlgmr.msra.gmra.mxu3 %v407_v59  ;;  %v405_v17 = vsel %vm400_vm0, %v402_v40, %v404_v56  ;;  %v501_v24 = vsel %vm484_vm2, %v492_v19, %v500_v23  ;;  %v632_v32 = vshrl.u32 %v613_v27, 16  ;;  %v635_v33 = vshll.u32 %v613_v27, 16 }
  0xdf   :  { %1042 = vmatpush.bf16.msra.mxu3 %v3136_v57  ;;  %v629_v18 = vor.u32 %v628_v9, %v627_v8  ;;  %v862_v37 = vrot.slane %v860_v30, 1  ;;  %v858_v38 = vshrl.u32 %v852_v26, 16  ;;  %v736_v42 = vpack.c.b16 %v612_v16, %v3242_v36 }
  0xe0   :  { %v634_v39 = vrot.slane %v632_v32, 3  ;;  %v637_v40 = vrot.slane %v635_v33, 4  ;;  %v505_v43 = vrot.slane %v503_v0, 2  ;;  %v508_v44 = vrot.slane %v506_v1, 3 }
  0xe1   :  { %v630_v25 = vsel %vm614_vm1, %v625_v55, %v629_v18  ;;  %v863_v45 = vor.u32 %v862_v37, %v858_v38  ;;  %v981_v49 = vunpack.c.l.b16 %v962_v50  ;;  %v512_v57 = vshrl.u32 %v3650_v31, 16 }
  0xe2   :  { %v3289_v7 = vld [vmem:[#allocation2 + $0xc] sm:$0xff]   ;;  %v638_v47 = vor.u32 %v637_v40, %v634_v39  ;;  %v509_v48 = vor.u32 %v508_v44, %v505_v43  ;;  %v3120_v56 = vld [vmem:[#allocation2 + $0x14] sm:$0xff]  ;;  %v515_v59 = vshll.u32 %v3650_v31, 16  ;;  %v1087_v27 = vunpack.c.l.b16 %v1068_v21 }
  0xe3   :  { %1043 = vmatpush.bf16.msra.mxu3 %v3135_v62  ;;  %v3675_v28 = vld [vmem:[#allocation2 + $0xc] sm:$0xff]  ;;  %v982_v55 = vpack.c.b16 %v846_v15, %v981_v49  ;;  %v873_v60 = vshll.u32 %v3120_v56, 16  ;;  %v514_v63 = vrot.slane %v512_v57, 2  ;;  %v877_v15 = vshrl.u32 %v3120_v56, 16 }
  0xe4   :  { %v865_v35 = vshll.u32 %v3675_v28, 16  ;;  %v639_v52 = vsel %vm614_vm1, %v629_v18, %v638_v47  ;;  %v510_v53 = vsel %vm484_vm2, %v500_v23, %v509_v48  ;;  %v869_v58 = vshrl.u32 %v3675_v28, 16 }
  0xe5   :  { %v1091_v61 = vshrl.u32 %v982_v55, 16  ;;  %v1094_v62 = vshll.u32 %v982_v55, 16  ;;  %v517_v3 = vrot.slane %v515_v59, 3  ;;  %v1102_v19 = vrot.slane %v877_v15, 1 }
  0xe6   :  { %v867_v41 = vrot.slane %v865_v35, 1  ;;  %v1098_v1 = vrot.slane %v869_v58, 1  ;;  %v1099_v2 = vrot.slane %v865_v35, 2  ;;  %v1103_v20 = vrot.slane %v873_v60, 2 }
  0xe7   :  { %1044 = vmatpush.bf16.msra.mxu3 %v3134_v4  ;;  %v875_v4 = vrot.slane %v873_v60, 1  ;;  %v1093_v5 = vrot.slane %v1091_v61, 1  ;;  %v1096_v6 = vrot.slane %v1094_v62, 2  ;;  %v518_v10 = vor.u32 %v517_v3, %v514_v63 }
  0xe8   :  { %801 = vmatmul.bf16.gmra.mxu1 %v3289_v7  ;;  %v868_v46 = vsel %vm856_vm3, %v863_v45, %v867_v41  ;;  %v871_v0 = vor.u32 %v869_v58, %v867_v41  ;;  %v820_v7 = vld [vmem:[#allocation2 + $0x1c] sm:$0x1]  ;;  %v1100_v9 = vor.u32 %v1099_v2, %v1098_v1  ;;  %v1104_v23 = vor.u32 %v1103_v20, %v1102_v19  ;;  %v3166_v19 = vld [vmem:[#allocation11 + $0xa8] sm:$0xff] }
  0xe9   :  { %v1097_v11 = vor.u32 %v1096_v6, %v1093_v5  ;;  %v851_v31 = vunpack.c.l.b16 %v820_v7  ;;  %v519_v13 = vsel %vm484_vm2, %v509_v48, %v518_v10  ;;  %v985_v26 = vrot.slane %v3675_v28, 1  ;;  %v3160_v6 = vld [vmem:[#allocation11 + $0x78] sm:$0xff] }
  0xea   :  { %472 = vmatmul.bf16.gmra.mxu2 %v405_v17  ;;  %v876_v8 = vsel %vm856_vm3, %v871_v0, %v875_v4  ;;  %v879_v17 = vor.u32 %v877_v15, %v875_v4  ;;  %v1088_v30 = vpack.c.b16 %v1087_v27, %v1087_v27  ;;  %v987_v37 = vrot.slane %v3120_v56, 1  ;;  %v3152_v7 = vld [vmem:[#allocation11 + $0x38] sm:$0xff]  ;;  %1353 = vmatpush.bf16.msra.mxu1 %v3160_v6  ;;  %v3157_v27 = vld [vmem:[#allocation11 + $0x60] sm:$0xff] }
  0xeb   :  { %1045 = vmatpush.bf16.msra.mxu3 %v3133_v22  ;;  %v1101_v12 = vsel %vm1089_vm4, %v1097_v11, %v1100_v9  ;;  %v855_v14 = vpack.c.b16 %v851_v31, %v851_v31  ;;  %1436 = vmatpush.bf16.msra.mxu2 %v3152_v7  ;;  %v3167_v11 = vld [vmem:[#allocation11 + $0xb0] sm:$0xff]  ;;  %v3184_v7 = vld [vmem:[#allocation11 + $0x128] sm:$0xff] }
  0xec   :  { %v1107_v32 = vshrl.u32 %v1088_v30, 16  ;;  %v1110_v33 = vshll.u32 %v1088_v30, 16  ;;  %v988_v28 = vsel %vm983_vm5, %v985_v26, %v987_v37  ;;  %v3148_v30 = vld [vmem:[#allocation11 + $0x18] sm:$0xff] }
  0xed   :  { %v881_v16 = vshll.u32 %v855_v14, 16  ;;  %v989_v39 = vrot.slane %v855_v14, 1 }
  0xee   :  { %704 = vmatmul.bf16.gmra.mxu0 %v630_v25  ;;  %579 = vmatmul.bf16.vlgmr.msrb.gmra.mxu3 %v501_v24  ;;  %v984_v25 = vrot.slane %v982_v55, 1  ;;  %v1105_v24 = vsel %vm1089_vm4, %v1100_v9, %v1104_v23  ;;  %v1112_v35 = vrot.slane %v1110_v33, 2 }
  0xef   :  { %1046 = vmatpush.bf16.msra.mxu3 %v3132_v29  ;;  %v883_v18 = vrot.slane %v881_v16, 1  ;;  %v990_v40 = vsel %vm983_vm5, %v987_v37, %v989_v39  ;;  %v3158_v16 = vld [vmem:[#allocation11 + $0x68] sm:$0xff]  ;;  %v3155_v37 = vld [vmem:[#allocation11 + $0x50] sm:$0xff] }
  0xf0   :  { %v986_v29 = vsel %vm983_vm5, %v984_v25, %v985_v26  ;;  %v3149_v26 = vld [vmem:[#allocation11 + $0x20] sm:$0xff] }
  0xf1   :  { %v884_v22 = vsel %vm856_vm3, %v879_v17, %v883_v18  ;;  %v3150_v17 = vld [vmem:[#allocation11 + $0x28] sm:$0xff] }
  0xf3   :  { %1047 = vmatpush.bf16.msra.mxu3 %v3131_v34  ;;  %v1109_v34 = vrot.slane %v1107_v32, 1  ;;  %v3156_v32 = vld [vmem:[#allocation11 + $0x58] sm:$0xff] }
  0xf5   :  { %v1113_v36 = vor.u32 %v1112_v35, %v1109_v34  ;;  %v3163_v34 = vld [vmem:[#allocation11 + $0x90] sm:$0xff] }
  0xf7   :  { %1048 = vmatpush.bf16.msra.mxu3 %v3130_v51  ;;  %v1114_v38 = vsel %vm1089_vm4, %v1104_v23, %v1113_v36  ;;  %v3147_v36 = vld [vmem:[#allocation11 + $0x10] sm:$0xff] }
  0xf8   :  { %805 = vmatmul.bf16.gmra.mxu1 %v736_v42 }
  0xfa   :  { %944 = vmatmul.bf16.vlgmr.msrb.gmra.mxu2 %v868_v46 }
  0xfb   :  { %1049 = vmatpush.bf16.msra.mxu3 %v3129_v54 }
  0xfe   :  { %708 = vmatmul.bf16.gmra.mxu0 %v639_v52  ;;  %584 = vmatmul.bf16.gmra.mxu3 %v510_v53 }
 0x10a   :  { %949 = vmatmul.bf16.gmra.mxu2 %v876_v8  ;;  %v3168_v8 = vld [vmem:[#allocation11 + $0xb8] sm:$0xff] }
 0x10b   :  { %1529 = vmatpush.bf16.msrb.mxu3 %v3168_v8  ;;  %v1208_v8 = vld [vmem:[#allocation2] sm:$0x8] }
 0x10e   :  { %1174 = vmatmul.bf16.vlgmr.msra.gmra.mxu0 %v1101_v12  ;;  %588 = vmatmul.bf16.gmra.mxu3 %v519_v13  ;;  %v3159_v12 = vld [vmem:[#allocation11 + $0x70] sm:$0xff] }
 0x10f   :  { %v3151_v13 = vld [vmem:[#allocation11 + $0x30] sm:$0xff]  ;;  %1530 = vmatpush.bf16.msrb.mxu3 %v3167_v11  ;;  %1354 = vmatpush.bf16.msra.mxu1 %v3159_v12  ;;  %v3183_v11 = vld [vmem:[#allocation11 + $0x120] sm:$0xff] }
 0x110   :  { %1437 = vmatpush.bf16.msra.mxu2 %v3151_v13 }
 0x113   :  { %1531 = vmatpush.bf16.msrb.mxu3 %v3166_v19  ;;  %1355 = vmatpush.bf16.msra.mxu1 %v3158_v16  ;;  %v3171_v16 = vld [vmem:[#allocation11 + $0xc0] sm:$0xff] }
 0x114   :  { %1438 = vmatpush.bf16.msra.mxu2 %v3150_v17 }
 0x117   :  { %1356 = vmatpush.bf16.msra.mxu1 %v3157_v27 }
 0x118   :  { %1439 = vmatpush.bf16.msra.mxu2 %v3149_v26 }
 0x11a   :  { %953 = vmatmul.bf16.gmra.mxu2 %v884_v22  ;;  %v3165_v22 = vld [vmem:[#allocation11 + $0xa0] sm:$0xff] }
 0x11b   :  { %1532 = vmatpush.bf16.msrb.mxu3 %v3165_v22  ;;  %1357 = vmatpush.bf16.msra.mxu1 %v3156_v32 }
 0x11c   :  { %1440 = vmatpush.bf16.msra.mxu2 %v3148_v30 }
 0x11e   :  { %1179 = vmatmul.bf16.gmra.mxu0 %v1105_v24  ;;  %1050 = vmatmul.bf16.vlgmr.msra.gmra.mxu3 %v986_v29  ;;  %v3164_v24 = vld [vmem:[#allocation11 + $0x98] sm:$0xff] }
 0x11f   :  { %1533 = vmatpush.bf16.msrb.mxu3 %v3164_v24  ;;  %1358 = vmatpush.bf16.msra.mxu1 %v3155_v37 }
 0x120   :  { %1441 = vmatpush.bf16.msra.mxu2 %v3147_v36 }
 0x123   :  { %1534 = vmatpush.bf16.msrb.mxu3 %v3163_v34 }
 0x12e   :  { %1183 = vmatmul.bf16.gmra.mxu0 %v1114_v38  ;;  %1055 = vmatmul.bf16.gmra.mxu3 %v988_v28  ;;  %v3162_v28 = vld [vmem:[#allocation11 + $0x88] sm:$0xff] }
 0x12f   :  { %1535 = vmatpush.bf16.msrb.mxu3 %v3162_v28 }
 0x13e   :  { %1059 = vmatmul.bf16.gmra.mxu3 %v990_v40  ;;  %v3146_v40 = vld [vmem:[#allocation11 + $0x8] sm:$0xff] }
 0x13f   :  { %1442 = vmatpush.bf16.msra.mxu2 %v3146_v40 }
 0x155   :  { %v797_v41 = vpop.f32.mrf.mxu1 }
 0x15b   :  { %v700_v42 = vpop.f32.mrf.mxu0 }
 0x15d   :  { %v799_v43 = vpop.f32.mrf.mxu1  ;;  %v468_v44 = vpop.f32.mrf.mxu2 }
 0x161   :  { %v477_v45 = vpop.f32.mrf.mxu3 }
 0x163   :  { %v702_v46 = vpop.f32.mrf.mxu0 }
 0x165   :  { %v802_v47 = vpop.f32.mrf.mxu1  ;;  %v470_v48 = vpop.f32.mrf.mxu2 }
 0x166   :  { %v3153_v47 = vld [vmem:[#allocation11 + $0x40] sm:$0xff] }
 0x169   :  { %v479_v50 = vpop.f32.mrf.mxu3 }
 0x16b   :  { %v705_v51 = vpop.f32.mrf.mxu0 }
 0x16c   :  { %v3710_v51 = vld [vmem:[#allocation9] ss:$0 sm:$0xff] }
 0x16d   :  { %v803_v49 = vpop.f32.mrf.mxu1  ;;  %v473_v52 = vpop.f32.mrf.mxu2 }
 0x171   :  { %v580_v53 = vpop.f32.mrf.mxu3 }
 0x172   :  { %v581_v54 = vadd.f32 %v580_v53, %v468_v44  ;;  %v3161_v44 = vld [vmem:[#allocation11 + $0x80] sm:$0xff] }
 0x173   :  { %v706_v55 = vpop.f32.mrf.mxu0  ;;  %1536 = vmatpush.bf16.msrb.mxu3 %v3161_v44 }
 0x174   :  { %v713_v57 = vadd.f32 %v700_v42, %v581_v54  ;;  %v3178_v42 = vld [vmem:[#allocation11 + $0xf8] sm:$0xff] }
 0x175   :  { %v806_v56 = vpop.f32.mrf.mxu1  ;;  %v474_v58 = vpop.f32.mrf.mxu2  ;;  %1676 = vmatpush.bf16.msrb.mxu0 %v3178_v42  ;;  %v3181_v42 = vld [vmem:[#allocation11 + $0x110] sm:$0xff] }
 0x176   :  { %v3695_v59 = vadd.f32 %v797_v41, %v713_v57  ;;  %v3154_v41 = vld [vmem:[#allocation11 + $0x48] sm:$0xff] }
 0x177   :  { %1359 = vmatpush.bf16.msra.mxu1 %v3154_v41  ;;  %v3176_v57 = vld [vmem:[#allocation11 + $0xe8] sm:$0xff] }
 0x179   :  { %v582_v60 = vpop.f32.mrf.mxu3 }
 0x17a   :  { %v583_v61 = vadd.f32 %v582_v60, %v470_v48  ;;  %v3177_v48 = vld [vmem:[#allocation11 + $0xf0] sm:$0xff]  ;;  %v3175_v60 = vld [vmem:[#allocation11 + $0xe0] sm:$0xff] }
 0x17b   :  { %v709_v62 = vpop.f32.mrf.mxu0  ;;  %1677 = vmatpush.bf16.msrb.mxu0 %v3177_v48  ;;  %1360 = vmatpush.bf16.msra.mxu1 %v3153_v47 }
 0x17c   :  { %v714_v0 = vadd.f32 %v702_v46, %v583_v61  ;;  %v3145_v46 = vld [vmem:[#allocation11] sm:$0xff]  ;;  %v3186_v61 = vld [vmem:[#allocation11 + $0x138] sm:$0xff] }
 0x17d   :  { %v808_v63 = vpop.f32.mrf.mxu1  ;;  %v945_v1 = vpop.f32.mrf.mxu2  ;;  %1443 = vmatpush.bf16.msra.mxu2 %v3145_v46 }
 0x17e   :  { %v3697_v2 = vadd.f32 %v799_v43, %v714_v0  ;;  %v958_v43 = vadd.f32 %v945_v1, %v3695_v59  ;;  %v3185_v0 = vld [vmem:[#allocation11 + $0x130] sm:$0xff] }
 0x17f   :  { %1678 = vmatpush.bf16.msrb.mxu0 %v3176_v57  ;;  %1781 = vmatpush.bf16.msrb.mxu1 %v3186_v61 }
 0x181   :  { %v585_v3 = vpop.f32.mrf.mxu3 }
 0x182   :  { %v3174_v3 = vld [vmem:[#allocation11 + $0xd8] sm:$0xff] }
 0x183   :  { %v711_v4 = vpop.f32.mrf.mxu0  ;;  %1679 = vmatpush.bf16.msrb.mxu0 %v3175_v60  ;;  %1782 = vmatpush.bf16.msrb.mxu1 %v3185_v0  ;;  %v1231_v60 = vld [vmem:[#allocation2 + $0x18] sm:$0xf] }
 0x185   :  { %v3699_v5 = vpop.f32.mrf.mxu2 }
 0x187   :  { %1680 = vmatpush.bf16.msrb.mxu0 %v3174_v3  ;;  %1783 = vmatpush.bf16.msrb.mxu1 %v3184_v7  ;;  %v1214_v3 = vld [vmem:[#allocation2 + $0x18] sm:$0x7] }
 0x188   :  { %v1376_v7 = vunpack.c.l.b16 %v1214_v3 }
 0x189   :  { %v586_v9 = vpop.f32.mrf.mxu3 }
 0x18a   :  { %v587_v10 = vadd.f32 %v586_v9, %v474_v58  ;;  %v3172_v9 = vld [vmem:[#allocation11 + $0xc8] sm:$0xff] }
 0x18b   :  { %v1175_v31 = vpop.f32.mrf.mxu0  ;;  %1784 = vmatpush.bf16.msrb.mxu1 %v3183_v11  ;;  %v1377_v11 = vpack.c.b16 %v1376_v7, %v1376_v7  ;;  %v3198_v7 = vld [vmem:[#allocation12 + $0x58] sm:$0xff] }
 0x18c   :  { %v715_v14 = vadd.f32 %v706_v55, %v587_v10  ;;  %v959_v55 = vadd.f32 %v3699_v5, %v3697_v2  ;;  %v3173_v2 = vld [vmem:[#allocation11 + $0xd0] sm:$0xff]  ;;  %v1256_v10 = vunpack.c.l.b16 %v1208_v8 }
 0x18d   :  { %v950_v15 = vpop.f32.mrf.mxu2  ;;  %1681 = vmatpush.bf16.msrb.mxu0 %v3173_v2 }
 0x18e   :  { %v3701_v18 = vadd.f32 %v803_v49, %v715_v14 }
 0x191   :  { %v589_v20 = vpop.f32.mrf.mxu3  ;;  %1682 = vmatpush.bf16.msrb.mxu0 %v3172_v9 }
 0x192   :  { %v590_v21 = vadd.f32 %v589_v20, %v477_v45 }
 0x193   :  { %v1177_v23 = vpop.f32.mrf.mxu0 }
 0x194   :  { %v716_v25 = vadd.f32 %v709_v62, %v590_v21  ;;  %v3182_v21 = vld [vmem:[#allocation11 + $0x118] sm:$0xff] }
 0x195   :  { %v3703_v29 = vpop.f32.mrf.mxu2  ;;  %1683 = vmatpush.bf16.msrb.mxu0 %v3171_v16  ;;  %1785 = vmatpush.bf16.msrb.mxu1 %v3182_v21 }
 0x196   :  { %v3705_v33 = vadd.f32 %v806_v56, %v716_v25  ;;  %v960_v17 = vadd.f32 %v3703_v29, %v3701_v18 }
 0x199   :  { %v591_v35 = vpop.f32.mrf.mxu3  ;;  %1786 = vmatpush.bf16.msrb.mxu1 %v3181_v42 }
 0x19b   :  { %v1180_v38 = vpop.f32.mrf.mxu0 }
 0x19d   :  { %v3707_v39 = vpop.f32.mrf.mxu2 }
 0x19e   :  { %v961_v35 = vadd.f32 %v3707_v39, %v3705_v33 }
 0x1a1   :  { %v1051_v45 = vpop.f32.mrf.mxu3 }
 0x1a2   :  { %v1064_v50 = vadd.f32 %v1051_v45, %v958_v43 }
 0x1a3   :  { %v3712_v49 = vpop.f32.mrf.mxu0 }
 0x1a4   :  { %v1188_v52 = vadd.f32 %v1175_v31, %v1064_v50  ;;  %v3180_v50 = vld [vmem:[#allocation11 + $0x108] sm:$0xff] }
 0x1a5   :  { %v956_v53 = vpop.f32.mrf.mxu2  ;;  %1787 = vmatpush.bf16.msrb.mxu1 %v3180_v50 }
 0x1a6   :  { %v1196_v54 = vadd.f32 %v3710_v51, %v1188_v52 }
 0x1a8   :  { %v1200_v56 = vpack.c.bf16 %v1196_v54, %v1196_v54 }
 0x1a9   :  { %v1053_v58 = vpop.f32.mrf.mxu3 }
 0x1aa   :  { %1202 = vst [vmem:[#allocation2 + $0x4] sm:$0xf] %v1200_v56  ;;  %v1065_v59 = vadd.f32 %v1053_v58, %v959_v55  ;;  %v3179_v55 = vld [vmem:[#allocation11 + $0x100] sm:$0xff] }
 0x1ab   :  { %v1184_v62 = vpop.f32.mrf.mxu0  ;;  %1788 = vmatpush.bf16.msrb.mxu1 %v3179_v55 }
 0x1ac   :  { %v1189_v63 = vadd.f32 %v1177_v23, %v1065_v59 }
 0x1ae   :  { %v1197_v1 = vadd.f32 %v3710_v51, %v1189_v63 }
 0x1b0   :  { %v1201_v4 = vpack.c.bf16 %v1197_v1, %v1197_v1 }
 0x1b1   :  { %v1056_v6 = vpop.f32.mrf.mxu3  ;;  %v1555_v45 = vld [vmem:[#allocation2 + $0x4] sm:$0xf] }
 0x1b2   :  { %1203 = vst [vmem:[#allocation2 + $0x8] sm:$0xf] %v1201_v4  ;;  %v1586_v47 = vunpack.c.l.b16 %v1555_v45 }
 0x1b3   :  { %v1186_v5 = vpop.f32.mrf.mxu0 }
 0x1b9   :  { %v1057_v31 = vpop.f32.mrf.mxu3  ;;  %v3718_v12 = vld [vmem:[#allocation2 + $0x4] sm:$0xff]  }
 0x1ba   :  { %v3278_v13 = vld [vmem:[#allocation2 + $0x8] sm:$0xff]   ;;  %v1257_v14 = vunpack.c.l.b16 %v3718_v12  ;;  %v1066_v26 = vadd.f32 %v1057_v31, %v960_v17  ;;  %v1587_v46 = vunpack.c.h.b16 %v3718_v12 }
 0x1bb   :  { %v3250_v15 = vunpack.c.l.b16 %v3278_v13  ;;  %v1276_v19 = vshrl.u32 %v3278_v13, 16  ;;  %v1279_v20 = vshll.u32 %v3278_v13, 16  ;;  %v1379_v27 = vrot.slane %v3278_v13, 3 }
 0x1bc   :  { %v1263_v22 = vpack.c.b16 %v1257_v14, %v1256_v10  ;;  %v1190_v38 = vadd.f32 %v3712_v49, %v1066_v26  ;;  %v1593_v52 = vpack.c.b16 %v1587_v46, %v1586_v47 }
 0x1bd   :  { %v1475_v23 = vpack.c.b16 %v3250_v15, %v1257_v14  ;;  %v1278_v25 = vrot.slane %v1276_v19, 3  ;;  %v1281_v34 = vrot.slane %v1279_v20, 4  ;;  %v1383_v14 = vrot.slane %v1377_v11, 3 }
 0x1be   :  { %v1378_v24 = vrot.slane %v1263_v22, 3  ;;  %v1268_v30 = vshrl.u32 %v1263_v22, 16  ;;  %v1271_v32 = vshll.u32 %v1263_v22, 16  ;;  %v1198_v33 = vadd.f32 %v3710_v51, %v1190_v38 }
 0x1bf   :  { %1537 = vmatmul.bf16.vlgmr.msrb.gmra.mxu3 %v1475_v23  ;;  %v1282_v41 = vor.u32 %v1281_v34, %v1278_v25  ;;  %v1600_v59 = vshll.u32 %v1593_v52, 16  ;;  %v1598_v4 = vshrl.u32 %v1593_v52, 16 }
 0x1c0   :  { %v1380_v18 = vsel %vm400_vm0, %v1378_v24, %v1379_v27  ;;  %v1270_v29 = vrot.slane %v1268_v30, 3  ;;  %v1273_v36 = vrot.slane %v1271_v32, 4  ;;  %v1561_v30 = vld [vmem:[#allocation2 + $0x1c] sm:$0x1] }
 0x1c1   :  { %1444 = vmatmul.bf16.vlgmr.msra.gmra.mxu2 %v1380_v18  ;;  %v1060_v37 = vpop.f32.mrf.mxu3  ;;  %v1602_v1 = vrot.slane %v1600_v59, 1  ;;  %v1592_v34 = vunpack.c.l.b16 %v1561_v30  ;;  %v3201_v59 = vld [vmem:[#allocation12 + $0x70] sm:$0xff] }
 0x1c2   :  { %v1067_v28 = vadd.f32 %v1060_v37, %v961_v35  ;;  %v1274_v40 = vor.u32 %v1273_v36, %v1270_v29  ;;  %v1702_v35 = vld [vmem:[#allocation2 + $0x4] sm:$0xe] }
 0x1c3   :  { %v1603_v8 = vor.u32 %v1602_v1, %v1598_v4  ;;  %v1721_v18 = vunpack.c.l.b16 %v1702_v35  ;;  %v1596_v29 = vpack.c.b16 %v1592_v34, %v1592_v34  ;;  %v3199_v4 = vld [vmem:[#allocation12 + $0x60] sm:$0xff] }
 0x1c4   :  { %v1191_v43 = vadd.f32 %v1184_v62, %v1067_v28  ;;  %v1283_v44 = vsel %vm614_vm1, %v1274_v40, %v1282_v41  ;;  %v1262_v62 = vunpack.c.l.b16 %v1231_v60  ;;  %v3193_v60 = vld [vmem:[#allocation12 + $0x30] sm:$0xff] }
 0x1c5   :  { %1361 = vmatmul.bf16.vlgmr.msra.gmra.mxu1 %v1283_v44  ;;  %v1722_v36 = vpack.c.b16 %v1587_v46, %v1721_v18  ;;  %v1621_v37 = vshll.u32 %v1596_v29, 16 }
 0x1c6   :  { %v1199_v39 = vadd.f32 %v3710_v51, %v1191_v43  ;;  %v1266_v5 = vpack.c.b16 %v1262_v62, %v1262_v62 }
 0x1c7   :  { %v1723_v40 = vrot.slane %v1722_v36, 1  ;;  %v1623_v42 = vrot.slane %v1621_v37, 1 }
 0x1c8   :  { %v3246_v48 = vpack.c.bf16 %v1199_v39, %v1198_v33  ;;  %v1294_v31 = vshrl.u32 %v1266_v5, 16  ;;  %v1297_v13 = vshll.u32 %v1266_v5, 16  ;;  %v1728_v39 = vrot.slane %v1596_v29, 1  ;;  %v3212_v5 = vld [vmem:[#allocation12 + $0xb0] sm:$0xff] }
 0x1c9   :  { %v1062_v49 = vpop.f32.mrf.mxu3 }
 0x1ca   :  { %3277 = vst [vmem:[#allocation2 + $0x10] sm:$0xff] %v3246_v48   ;;  %v1285_v53 = vshrl.u32 %v3246_v48, 16  ;;  %v1288_v54 = vshll.u32 %v3246_v48, 16  ;;  %v1381_v56 = vrot.slane %v3246_v48, 3  ;;  %v1296_v15 = vrot.slane %v1294_v31, 3 }
 0x1cb   :  { %v1299_v16 = vrot.slane %v1297_v13, 4  ;;  %v3255_v17 = vunpack.c.h.b16 %v3246_v48  ;;  %v3197_v13 = vld [vmem:[#allocation12 + $0x50] sm:$0xff] }
 0x1cc   :  { %v1287_v57 = vrot.slane %v1285_v53, 3  ;;  %v1290_v58 = vrot.slane %v1288_v54, 4  ;;  %v1382_v51 = vsel %vm400_vm0, %v1379_v27, %v1381_v56  ;;  %v1384_v20 = vsel %vm400_vm0, %v1381_v56, %v1383_v14  ;;  %v3202_v53 = vld [vmem:[#allocation12 + $0x78] sm:$0xff]  ;;  %v3189_v14 = vld [vmem:[#allocation12 + $0x10] sm:$0xff] }
 0x1cd   :  { %v1300_v21 = vor.u32 %v1299_v16, %v1296_v15  ;;  %v1477_v22 = vpack.c.b16 %v1262_v62, %v3255_v17  ;;  %v3194_v54 = vld [vmem:[#allocation12 + $0x38] sm:$0xff]  ;;  %1929 = vmatpush.bf16.msrb.mxu2 %v3202_v53  ;;  %v3200_v62 = vld [vmem:[#allocation12 + $0x68] sm:$0xff] }
 0x1ce   :  { %v1291_v61 = vor.u32 %v1290_v58, %v1287_v57  ;;  %2045 = vmatpush.bf16.msra.mxu3 %v3194_v54  ;;  %v3196_v17 = vld [vmem:[#allocation12 + $0x48] sm:$0xff] }
 0x1d0   :  { %v1292_v2 = vsel %vm614_vm1, %v1282_v41, %v1291_v61  ;;  %v1301_v25 = vsel %vm614_vm1, %v1291_v61, %v1300_v21  ;;  %v3213_v61 = vld [vmem:[#allocation12 + $0xb8] sm:$0xff] }
 0x1d1   :  { %v3291_v63 = vld [vmem:[#allocation2 + $0xc] sm:$0xff]   ;;  %1449 = vmatmul.bf16.gmra.mxu2 %v1382_v51  ;;  %v3170_v19 = vld [vmem:[#allocation2 + $0x14] sm:$0xff]  ;;  %2190 = vmatpush.bf16.msra.mxu0 %v3213_v61 }
 0x1d2   :  { %v3169_v0 = vld [vmem:[#allocation2 + $0xc] sm:$0xff]  ;;  %1542 = vmatmul.bf16.gmra.mxu3 %v3291_v63  ;;  %v1613_v26 = vshll.u32 %v3170_v19, 16  ;;  %v1617_v28 = vshrl.u32 %v3170_v19, 16  ;;  %v1726_v45 = vrot.slane %v3170_v19, 1  ;;  %1930 = vmatpush.bf16.msrb.mxu2 %v3201_v59 }
 0x1d3   :  { %v1605_v6 = vshll.u32 %v3169_v0, 16  ;;  %v1609_v23 = vshrl.u32 %v3169_v0, 16  ;;  %v1724_v38 = vrot.slane %v3169_v0, 1  ;;  %2046 = vmatpush.bf16.msra.mxu3 %v3193_v60  ;;  %v3192_v63 = vld [vmem:[#allocation12 + $0x28] sm:$0xff] }
 0x1d4   :  { %v1615_v24 = vrot.slane %v1613_v26, 1  ;;  %v1729_v12 = vsel %vm983_vm5, %v1726_v45, %v1728_v39  ;;  %v3188_v19 = vld [vmem:[#allocation12 + $0x8] sm:$0xff] }
 0x1d5   :  { %1366 = vmatmul.bf16.gmra.mxu1 %v1292_v2  ;;  %v1607_v9 = vrot.slane %v1605_v6, 1  ;;  %v1725_v43 = vsel %vm983_vm5, %v1723_v40, %v1724_v38  ;;  %v1727_v33 = vsel %vm983_vm5, %v1724_v38, %v1726_v45  ;;  %v3191_v6 = vld [vmem:[#allocation12 + $0x20] sm:$0xff]  ;;  %2191 = vmatpush.bf16.msra.mxu0 %v3212_v5  ;;  %v3208_v40 = vld [vmem:[#allocation12 + $0x90] sm:$0xff] }
 0x1d6   :  { %v1619_v41 = vor.u32 %v1617_v28, %v1615_v24  ;;  %1931 = vmatpush.bf16.msrb.mxu2 %v3200_v62 }
 0x1d7   :  { %v1608_v10 = vsel %vm856_vm3, %v1603_v8, %v1607_v9  ;;  %v1611_v27 = vor.u32 %v1609_v23, %v1607_v9  ;;  %2047 = vmatpush.bf16.msra.mxu3 %v3192_v63  ;;  %v3190_v8 = vld [vmem:[#allocation12 + $0x18] sm:$0xff] }
 0x1d8   :  { %1684 = vmatmul.bf16.vlgmr.msrb.gmra.mxu0 %v1608_v10  ;;  %v1624_v44 = vsel %vm856_vm3, %v1619_v41, %v1623_v42  ;;  %v3211_v10 = vld [vmem:[#allocation12 + $0xa8] sm:$0xff] }
 0x1d9   :  { %v1616_v32 = vsel %vm856_vm3, %v1611_v27, %v1615_v24  ;;  %2192 = vmatpush.bf16.msra.mxu0 %v3211_v10  ;;  %v3195_v27 = vld [vmem:[#allocation12 + $0x40] sm:$0xff]  ;;  %v3209_v24 = vld [vmem:[#allocation12 + $0x98] sm:$0xff] }
 0x1da   :  { %1932 = vmatpush.bf16.msrb.mxu2 %v3199_v4 }
 0x1db   :  { %2048 = vmatpush.bf16.msra.mxu3 %v3191_v6 }
 0x1de   :  { %1933 = vmatpush.bf16.msrb.mxu2 %v3198_v7 }
 0x1df   :  { %2049 = vmatpush.bf16.msra.mxu3 %v3190_v8 }
 0x1e1   :  { %1453 = vmatmul.bf16.gmra.mxu2 %v1384_v20 }
 0x1e2   :  { %1546 = vmatmul.bf16.gmra.mxu3 %v1477_v22  ;;  %1934 = vmatpush.bf16.msrb.mxu2 %v3197_v13  ;;  %v3210_v22 = vld [vmem:[#allocation12 + $0xa0] sm:$0xff] }
 0x1e3   :  { %2050 = vmatpush.bf16.msra.mxu3 %v3189_v14  ;;  %2193 = vmatpush.bf16.msra.mxu0 %v3210_v22 }
 0x1e5   :  { %1370 = vmatmul.bf16.gmra.mxu1 %v1301_v25  ;;  %v3187_v25 = vld [vmem:[#allocation12] sm:$0xff] }
 0x1e6   :  { %1935 = vmatpush.bf16.msrb.mxu2 %v3196_v17 }
 0x1e7   :  { %2051 = vmatpush.bf16.msra.mxu3 %v3188_v19  ;;  %2194 = vmatpush.bf16.msra.mxu0 %v3209_v24 }
 0x1e8   :  { %1689 = vmatmul.bf16.gmra.mxu0 %v1616_v32  ;;  %v3324_v32 = vld [vmem:[%s3796_s6] ss:$0 sm:$0xff] }
 0x1ea   :  { %1936 = vmatpush.bf16.msrb.mxu2 %v3195_v27 }
 0x1eb   :  { %2052 = vmatpush.bf16.msra.mxu3 %v3187_v25  ;;  %2195 = vmatpush.bf16.msra.mxu0 %v3208_v40 }
 0x1f5   :  { %1789 = vmatmul.bf16.vlgmr.msrb.gmra.mxu1 %v1725_v43  ;;  %v3207_v43 = vld [vmem:[#allocation12 + $0x88] sm:$0xff] }
 0x1f6   :  { %2196 = vmatpush.bf16.msra.mxu0 %v3207_v43  ;;  %v3065_v43 = vld [vmem:[#allocation14 + $0x70] sm:$0xf] }
 0x1f8   :  { %1693 = vmatmul.bf16.gmra.mxu0 %v1624_v44  ;;  %v1823_v44 = vld [vmem:[#allocation2] sm:$0x8] }
 0x205   :  { %1794 = vmatmul.bf16.gmra.mxu1 %v1727_v33 }
 0x215   :  { %1798 = vmatmul.bf16.gmra.mxu1 %v1729_v12  ;;  %v1954_v12 = vunpack.c.l.b16 %v1823_v44 }
 0x242   :  { %v1362_v46 = vpop.f32.mrf.mxu1  ;;  %v1538_v48 = vpop.f32.mrf.mxu3 }
 0x244   :  { %v1445_v47 = vpop.f32.mrf.mxu2 }
 0x245   :  { %v1446_v16 = vadd.f32 %v1445_v47, %v1362_v46  ;;  %v3206_v46 = vld [vmem:[#allocation12 + $0x80] sm:$0xff] }
 0x246   :  { %2197 = vmatpush.bf16.msra.mxu0 %v3206_v46 }
 0x247   :  { %v1551_v26 = vadd.f32 %v1538_v48, %v1446_v16  ;;  %v1829_v16 = vld [vmem:[#allocation2 + $0x18] sm:$0xf] }
 0x248   :  { %v1874_v22 = vunpack.c.l.b16 %v1829_v16  ;;  %v3223_v16 = vld [vmem:[#allocation14 + $0x44] sm:$0xf0] }
 0x24a   :  { %v3745_v50 = vpop.f32.mrf.mxu1  ;;  %v3747_v52 = vpop.f32.mrf.mxu3  ;;  %v1958_v27 = vpack.c.b16 %v1874_v22, %v1874_v22 }
 0x24c   :  { %v1447_v49 = vpop.f32.mrf.mxu2 }
 0x24d   :  { %v1448_v35 = vadd.f32 %v1447_v49, %v3745_v50 }
 0x24f   :  { %v1552_v37 = vadd.f32 %v3747_v52, %v1448_v35 }
 0x252   :  { %v1367_v55 = vpop.f32.mrf.mxu1 }
 0x254   :  { %v1450_v56 = vpop.f32.mrf.mxu2 }
 0x255   :  { %v1685_v57 = vpop.f32.mrf.mxu0  ;;  %v1543_v58 = vpop.f32.mrf.mxu3 }
 0x256   :  { %v1698_v30 = vadd.f32 %v1685_v57, %v1551_v26 }
 0x25a   :  { %v3749_v51 = vpop.f32.mrf.mxu1 }
 0x25c   :  { %v3751_v0 = vpop.f32.mrf.mxu2 }
 0x25d   :  { %v1687_v1 = vpop.f32.mrf.mxu0  ;;  %v3753_v3 = vpop.f32.mrf.mxu3  ;;  %v1452_v54 = vadd.f32 %v3751_v0, %v3749_v51 }
 0x25e   :  { %v1699_v28 = vadd.f32 %v1687_v1, %v1552_v37 }
 0x25f   :  { %v1553_v6 = vadd.f32 %v3753_v3, %v1452_v54 }
 0x262   :  { %v3755_v2 = vpop.f32.mrf.mxu1 }
 0x264   :  { %v3757_v9 = vpop.f32.mrf.mxu2 }
 0x265   :  { %v1690_v11 = vpop.f32.mrf.mxu0  ;;  %v3759_v31 = vpop.f32.mrf.mxu3  ;;  %v1455_v62 = vadd.f32 %v3757_v9, %v3755_v2 }
 0x267   :  { %v1554_v51 = vadd.f32 %v3759_v31, %v1455_v62 }
 0x26a   :  { %v1373_v15 = vpop.f32.mrf.mxu1 }
 0x26c   :  { %v1456_v20 = vpop.f32.mrf.mxu2 }
 0x26d   :  { %v1691_v21 = vpop.f32.mrf.mxu0  ;;  %v1549_v23 = vpop.f32.mrf.mxu3 }
 0x26e   :  { %v1700_v8 = vadd.f32 %v1691_v21, %v1553_v6  ;;  %v3057_v6 = vld [vmem:[#allocation14 + $0x60] sm:$0xf] }
 0x272   :  { %v1790_v34 = vpop.f32.mrf.mxu1 }
 0x273   :  { %v1803_v18 = vadd.f32 %v1790_v34, %v1698_v30 }
 0x275   :  { %v1694_v29 = vpop.f32.mrf.mxu0  ;;  %v1811_v36 = vadd.f32 %v3324_v32, %v1803_v18  ;;  %v1986_v18 = vshrl.u32 %v1958_v27, 16 }
 0x276   :  { %v1701_v10 = vadd.f32 %v1694_v29, %v1554_v51  ;;  %v1989_v29 = vshll.u32 %v1958_v27, 16  ;;  %v3051_v51 = vld [vmem:[#allocation14 + $0x58] sm:$0xf0] }
 0x277   :  { %v1815_v38 = vpack.c.bf16 %v1811_v36, %v1811_v36 }
 0x278   :  { %v1991_v40 = vrot.slane %v1989_v29, 4  ;;  %v3217_v29 = vld [vmem:[#allocation14 + $0x14] sm:$0xf0] }
 0x279   :  { %1817 = vst [vmem:[#allocation2 + $0x4] sm:$0xf] %v1815_v38 }
 0x27a   :  { %v1792_v41 = vpop.f32.mrf.mxu1 }
 0x27b   :  { %v1804_v42 = vadd.f32 %v1792_v41, %v1699_v28  ;;  %v1988_v28 = vrot.slane %v1986_v18, 3  ;;  %v3228_v41 = vld [vmem:[#allocation14 + $0x74] sm:$0xf]  ;;  %v3017_v18 = vld [vmem:[#allocation14 + $0x10] sm:$0xf] }
 0x27d   :  { %v1696_v45 = vpop.f32.mrf.mxu0  ;;  %v1812_v33 = vadd.f32 %v3324_v32, %v1804_v42  ;;  %v3067_v42 = vld [vmem:[#allocation14 + $0x78] sm:$0xf0] }
 0x27e   :  { %v3070_v44 = vor.u32 %v3228_v41, %v3067_v42  ;;  %v3229_v45 = vld [vmem:[#allocation14 + $0x74] sm:$0xf0] }
 0x27f   :  { %v1816_v39 = vpack.c.bf16 %v1812_v33, %v1812_v33  ;;  %v3226_v33 = vld [vmem:[#allocation14 + $0x64] sm:$0xf] }
 0x280   :  { %v1824_v47 = vld [vmem:[#allocation2 + $0x4] sm:$0xf]  ;;  %2357 = vmatpush.bf16.msra.mxu2 %v3070_v44 }
 0x281   :  { %1818 = vst [vmem:[#allocation2 + $0x8] sm:$0xf] %v1816_v39  ;;  %v1869_v48 = vunpack.c.l.b16 %v1824_v47  ;;  %v3059_v39 = vld [vmem:[#allocation14 + $0x68] sm:$0xf0]  ;;  %v1992_v47 = vor.u32 %v1991_v40, %v1988_v28  ;;  %v3009_v28 = vld [vmem:[#allocation14] sm:$0xf] }
 0x282   :  { %v1795_v50 = vpop.f32.mrf.mxu1  ;;  %v3062_v46 = vor.u32 %v3226_v33, %v3059_v39  ;;  %v3215_v40 = vld [vmem:[#allocation14 + $0x4] sm:$0xf0] }
 0x283   :  { %v1955_v49 = vpack.c.b16 %v1869_v48, %v1954_v12  ;;  %v3066_v12 = vor.u32 %v3229_v45, %v3065_v43  ;;  %v3010_v42 = vor.u32 %v3215_v40, %v3009_v28  ;;  %v2382_v28 = vld [vmem:[#allocation3 + $0x18] sm:$0xff] }
 0x284   :  { %2358 = vmatpush.bf16.msra.mxu2 %v3062_v46 }
 0x285   :  { %v1960_v52 = vshrl.u32 %v1955_v49, 16  ;;  %v1963_v53 = vshll.u32 %v1955_v49, 16  ;;  %2335 = vmatpush.bf16.msra.mxu1 %v3066_v12 }
 0x287   :  { %v1962_v56 = vrot.slane %v1960_v52, 3  ;;  %v1965_v58 = vrot.slane %v1963_v53, 4 }
 0x288   :  { %v3286_v55 = vld [vmem:[#allocation2 + $0x8] sm:$0xff]  }
 0x289   :  { %v3263_v57 = vunpack.c.l.b16 %v3286_v55  ;;  %v1968_v59 = vshrl.u32 %v3286_v55, 16  ;;  %v1971_v60 = vshll.u32 %v3286_v55, 16  ;;  %v1966_v5 = vor.u32 %v1965_v58, %v1962_v56  ;;  %v3203_v17 = vld [vmem:[#allocation2 + $0x4] sm:$0xff]  ;;  %v2075_v56 = vld [vmem:[#allocation2 + $0x1c] sm:$0x1] }
 0x28a   :  { %v1796_v61 = vpop.f32.mrf.mxu1  ;;  %v2114_v31 = vshll.u32 %v3203_v17, 16 }
 0x28b   :  { %v1875_v63 = vpack.c.b16 %v3263_v57, %v1869_v48  ;;  %v1970_v1 = vrot.slane %v1968_v59, 3  ;;  %v1973_v4 = vrot.slane %v1971_v60, 4  ;;  %v1805_v11 = vadd.f32 %v1796_v61, %v1700_v8 }
 0x28c   :  { %v2116_v34 = vrot.slane %v2114_v31, 1  ;;  %v2106_v59 = vunpack.c.l.b16 %v2075_v56  ;;  %v3027_v31 = vld [vmem:[#allocation14 + $0x28] sm:$0xf0] }
 0x28d   :  { %1937 = vmatmul.bf16.vlgmr.msrb.gmra.mxu2 %v1875_v63  ;;  %v1974_v7 = vor.u32 %v1973_v4, %v1970_v1  ;;  %v1813_v15 = vadd.f32 %v3324_v32, %v1805_v11  ;;  %v3225_v11 = vld [vmem:[#allocation14 + $0x54] sm:$0xf0] }
 0x28e   :  { %v2110_v60 = vpack.c.b16 %v2106_v59, %v2106_v59 }
 0x28f   :  { %v1975_v0 = vsel %vm614_vm1, %v1966_v5, %v1974_v7  ;;  %v3227_v5 = vld [vmem:[#allocation14 + $0x64] sm:$0xf0] }
 0x290   :  { %2053 = vmatmul.bf16.vlgmr.msra.gmra.mxu3 %v1975_v0  ;;  %v2135_v61 = vshll.u32 %v2110_v60, 16  ;;  %v3058_v8 = vor.u32 %v3227_v5, %v3057_v6 }
 0x292   :  { %v1799_v13 = vpop.f32.mrf.mxu1  ;;  %v2137_v1 = vrot.slane %v2135_v61, 1  ;;  %2336 = vmatpush.bf16.msra.mxu1 %v3058_v8 }
 0x293   :  { %v1806_v14 = vadd.f32 %v1799_v13, %v1701_v10  ;;  %v3049_v10 = vld [vmem:[#allocation14 + $0x50] sm:$0xf]  ;;  %v3222_v13 = vld [vmem:[#allocation14 + $0x44] sm:$0xf] }
 0x295   :  { %v1814_v2 = vadd.f32 %v3324_v32, %v1806_v14  ;;  %v2112_v32 = vshrl.u32 %v3203_v17, 16  ;;  %v3050_v14 = vor.u32 %v3225_v11, %v3049_v10  ;;  %v3220_v17 = vld [vmem:[#allocation14 + $0x34] sm:$0xf] }
 0x297   :  { %v3259_v9 = vpack.c.bf16 %v1814_v2, %v1813_v15  ;;  %v2117_v36 = vor.u32 %v2116_v34, %v2112_v32  ;;  %v3043_v15 = vld [vmem:[#allocation14 + $0x48] sm:$0xf0]  ;;  %2337 = vmatpush.bf16.msra.mxu1 %v3050_v14  ;;  %v3019_v32 = vld [vmem:[#allocation14 + $0x18] sm:$0xf0] }
 0x298   :  { %v3046_v2 = vor.u32 %v3222_v13, %v3043_v15 }
 0x299   :  { %3285 = vst [vmem:[#allocation2 + $0x10] sm:$0xff] %v3259_v9   ;;  %v1977_v3 = vshrl.u32 %v3259_v9, 16  ;;  %v1980_v19 = vshll.u32 %v3259_v9, 16  ;;  %v3268_v48 = vunpack.c.h.b16 %v3259_v9  ;;  %v3041_v9 = vld [vmem:[#allocation14 + $0x40] sm:$0xf] }
 0x29a   :  { %v1801_v20 = vpop.f32.mrf.mxu1 }
 0x29b   :  { %v1979_v21 = vrot.slane %v1977_v3, 3  ;;  %v1982_v23 = vrot.slane %v1980_v19, 4  ;;  %v1877_v52 = vpack.c.b16 %v1874_v22, %v3268_v48  ;;  %v3042_v3 = vor.u32 %v3223_v16, %v3041_v9  ;;  %v3035_v19 = vld [vmem:[#allocation14 + $0x38] sm:$0xf0]  ;;  %v3033_v20 = vld [vmem:[#allocation14 + $0x30] sm:$0xf] }
 0x29c   :  { %v3221_v22 = vld [vmem:[#allocation14 + $0x34] sm:$0xf0] }
 0x29d   :  { %v1983_v26 = vor.u32 %v1982_v23, %v1979_v21  ;;  %v3038_v21 = vor.u32 %v3220_v17, %v3035_v19  ;;  %v3218_v23 = vld [vmem:[#allocation14 + $0x24] sm:$0xf]  ;;  %2338 = vmatpush.bf16.msra.mxu1 %v3042_v3  ;;  %v2249_v3 = vld [vmem:[%s3800_s10] sm:$0x3]  ;;  %s3542_s10 = smov [#allocation15]  }
 0x29e   :  { %v3030_v27 = vor.u32 %v3218_v23, %v3027_v31  ;;  %v2251_v19 = vperm.slane %v2249_v3, 0  ;;  %v2252_v31 = vperm.slane %v2249_v3, 1  ;;  %s2417_s16 = sshll.u32 %s3542_s10, 4  ;;  %s2418_s16 = int_to_ptr.vmem [resolvable:$true] %s2417_s16 }
 0x29f   :  { %v1984_v25 = vsel %vm614_vm1, %v1974_v7, %v1983_v26  ;;  %v1993_v49 = vsel %vm614_vm1, %v1983_v26, %v1992_v47  ;;  %v3224_v7 = vld [vmem:[#allocation14 + $0x54] sm:$0xf]  ;;  %v3034_v26 = vor.u32 %v3221_v22, %v3033_v20 }
 0x2a0   :  { %v3306_v24 = vld [vmem:[#allocation2 + $0xc] sm:$0xff]   ;;  %2058 = vmatmul.bf16.gmra.mxu3 %v1984_v25  ;;  %v3205_v50 = vld [vmem:[#allocation2 + $0x14] sm:$0xff]  ;;  %v3054_v0 = vor.u32 %v3224_v7, %v3051_v51  ;;  %v3025_v25 = vld [vmem:[#allocation14 + $0x20] sm:$0xf] }
 0x2a1   :  { %v3204_v30 = vld [vmem:[#allocation2 + $0xc] sm:$0xff]  ;;  %1942 = vmatmul.bf16.gmra.mxu2 %v3306_v24  ;;  %v2127_v54 = vshll.u32 %v3205_v50, 16  ;;  %v2131_v62 = vshrl.u32 %v3205_v50, 16  ;;  %2339 = vmatpush.bf16.msra.mxu1 %v3034_v26  ;;  %v3325_v50 = vld [vmem:[%s3798_s8] ss:$0 sm:$0xff] }
 0x2a2   :  { %v2119_v35 = vshll.u32 %v3204_v30, 16  ;;  %v2123_v53 = vshrl.u32 %v3204_v30, 16  ;;  %2359 = vmatpush.bf16.msra.mxu2 %v3054_v0  ;;  %v3219_v24 = vld [vmem:[#allocation14 + $0x24] sm:$0xf0]  ;;  %v3216_v30 = vld [vmem:[#allocation14 + $0x14] sm:$0xf] }
 0x2a3   :  { %v2129_v57 = vrot.slane %v2127_v54, 1  ;;  %v3026_v34 = vor.u32 %v3219_v24, %v3025_v25  ;;  %v2380_v24 = vld [vmem:[#allocation3 + $0x8] sm:$0xff] }
 0x2a4   :  { %v2121_v37 = vrot.slane %v2119_v35, 1  ;;  %v3022_v35 = vor.u32 %v3216_v30, %v3019_v32 }
 0x2a5   :  { %v2133_v63 = vor.u32 %v2131_v62, %v2129_v57  ;;  %2340 = vmatpush.bf16.msra.mxu1 %v3026_v34 }
 0x2a6   :  { %v2122_v38 = vsel %vm856_vm3, %v2117_v36, %v2121_v37  ;;  %v2125_v55 = vor.u32 %v2123_v53, %v2121_v37  ;;  %2360 = vmatpush.bf16.msra.mxu2 %v3046_v2  ;;  %v3214_v36 = vld [vmem:[#allocation14 + $0x4] sm:$0xf]  ;;  %v3018_v37 = vor.u32 %v3217_v29, %v3017_v18 }
 0x2a7   :  { %2198 = vmatmul.bf16.vlgmr.msra.gmra.mxu0 %v2122_v38  ;;  %v2138_v4 = vsel %vm856_vm3, %v2133_v63, %v2137_v1  ;;  %v3011_v38 = vld [vmem:[#allocation14 + $0x8] sm:$0xf0] }
 0x2a8   :  { %v2130_v58 = vsel %vm856_vm3, %v2125_v55, %v2129_v57  ;;  %v3014_v41 = vor.u32 %v3214_v36, %v3011_v38 }
 0x2a9   :  { %2341 = vmatpush.bf16.msra.mxu1 %v3018_v37 }
 0x2aa   :  { %2361 = vmatpush.bf16.msra.mxu2 %v3038_v21  ;;  %v2379_v21 = vld [vmem:[#allocation3] sm:$0xff] }
 0x2ad   :  { %2342 = vmatpush.bf16.msra.mxu1 %v3010_v42 }
 0x2ae   :  { %2362 = vmatpush.bf16.msra.mxu2 %v3030_v27 }
 0x2b0   :  { %2063 = vmatmul.bf16.gmra.mxu3 %v1993_v49 }
 0x2b1   :  { %1947 = vmatmul.bf16.gmra.mxu2 %v1877_v52 }
 0x2b2   :  { %2363 = vmatpush.bf16.msra.mxu2 %v3022_v35  ;;  %v2381_v35 = vld [vmem:[#allocation3 + $0x10] sm:$0xff] }
 0x2b6   :  { %2364 = vmatpush.bf16.msra.mxu2 %v3014_v41 }
 0x2b7   :  { %2203 = vmatmul.bf16.gmra.mxu0 %v2130_v58 }
 0x2c7   :  { %2208 = vmatmul.bf16.gmra.mxu0 %v2138_v4 }
 0x310   :  { %v1938_v43 = vpop.f32.mrf.mxu2 }
 0x313   :  { %v2054_v44 = vpop.f32.mrf.mxu3 }
 0x314   :  { %v2055_v12 = vadd.f32 %v2054_v44, %v1938_v43 }
 0x318   :  { %v1940_v45 = vpop.f32.mrf.mxu2 }
 0x31b   :  { %v2056_v33 = vpop.f32.mrf.mxu3 }
 0x31c   :  { %v2057_v47 = vadd.f32 %v2056_v33, %v1940_v45  ;;  %v2396_v33 = vld [vmem:[#allocation3 + $0x20] sm:$0xff] }
 0x323   :  { %v2059_v49 = vpop.f32.mrf.mxu3 }
 0x324   :  { %v2199_v39 = vpop.f32.mrf.mxu0  ;;  %v1943_v46 = vpop.f32.mrf.mxu2 }
 0x325   :  { %v2214_v48 = vadd.f32 %v2199_v39, %v2055_v12  ;;  %v2060_v60 = vadd.f32 %v2059_v49, %v1943_v46 }
 0x327   :  { %v2224_v54 = vadd.f32 %v3325_v50, %v2214_v48  ;;  %v2397_v48 = vld [vmem:[#allocation3 + $0x28] sm:$0xff] }
 0x32b   :  { %v2061_v59 = vpop.f32.mrf.mxu3 }
 0x32c   :  { %v2201_v52 = vpop.f32.mrf.mxu0  ;;  %v1945_v57 = vpop.f32.mrf.mxu2 }
 0x32d   :  { %v2215_v53 = vadd.f32 %v2201_v52, %v2057_v47  ;;  %v2062_v61 = vadd.f32 %v2061_v59, %v1945_v57  ;;  %v2399_v59 = vld [vmem:[#allocation3 + $0x38] sm:$0xff] }
 0x32f   :  { %v2225_v55 = vadd.f32 %v3325_v50, %v2215_v53  ;;  %v2398_v53 = vld [vmem:[#allocation3 + $0x30] sm:$0xff] }
 0x331   :  { %v2246_v56 = vpack.c.bf16 %v2225_v55, %v2224_v54 }
 0x333   :  { %2343 = vmatmul.bf16.vlgmr.msra.gmra.mxu1 %v2246_v56  ;;  %2365 = vmatmul.bf16.vlgmr.msra.gmra.mxu2 %v2246_v56  ;;  %v2064_v7 = vpop.f32.mrf.mxu3 }
 0x334   :  { %v2204_v58 = vpop.f32.mrf.mxu0  ;;  %v1948_v4 = vpop.f32.mrf.mxu2 }
 0x335   :  { %v2216_v62 = vadd.f32 %v2204_v58, %v2060_v60  ;;  %v2065_v10 = vadd.f32 %v2064_v7, %v1948_v4 }
 0x337   :  { %v2226_v6 = vadd.f32 %v3325_v50, %v2216_v62 }
 0x33b   :  { %v2066_v11 = vpop.f32.mrf.mxu3 }
 0x33c   :  { %v2206_v63 = vpop.f32.mrf.mxu0  ;;  %v1950_v0 = vpop.f32.mrf.mxu2 }
 0x33d   :  { %v2217_v1 = vadd.f32 %v2206_v63, %v2062_v61  ;;  %v2067_v13 = vadd.f32 %v2066_v11, %v1950_v0 }
 0x33f   :  { %v2227_v5 = vadd.f32 %v3325_v50, %v2217_v1 }
 0x341   :  { %v2247_v8 = vpack.c.bf16 %v2227_v5, %v2226_v6 }
 0x343   :  { %2348 = vmatmul.bf16.gmra.mxu1 %v2247_v8  ;;  %2370 = vmatmul.bf16.gmra.mxu2 %v2247_v8 }
 0x344   :  { %v2209_v51 = vpop.f32.mrf.mxu0 }
 0x345   :  { %v2218_v14 = vadd.f32 %v2209_v51, %v2065_v10 }
 0x347   :  { %v2228_v9 = vadd.f32 %v3325_v50, %v2218_v14 }
 0x34c   :  { %v2211_v15 = vpop.f32.mrf.mxu0 }
 0x34d   :  { %v2219_v2 = vadd.f32 %v2211_v15, %v2067_v13 }
 0x34f   :  { %v2229_v16 = vadd.f32 %v3325_v50, %v2219_v2 }
 0x351   :  { %v2248_v17 = vpack.c.bf16 %v2229_v16, %v2228_v9 }
 0x353   :  { %2352 = vmatmul.bf16.gmra.mxu1 %v2248_v17  ;;  %2374 = vmatmul.bf16.gmra.mxu2 %v2248_v17 }
 0x3b0   :  { %v2344_v20 = vpop.f32.mrf.mxu1 }
 0x3b1   :  { %v2345_v22 = vadd.f32 %v2344_v20, %v2251_v19 }
 0x3b3   :  { %v2383_v23 = vmax.f32 %v2345_v22, 0.0 }
 0x3b5   :  { %v2387_v26 = vadd.f32 %v2383_v23, %v2379_v21 }
 0x3b6   :  { %v2366_v27 = vpop.f32.mrf.mxu2 }
 0x3b7   :  { %2391 = vst [vmem:[#allocation15] sm:$0xff] %v2387_v26  ;;  %v2367_v25 = vadd.f32 %v2366_v27, %v2252_v31 }
 0x3b8   :  { %v2346_v30 = vpop.f32.mrf.mxu1 }
 0x3b9   :  { %v2384_v34 = vmax.f32 %v2367_v25, 0.0  ;;  %v2347_v32 = vadd.f32 %v2346_v30, %v2251_v19 }
 0x3bb   :  { %v2388_v18 = vadd.f32 %v2384_v34, %v2380_v24  ;;  %v2385_v29 = vmax.f32 %v2347_v32, 0.0 }
 0x3bd   :  { %2392 = vst [vmem:[#allocation15 + $0x8] sm:$0xff] %v2388_v18  ;;  %v2389_v36 = vadd.f32 %v2385_v29, %v2381_v35 }
 0x3be   :  { %v2368_v37 = vpop.f32.mrf.mxu2 }
 0x3bf   :  { %2393 = vst [vmem:[#allocation15 + $0x10] sm:$0xff] %v2389_v36  ;;  %v2369_v38 = vadd.f32 %v2368_v37, %v2252_v31 }
 0x3c0   :  { %v2349_v40 = vpop.f32.mrf.mxu1 }
 0x3c1   :  { %v2386_v41 = vmax.f32 %v2369_v38, 0.0 }
 0x3c3   :  { %v2390_v42 = vadd.f32 %v2386_v41, %v2382_v28 }
 0x3c5   :  { %2394 = vst [vmem:[#allocation15 + $0x18] sm:$0xff] %v2390_v42 }
 0x3c6   :  { %v2371_v43 = vpop.f32.mrf.mxu2 }
 0x3c8   :  { %v2350_v44 = vpop.f32.mrf.mxu1 }
 0x3c9   :  { %v2351_v45 = vadd.f32 %v2350_v44, %v2251_v19 }
 0x3cb   :  { %v2400_v39 = vmax.f32 %v2351_v45, 0.0 }
 0x3cd   :  { %v2404_v12 = vadd.f32 %v2400_v39, %v2396_v33 }
 0x3ce   :  { %v2372_v46 = vpop.f32.mrf.mxu2 }
 0x3cf   :  { %2409 = vst [vmem:[#allocation15 + $0x20] sm:$0xff] %v2404_v12  ;;  %v2373_v47 = vadd.f32 %v2372_v46, %v2252_v31 }
 0x3d0   :  { %v2353_v50 = vpop.f32.mrf.mxu1 }
 0x3d1   :  { %v2401_v49 = vmax.f32 %v2373_v47, 0.0  ;;  %v2354_v52 = vadd.f32 %v2353_v50, %v2251_v19 }
 0x3d3   :  { %v2405_v54 = vadd.f32 %v2401_v49, %v2397_v48  ;;  %v2402_v55 = vmax.f32 %v2354_v52, 0.0 }
 0x3d5   :  { %2410 = vst [vmem:[#allocation15 + $0x28] sm:$0xff] %v2405_v54  ;;  %v2406_v56 = vadd.f32 %v2402_v55, %v2398_v53 }
 0x3d6   :  { %v2375_v57 = vpop.f32.mrf.mxu2 }
 0x3d7   :  { %2411 = vst [vmem:[#allocation15 + $0x30] sm:$0xff] %v2406_v56  ;;  %v2376_v58 = vadd.f32 %v2375_v57, %v2252_v31 }
 0x3d8   :  { %v2355_v60 = vpop.f32.mrf.mxu1 }
 0x3d9   :  { %v2403_v61 = vmax.f32 %v2376_v58, 0.0 }
 0x3db   :  { %v2407_v62 = vadd.f32 %v2403_v61, %v2399_v59 }
 0x3dd   :  { %2412 = vst [vmem:[#allocation15 + $0x38] sm:$0xff] %v2407_v62 }
 0x3de   :  { %v2377_v63 = vpop.f32.mrf.mxu2  ;;  %2425 = dma.vmem_to_hbm [thread:$0]  %s2418_s16, 1024, %s2420_s20, [#allocation5], %s3534_s18, %s3534_s18, %s3535_s7  }
 0x3df   :  { %3526 = dma.done.wait [#allocation5], 1024  }
 0x3e0   :  { %3527 = vsyncadd [#allocation5], 4294966272 }
 0x3e1   :  { %2430 = vsyncpa [#allocation4], 1 }
 0x3e2   :  { %2431 = vsyncpa [#allocation7], 1 }
 0x3e3   :  { %2432 = vsyncpa [#allocation10], 1 }
 0x3e4   :  { %2433 = vsyncpa [#allocation13], 1 }
 0x3e5   :  { %2434 = vsyncpa [#allocation5], 1 }

// kernel: tpu_custom_call.1
= control target key start
LH: loop header
LB: loop body
LE: loop exit
PB: predicated region body
PF: predicated region fallthrough
CT: control target
= control target key end

     0   :  { %16 = vsyncpa [#allocation4], 0  ;;  %s3790_s0 = inlined_call_operand.hbm [shape: f32[2,16,256], index: 0, kind: input, shape index: {}]   ;;  %s3791_s1 = inlined_call_operand.hbm [shape: bf16[256,128], index: 1, kind: input, shape index: {}]   ;;  %s3792_s2 = inlined_call_operand.vmem [shape: f32[1,128], index: 2, kind: input, shape index: {}]   ;;  %s3793_s3 = inlined_call_operand.hbm [shape: bf16[7,128,128], index: 3, kind: input, shape index: {}]   ;;  %s3794_s4 = inlined_call_operand.hbm [shape: f32[1,128], index: 4, kind: input, shape index: {}]   ;;  %s3795_s5 = inlined_call_operand.hbm [shape: bf16[5,128,128], index: 5, kind: input, shape index: {}]   ;;  %s3796_s6 = inlined_call_operand.vmem [shape: f32[1,128], index: 6, kind: input, shape index: {}]   ;;  %s3797_s7 = inlined_call_operand.hbm [shape: bf16[3,128,128], index: 7, kind: input, shape index: {}]   ;;  %s3798_s8 = inlined_call_operand.vmem [shape: f32[1,128], index: 8, kind: input, shape index: {}]   ;;  %s3799_s9 = inlined_call_operand.hbm [shape: bf16[128,256], index: 9, kind: input, shape index: {}]   ;;  %s3800_s10 = inlined_call_operand.vmem [shape: f32[1,256], index: 10, kind: input, shape index: {}]   ;;  %s3801_s11 = inlined_call_operand.hbm [shape: f32[2,16,256], index: 11, kind: output, shape index: {}]  }
   0x1   :  { %17 = vsyncpa [#allocation7], 0 }
   0x2   :  { %18 = vsyncpa [#allocation10], 0 }
   0x3   :  { %19 = vsyncpa [#allocation13], 0  ;;  %s38_s19 = sshll.u32 %s3791_s1, 4  ;;  %s39_s19 = int_to_ptr.hbm [resolvable:$true] %s38_s19 }
   0x4   :  { %20 = vsyncpa [#allocation5], 0  ;;  %s3528_s20 = smov [#allocation6]   ;;  %s67_s24 = sshll.u32 %s3794_s4, 4  ;;  %s68_s24 = int_to_ptr.hbm [resolvable:$true] %s67_s24 }
   0x5   :  { %s40_s21 = sshll.u32 %s3528_s20, 4  ;;  %s3529_s25 = smov 64   ;;  %s41_s21 = int_to_ptr.vmem [resolvable:$true] %s40_s21 }
   0x6   :  { %s3530_s26 = smov 4   ;;  %s3531_s27 = smov [#allocation9]  }
   0x7   :  { %46 = dma.hbm_to_vmem [thread:$0]  %s39_s19, 2048, %s41_s21, [#allocation7], %s3529_s25, %s3529_s25, %s3530_s26  }
   0x8   :  { %s69_s28 = sshll.u32 %s3531_s27, 4  ;;  %s92_s30 = sshll.u32 %s3797_s7, 4  ;;  %s70_s28 = int_to_ptr.vmem [resolvable:$true] %s69_s28  ;;  %s93_s30 = int_to_ptr.hbm [resolvable:$true] %s92_s30 }
   0x9   :  { %72 = dma.hbm_to_vmem [thread:$0]  %s68_s24, 16, %s70_s28, [#allocation10]  }
   0xa   :  { %s25_s4 = sshll.u32 %s3790_s0, 4  ;;  %s3532_s14 = smov [#allocation12]   ;;  %s26_s4 = int_to_ptr.hbm [resolvable:$true] %s25_s4 }
   0xb   :  { %s94_s15 = sshll.u32 %s3532_s14, 4  ;;  %s3533_s16 = smov [#allocation3]   ;;  %s95_s15 = int_to_ptr.vmem [resolvable:$true] %s94_s15 }
   0xc   :  { %100 = dma.hbm_to_vmem [thread:$0]  %s93_s30, 3072, %s95_s15, [#allocation13], %s3529_s25, %s3529_s25, %s3530_s26  }
   0xd   :  { %s27_s17 = sshll.u32 %s3533_s16, 4  ;;  %s3534_s18 = smov 256   ;;  %s28_s17 = int_to_ptr.vmem [resolvable:$true] %s27_s17 }
   0xe   :  { %s3535_s7 = smov 16   ;;  %s53_s0 = sshll.u32 %s3793_s3, 4  ;;  %s54_s0 = int_to_ptr.hbm [resolvable:$true] %s53_s0 }
   0xf   :  { %33 = dma.hbm_to_vmem [thread:$0]  %s26_s4, 1024, %s28_s17, [#allocation4], %s3534_s18, %s3534_s18, %s3535_s7  }
  0x10   :  { %s3536_s21 = smov [#allocation8]   ;;  %s77_s27 = sshll.u32 %s3795_s5, 4  ;;  %s78_s27 = int_to_ptr.hbm [resolvable:$true] %s77_s27 }
  0x11   :  { %s55_s22 = sshll.u32 %s3536_s21, 4  ;;  %s3537_s28 = smov [#allocation11]   ;;  %s56_s22 = int_to_ptr.vmem [resolvable:$true] %s55_s22 }
  0x12   :  { %61 = dma.hbm_to_vmem [thread:$0]  %s54_s0, 7168, %s56_s22, [#allocation7], %s3529_s25, %s3529_s25, %s3530_s26  }
  0x13   :  { %s79_s29 = sshll.u32 %s3537_s28, 4  ;;  %s107_s12 = sshll.u32 %s3799_s9, 4  ;;  %s80_s29 = int_to_ptr.vmem [resolvable:$true] %s79_s29  ;;  %s108_s12 = int_to_ptr.hbm [resolvable:$true] %s107_s12 }
  0x14   :  { %85 = dma.hbm_to_vmem [thread:$0]  %s78_s27, 5120, %s80_s29, [#allocation10], %s3529_s25, %s3529_s25, %s3530_s26  }
  0x15   :  { %s3538_s3 = smov [#allocation14]   ;;  %s3539_s5 = smov 128  }
  0x16   :  { %s109_s13 = sshll.u32 %s3538_s3, 4  ;;  %s3540_s4 = smov 8   ;;  %s110_s13 = int_to_ptr.vmem [resolvable:$true] %s109_s13 }
  0x17   :  { %115 = dma.hbm_to_vmem [thread:$0]  %s108_s12, 2048, %s110_s13, [#allocation13], %s3539_s5, %s3539_s5, %s3540_s4  }
  0x18   :  { %3518 = dma.done.wait [#allocation4], 1024  }
  0x19   :  { %3519 = vsyncadd [#allocation4], 4294966272 }
  0x1a   :  { %3520 = dma.done.wait [#allocation7], 9216  }
  0x1b   :  { %3521 = vsyncadd [#allocation7], 4294958080 }
  0x1c   :  { %3522 = dma.done.wait [#allocation10], 5136  }
  0x1d   :  { %3523 = vsyncadd [#allocation10], 4294962160 }
  0x1e   :  { %3524 = dma.done.wait [#allocation13], 5120  }
  0x1f   :  { %3525 = vsyncadd [#allocation13], 4294962176  ;;  %v3078_v0 = vld [vmem:[#allocation6 + $0x38] sm:$0xff]  ;;  %v3077_v2 = vld [vmem:[#allocation6 + $0x30] sm:$0xff]  ;;  %v3541_v46 = vmov 0   ;;  %vm400_vm0 = vcmask 1044480  }
  0x20   :  { %v3086_v1 = vld [vmem:[#allocation6 + $0x78] sm:$0xff]  ;;  %295 = vmatpush.bf16.msra.mxu0 %v3078_v0  ;;  %v3085_v3 = vld [vmem:[#allocation6 + $0x70] sm:$0xff]  ;;  %v3076_v4 = vld [vmem:[#allocation6 + $0x28] sm:$0xff]  ;;  %147 = vst [vmem:[#allocation2] sm:$0xf] %v3541_v46  ;;  %vm983_vm5 = vcmask 1046528  }
  0x21   :  { %314 = vmatpush.bf16.msra.mxu1 %v3086_v1  ;;  %v3084_v5 = vld [vmem:[#allocation6 + $0x68] sm:$0xff]  ;;  %v3075_v6 = vld [vmem:[#allocation6 + $0x20] sm:$0xff]  ;;  %v3074_v8 = vld [vmem:[#allocation6 + $0x18] sm:$0xff]  ;;  %149 = vst [vmem:[#allocation2 + $0xc] sm:$0xf] %v3541_v46  ;;  %s2419_s20 = sshll.u32 %s3801_s11, 4  ;;  %s2420_s20 = int_to_ptr.hbm [resolvable:$true] %s2419_s20 }
  0x22   :  { %v3083_v7 = vld [vmem:[#allocation6 + $0x60] sm:$0xff]  ;;  %v3082_v9 = vld [vmem:[#allocation6 + $0x58] sm:$0xff]  ;;  %v3073_v11 = vld [vmem:[#allocation6 + $0x10] sm:$0xff]  ;;  %148 = vst [vmem:[#allocation2 + $0x1c] sm:$0xf] %v3541_v46 }
  0x23   :  { %v3102_v10 = vld [vmem:[#allocation8 + $0x78] sm:$0xff]  ;;  %v3081_v12 = vld [vmem:[#allocation6 + $0x50] sm:$0xff]  ;;  %v3072_v14 = vld [vmem:[#allocation6 + $0x8] sm:$0xff]  ;;  %150 = vst [vmem:[#allocation2 + $0x18] sm:$0xf] %v3541_v46 }
  0x24   :  { %296 = vmatpush.bf16.msra.mxu0 %v3077_v2  ;;  %459 = vmatpush.bf16.msra.mxu2 %v3102_v10  ;;  %v3101_v13 = vld [vmem:[#allocation8 + $0x70] sm:$0xff]  ;;  %v3080_v15 = vld [vmem:[#allocation6 + $0x48] sm:$0xff]  ;;  %v3071_v16 = vld [vmem:[#allocation6] sm:$0xff]  ;;  %vm614_vm1 = vsmask.f32 4352 }
  0x25   :  { %315 = vmatpush.bf16.msra.mxu1 %v3085_v3  ;;  %3297 = vmatpush.bf16.msra.mxu3 %v3102_v10  ;;  %v3079_v17 = vld [vmem:[#allocation6 + $0x40] sm:$0xff]  ;;  %v153_v19 = vld [vmem:[#allocation3 + $0x10] sm:$0xff]  ;;  %v152_v20 = vld [vmem:[#allocation3 + $0x8] sm:$0xff]  ;;  %vm484_vm2 = vsmask.f32 5376 }
  0x26   :  { %v151_v18 = vld [vmem:[#allocation3] sm:$0xff]  ;;  %v154_v21 = vld [vmem:[#allocation3 + $0x18] sm:$0xff]  ;;  %v157_v27 = vld [vmem:[#allocation3 + $0x30] sm:$0xff]  ;;  %vm856_vm3 = vsmask.f32 7424 }
  0x27   :  { %v3118_v22 = vld [vmem:[#allocation8 + $0xf8] sm:$0xff]  ;;  %v191_v24 = vpack.c.bf16 %v153_v19, %v151_v18  ;;  %v192_v25 = vpack.c.bf16 %v154_v21, %v152_v20  ;;  %v155_v26 = vld [vmem:[#allocation3 + $0x20] sm:$0xff]  ;;  %v156_v28 = vld [vmem:[#allocation3 + $0x28] sm:$0xff]  ;;  %vm1089_vm4 = vsmask.f32 6400 }
  0x28   :  { %297 = vmatpush.bf16.msra.mxu0 %v3076_v4  ;;  %460 = vmatpush.bf16.msra.mxu2 %v3101_v13  ;;  %v3110_v23 = vld [vmem:[#allocation8 + $0xb8] sm:$0xff]  ;;  %v193_v30 = vpack.c.bf16 %v157_v27, %v155_v26  ;;  %v3100_v32 = vld [vmem:[#allocation8 + $0x68] sm:$0xff]  ;;  %v3117_v33 = vld [vmem:[#allocation8 + $0xf0] sm:$0xff] }
  0x29   :  { %316 = vmatpush.bf16.msra.mxu1 %v3084_v5  ;;  %3298 = vmatpush.bf16.msra.mxu3 %v3101_v13  ;;  %v158_v29 = vld [vmem:[#allocation3 + $0x38] sm:$0xff]  ;;  %v3099_v34 = vld [vmem:[#allocation8 + $0x60] sm:$0xff]  ;;  %v3116_v35 = vld [vmem:[#allocation8 + $0xe8] sm:$0xff] }
  0x2a   :  { %v194_v31 = vpack.c.bf16 %v158_v29, %v156_v28  ;;  %v3098_v36 = vld [vmem:[#allocation8 + $0x58] sm:$0xff]  ;;  %v3109_v37 = vld [vmem:[#allocation8 + $0xb0] sm:$0xff]  ;;  %v3115_v38 = vld [vmem:[#allocation8 + $0xe0] sm:$0xff] }
  0x2b   :  { %v3108_v39 = vld [vmem:[#allocation8 + $0xa8] sm:$0xff]  ;;  %v3097_v40 = vld [vmem:[#allocation8 + $0x50] sm:$0xff]  ;;  %v3114_v41 = vld [vmem:[#allocation8 + $0xd8] sm:$0xff] }
  0x2c   :  { %298 = vmatpush.bf16.msra.mxu0 %v3075_v6  ;;  %461 = vmatpush.bf16.msra.mxu2 %v3100_v32  ;;  %v3096_v42 = vld [vmem:[#allocation8 + $0x48] sm:$0xff]  ;;  %v3107_v43 = vld [vmem:[#allocation8 + $0xa0] sm:$0xff]  ;;  %v3113_v44 = vld [vmem:[#allocation8 + $0xd0] sm:$0xff] }
  0x2d   :  { %317 = vmatpush.bf16.msra.mxu1 %v3083_v7  ;;  %3299 = vmatpush.bf16.msra.mxu3 %v3100_v32  ;;  %v3106_v45 = vld [vmem:[#allocation8 + $0x98] sm:$0xff]  ;;  %v3095_v47 = vld [vmem:[#allocation8 + $0x40] sm:$0xff]  ;;  %v3112_v49 = vld [vmem:[#allocation8 + $0xc8] sm:$0xff] }
  0x2e   :  { %v3094_v48 = vld [vmem:[#allocation8 + $0x38] sm:$0xff]  ;;  %v3105_v50 = vld [vmem:[#allocation8 + $0x90] sm:$0xff]  ;;  %v3111_v51 = vld [vmem:[#allocation8 + $0xc0] sm:$0xff] }
  0x2f   :  { %v3093_v52 = vld [vmem:[#allocation8 + $0x30] sm:$0xff]  ;;  %v3104_v53 = vld [vmem:[#allocation8 + $0x88] sm:$0xff]  ;;  %v3322_v55 = vld [vmem:[%s3792_s2] ss:$0 sm:$0xff] }
  0x30   :  { %299 = vmatpush.bf16.msra.mxu0 %v3074_v8  ;;  %462 = vmatpush.bf16.msra.mxu2 %v3099_v34  ;;  %v3092_v54 = vld [vmem:[#allocation8 + $0x28] sm:$0xff]  ;;  %v3103_v56 = vld [vmem:[#allocation8 + $0x80] sm:$0xff]  ;;  %v3128_v57 = vld [vmem:[#allocation8 + $0x138] sm:$0xff] }
  0x31   :  { %318 = vmatpush.bf16.msra.mxu1 %v3082_v9  ;;  %3300 = vmatpush.bf16.msra.mxu3 %v3099_v34  ;;  %v3091_v58 = vld [vmem:[#allocation8 + $0x20] sm:$0xff]  ;;  %v3127_v62 = vld [vmem:[#allocation8 + $0x130] sm:$0xff]  ;;  %v3090_v0 = vld [vmem:[#allocation8 + $0x18] sm:$0xff] }
  0x32   :  { %v3126_v1 = vld [vmem:[#allocation8 + $0x128] sm:$0xff]  ;;  %v3089_v3 = vld [vmem:[#allocation8 + $0x10] sm:$0xff]  ;;  %v3125_v6 = vld [vmem:[#allocation8 + $0x120] sm:$0xff] }
  0x33   :  { %v3088_v8 = vld [vmem:[#allocation8 + $0x8] sm:$0xff]  ;;  %v3144_v18 = vld [vmem:[#allocation8 + $0x1b8] sm:$0xff]  ;;  %v3143_v21 = vld [vmem:[#allocation8 + $0x1b0] sm:$0xff] }
  0x34   :  { %300 = vmatpush.bf16.msra.mxu0 %v3073_v11  ;;  %463 = vmatpush.bf16.msra.mxu2 %v3098_v36  ;;  %v3124_v11 = vld [vmem:[#allocation8 + $0x118] sm:$0xff]  ;;  %v3122_v20 = vld [vmem:[#allocation8 + $0x108] sm:$0xff]  ;;  %v3121_v32 = vld [vmem:[#allocation8 + $0x100] sm:$0xff] }
  0x35   :  { %319 = vmatpush.bf16.msra.mxu1 %v3081_v12  ;;  %3301 = vmatpush.bf16.msra.mxu3 %v3098_v36  ;;  %v3087_v12 = vld [vmem:[#allocation8] sm:$0xff] }
  0x38   :  { %301 = vmatpush.bf16.msra.mxu0 %v3072_v14  ;;  %464 = vmatpush.bf16.msra.mxu2 %v3097_v40 }
  0x39   :  { %320 = vmatpush.bf16.msra.mxu1 %v3080_v15  ;;  %3302 = vmatpush.bf16.msra.mxu3 %v3097_v40  ;;  %v347_v15 = vld [vmem:[#allocation2 + $0x18] sm:$0x7] }
  0x3a   :  { %v395_v19 = vunpack.c.l.b16 %v347_v15 }
  0x3c   :  { %302 = vmatpush.bf16.msra.mxu0 %v3071_v16  ;;  %465 = vmatpush.bf16.msra.mxu2 %v3096_v42  ;;  %v364_v16 = vld [vmem:[#allocation2] sm:$0x8] }
  0x3d   :  { %321 = vmatpush.bf16.msra.mxu1 %v3079_v17  ;;  %3303 = vmatpush.bf16.msra.mxu3 %v3096_v42  ;;  %v3123_v17 = vld [vmem:[#allocation8 + $0x110] sm:$0xff] }
  0x3f   :  { %303 = vmatmul.bf16.vlgmr.msra.gmra.mxu0 %v191_v24 }
  0x40   :  { %691 = vmatpush.bf16.msrb.mxu0 %v3110_v23  ;;  %322 = vmatmul.bf16.vlgmr.msra.gmra.mxu1 %v192_v25 }
  0x41   :  { %788 = vmatpush.bf16.msrb.mxu1 %v3118_v22  ;;  %466 = vmatpush.bf16.msra.mxu2 %v3095_v47  ;;  %v389_v22 = vunpack.c.l.b16 %v364_v16 }
  0x42   :  { %3304 = vmatpush.bf16.msra.mxu3 %v3095_v47 }
  0x44   :  { %692 = vmatpush.bf16.msrb.mxu0 %v3109_v37  ;;  %v341_v37 = vld [vmem:[#allocation2] sm:$0xc] }
  0x45   :  { %789 = vmatpush.bf16.msrb.mxu1 %v3117_v33  ;;  %936 = vmatpush.bf16.msrb.mxu2 %v3128_v57  ;;  %v3142_v33 = vld [vmem:[#allocation8 + $0x1a8] sm:$0xff]  ;;  %v3136_v57 = vld [vmem:[#allocation8 + $0x178] sm:$0xff] }
  0x46   :  { %571 = vmatpush.bf16.msrb.mxu3 %v3094_v48  ;;  %v482_v48 = vunpack.c.l.b16 %v341_v37 }
  0x48   :  { %693 = vmatpush.bf16.msrb.mxu0 %v3108_v39 }
  0x49   :  { %790 = vmatpush.bf16.msrb.mxu1 %v3116_v35  ;;  %937 = vmatpush.bf16.msrb.mxu2 %v3127_v62  ;;  %v3135_v62 = vld [vmem:[#allocation8 + $0x170] sm:$0xff] }
  0x4a   :  { %572 = vmatpush.bf16.msrb.mxu3 %v3093_v52 }
  0x4c   :  { %694 = vmatpush.bf16.msrb.mxu0 %v3107_v43 }
  0x4d   :  { %791 = vmatpush.bf16.msrb.mxu1 %v3115_v38  ;;  %938 = vmatpush.bf16.msrb.mxu2 %v3126_v1 }
  0x4e   :  { %573 = vmatpush.bf16.msrb.mxu3 %v3092_v54 }
  0x4f   :  { %308 = vmatmul.bf16.gmra.mxu0 %v193_v30 }
  0x50   :  { %327 = vmatmul.bf16.gmra.mxu1 %v194_v31  ;;  %695 = vmatpush.bf16.msrb.mxu0 %v3106_v45  ;;  %v3650_v31 = vpack.c.b16 %v395_v19, %v395_v19 }
  0x51   :  { %792 = vmatpush.bf16.msrb.mxu1 %v3114_v41  ;;  %939 = vmatpush.bf16.msrb.mxu2 %v3125_v6  ;;  %v3138_v6 = vld [vmem:[#allocation8 + $0x188] sm:$0xff] }
  0x52   :  { %574 = vmatpush.bf16.msrb.mxu3 %v3091_v58  ;;  %v406_v47 = vrot.slane %v3650_v31, 3 }
  0x54   :  { %696 = vmatpush.bf16.msrb.mxu0 %v3105_v50 }
  0x55   :  { %793 = vmatpush.bf16.msrb.mxu1 %v3113_v44  ;;  %940 = vmatpush.bf16.msrb.mxu2 %v3124_v11 }
  0x56   :  { %575 = vmatpush.bf16.msrb.mxu3 %v3090_v0 }
  0x58   :  { %697 = vmatpush.bf16.msrb.mxu0 %v3104_v53  ;;  %v3141_v53 = vld [vmem:[#allocation8 + $0x1a0] sm:$0xff] }
  0x59   :  { %794 = vmatpush.bf16.msrb.mxu1 %v3112_v49  ;;  %941 = vmatpush.bf16.msrb.mxu2 %v3123_v17 }
  0x5a   :  { %576 = vmatpush.bf16.msrb.mxu3 %v3089_v3 }
  0x5c   :  { %698 = vmatpush.bf16.msrb.mxu0 %v3103_v56 }
  0x5d   :  { %795 = vmatpush.bf16.msrb.mxu1 %v3111_v51  ;;  %942 = vmatpush.bf16.msrb.mxu2 %v3122_v20 }
  0x5e   :  { %577 = vmatpush.bf16.msrb.mxu3 %v3088_v8 }
  0x60   :  { %1166 = vmatpush.bf16.msra.mxu0 %v3144_v18 }
  0x61   :  { %943 = vmatpush.bf16.msrb.mxu2 %v3121_v32 }
  0x62   :  { %578 = vmatpush.bf16.msrb.mxu3 %v3087_v12 }
  0x64   :  { %1167 = vmatpush.bf16.msra.mxu0 %v3143_v21  ;;  %v3137_v21 = vld [vmem:[#allocation8 + $0x180] sm:$0xff] }
  0x68   :  { %1168 = vmatpush.bf16.msra.mxu0 %v3142_v33 }
  0x6c   :  { %1169 = vmatpush.bf16.msra.mxu0 %v3141_v53 }
  0xbc   :  { %v304_v59 = vpop.f32.mrf.mxu0 }
  0xbd   :  { %v323_v60 = vpop.f32.mrf.mxu1  ;;  %v305_v61 = vadd.f32 %v3322_v55, %v304_v59 }
  0xbf   :  { %v324_v63 = vadd.f32 %v323_v60, %v305_v61  ;;  %v3140_v61 = vld [vmem:[#allocation8 + $0x198] sm:$0xff] }
  0xc0   :  { %1170 = vmatpush.bf16.msra.mxu0 %v3140_v61 }
  0xc1   :  { %v333_v2 = vpack.c.bf16 %v324_v63, %v324_v63  ;;  %v3139_v63 = vld [vmem:[#allocation8 + $0x190] sm:$0xff] }
  0xc3   :  { %335 = vst [vmem:[#allocation2 + $0x4] sm:$0xf] %v333_v2 }
  0xc4   :  { %v306_v4 = vpop.f32.mrf.mxu0  ;;  %1171 = vmatpush.bf16.msra.mxu0 %v3139_v63 }
  0xc5   :  { %v325_v5 = vpop.f32.mrf.mxu1  ;;  %v307_v7 = vadd.f32 %v3322_v55, %v306_v4  ;;  %v3134_v4 = vld [vmem:[#allocation8 + $0x168] sm:$0xff] }
  0xc7   :  { %v326_v9 = vadd.f32 %v325_v5, %v307_v7  ;;  %v593_v5 = vld [vmem:[#allocation2 + $0x18] sm:$0xf] }
  0xc8   :  { %v612_v16 = vunpack.c.l.b16 %v593_v5  ;;  %1172 = vmatpush.bf16.msra.mxu0 %v3138_v6 }
  0xc9   :  { %v334_v10 = vpack.c.bf16 %v326_v9, %v326_v9 }
  0xca   :  { %v814_v12 = vld [vmem:[#allocation2 + $0x4] sm:$0xf] }
  0xcb   :  { %336 = vst [vmem:[#allocation2 + $0x8] sm:$0xf] %v334_v10  ;;  %v845_v20 = vunpack.c.l.b16 %v814_v12 }
  0xcc   :  { %v309_v13 = vpop.f32.mrf.mxu0  ;;  %1173 = vmatpush.bf16.msra.mxu0 %v3137_v21  ;;  %v1068_v21 = vld [vmem:[#allocation2 + $0x1c] sm:$0x3] }
  0xcd   :  { %v328_v14 = vpop.f32.mrf.mxu1  ;;  %v310_v23 = vadd.f32 %v3322_v55, %v309_v13 }
  0xcf   :  { %v329_v38 = vadd.f32 %v328_v14, %v310_v23 }
  0xd2   :  { %v3642_v24 = vld [vmem:[#allocation2 + $0x4] sm:$0xff]  }
  0xd3   :  { %v3644_v25 = vld [vmem:[#allocation2 + $0x8] sm:$0xff]   ;;  %v390_v26 = vunpack.c.l.b16 %v3642_v24  ;;  %v846_v15 = vunpack.c.h.b16 %v3642_v24 }
  0xd4   :  { %v3237_v27 = vunpack.c.l.b16 %v3644_v25  ;;  %v494_v28 = vshrl.u32 %v3644_v25, 16  ;;  %v311_v29 = vpop.f32.mrf.mxu0  ;;  %v497_v30 = vshll.u32 %v3644_v25, 16  ;;  %v402_v40 = vrot.slane %v3644_v25, 3 }
  0xd5   :  { %v312_v34 = vadd.f32 %v3322_v55, %v311_v29  ;;  %v396_v35 = vpack.c.b16 %v390_v26, %v389_v22  ;;  %v330_v39 = vpop.f32.mrf.mxu1  ;;  %v483_v60 = vpack.c.b16 %v390_v26, %v482_v48  ;;  %v3133_v22 = vld [vmem:[#allocation8 + $0x160] sm:$0xff]  ;;  %v3132_v29 = vld [vmem:[#allocation8 + $0x158] sm:$0xff] }
  0xd6   :  { %v734_v36 = vpack.c.b16 %v3237_v27, %v390_v26  ;;  %v623_v41 = vrot.slane %v494_v28, 3  ;;  %v624_v42 = vrot.slane %v497_v30, 4  ;;  %v496_v13 = vrot.slane %v494_v28, 2 }
  0xd7   :  { %v331_v43 = vadd.f32 %v330_v39, %v312_v34  ;;  %v401_v44 = vrot.slane %v396_v35, 3  ;;  %v616_v45 = vshrl.u32 %v396_v35, 16  ;;  %v619_v46 = vshll.u32 %v396_v35, 16  ;;  %v3131_v34 = vld [vmem:[#allocation8 + $0x150] sm:$0xff] }
  0xd8   :  { %796 = vmatmul.bf16.vlgmr.msrb.gmra.mxu1 %v734_v36  ;;  %v625_v55 = vor.u32 %v624_v42, %v623_v41  ;;  %v486_v2 = vshrl.u32 %v483_v60, 16  ;;  %v489_v3 = vshll.u32 %v483_v60, 16  ;;  %v499_v14 = vrot.slane %v497_v30, 3 }
  0xd9   :  { %v3658_v49 = vpack.c.bf16 %v331_v43, %v329_v38  ;;  %v403_v50 = vsel %vm400_vm0, %v401_v44, %v402_v40  ;;  %v618_v51 = vrot.slane %v616_v45, 3  ;;  %v621_v52 = vrot.slane %v619_v46, 4 }
  0xda   :  { %467 = vmatmul.bf16.vlgmr.msra.gmra.mxu2 %v403_v50  ;;  %v488_v10 = vrot.slane %v486_v2, 2  ;;  %v491_v11 = vrot.slane %v489_v3, 3  ;;  %v500_v23 = vor.u32 %v499_v14, %v496_v13  ;;  %v852_v26 = vpack.c.b16 %v846_v15, %v845_v20  ;;  %v962_v50 = vld [vmem:[#allocation2 + $0x4] sm:$0xe] }
  0xdb   :  { %3269 = vst [vmem:[#allocation2 + $0x10] sm:$0xff] %v3658_v49   ;;  %v622_v54 = vor.u32 %v621_v52, %v618_v51  ;;  %v404_v56 = vrot.slane %v3658_v49, 3  ;;  %v503_v0 = vshrl.u32 %v3658_v49, 16  ;;  %v506_v1 = vshll.u32 %v3658_v49, 16  ;;  %v3130_v51 = vld [vmem:[#allocation8 + $0x148] sm:$0xff] }
  0xdc   :  { %v492_v19 = vor.u32 %v491_v11, %v488_v10  ;;  %v613_v27 = vpack.c.b16 %v612_v16, %v612_v16  ;;  %v860_v30 = vshll.u32 %v852_v26, 16  ;;  %v3242_v36 = vunpack.c.h.b16 %v3658_v49 }
  0xdd   :  { %v626_v58 = vsel %vm614_vm1, %v622_v54, %v625_v55  ;;  %v407_v59 = vsel %vm400_vm0, %v404_v56, %v406_v47  ;;  %v627_v8 = vrot.slane %v503_v0, 3  ;;  %v628_v9 = vrot.slane %v506_v1, 4  ;;  %v3129_v54 = vld [vmem:[#allocation8 + $0x140] sm:$0xff] }
  0xde   :  { %699 = vmatmul.bf16.vlgmr.msrb.gmra.mxu0 %v626_v58  ;;  %476 = vmatmul.bf16.vlgmr.msra.gmra.mxu3 %v407_v59  ;;  %v405_v17 = vsel %vm400_vm0, %v402_v40, %v404_v56  ;;  %v501_v24 = vsel %vm484_vm2, %v492_v19, %v500_v23  ;;  %v632_v32 = vshrl.u32 %v613_v27, 16  ;;  %v635_v33 = vshll.u32 %v613_v27, 16 }
  0xdf   :  { %1042 = vmatpush.bf16.msra.mxu3 %v3136_v57  ;;  %v629_v18 = vor.u32 %v628_v9, %v627_v8  ;;  %v862_v37 = vrot.slane %v860_v30, 1  ;;  %v858_v38 = vshrl.u32 %v852_v26, 16  ;;  %v736_v42 = vpack.c.b16 %v612_v16, %v3242_v36 }
  0xe0   :  { %v634_v39 = vrot.slane %v632_v32, 3  ;;  %v637_v40 = vrot.slane %v635_v33, 4  ;;  %v505_v43 = vrot.slane %v503_v0, 2  ;;  %v508_v44 = vrot.slane %v506_v1, 3 }
  0xe1   :  { %v630_v25 = vsel %vm614_vm1, %v625_v55, %v629_v18  ;;  %v863_v45 = vor.u32 %v862_v37, %v858_v38  ;;  %v981_v49 = vunpack.c.l.b16 %v962_v50  ;;  %v512_v57 = vshrl.u32 %v3650_v31, 16 }
  0xe2   :  { %v3289_v7 = vld [vmem:[#allocation2 + $0xc] sm:$0xff]   ;;  %v638_v47 = vor.u32 %v637_v40, %v634_v39  ;;  %v509_v48 = vor.u32 %v508_v44, %v505_v43  ;;  %v3120_v56 = vld [vmem:[#allocation2 + $0x14] sm:$0xff]  ;;  %v515_v59 = vshll.u32 %v3650_v31, 16  ;;  %v1087_v27 = vunpack.c.l.b16 %v1068_v21 }
  0xe3   :  { %1043 = vmatpush.bf16.msra.mxu3 %v3135_v62  ;;  %v3675_v28 = vld [vmem:[#allocation2 + $0xc] sm:$0xff]  ;;  %v982_v55 = vpack.c.b16 %v846_v15, %v981_v49  ;;  %v873_v60 = vshll.u32 %v3120_v56, 16  ;;  %v514_v63 = vrot.slane %v512_v57, 2  ;;  %v877_v15 = vshrl.u32 %v3120_v56, 16 }
  0xe4   :  { %v865_v35 = vshll.u32 %v3675_v28, 16  ;;  %v639_v52 = vsel %vm614_vm1, %v629_v18, %v638_v47  ;;  %v510_v53 = vsel %vm484_vm2, %v500_v23, %v509_v48  ;;  %v869_v58 = vshrl.u32 %v3675_v28, 16 }
  0xe5   :  { %v1091_v61 = vshrl.u32 %v982_v55, 16  ;;  %v1094_v62 = vshll.u32 %v982_v55, 16  ;;  %v517_v3 = vrot.slane %v515_v59, 3  ;;  %v1102_v19 = vrot.slane %v877_v15, 1 }
  0xe6   :  { %v867_v41 = vrot.slane %v865_v35, 1  ;;  %v1098_v1 = vrot.slane %v869_v58, 1  ;;  %v1099_v2 = vrot.slane %v865_v35, 2  ;;  %v1103_v20 = vrot.slane %v873_v60, 2 }
  0xe7   :  { %1044 = vmatpush.bf16.msra.mxu3 %v3134_v4  ;;  %v875_v4 = vrot.slane %v873_v60, 1  ;;  %v1093_v5 = vrot.slane %v1091_v61, 1  ;;  %v1096_v6 = vrot.slane %v1094_v62, 2  ;;  %v518_v10 = vor.u32 %v517_v3, %v514_v63 }
  0xe8   :  { %801 = vmatmul.bf16.gmra.mxu1 %v3289_v7  ;;  %v868_v46 = vsel %vm856_vm3, %v863_v45, %v867_v41  ;;  %v871_v0 = vor.u32 %v869_v58, %v867_v41  ;;  %v820_v7 = vld [vmem:[#allocation2 + $0x1c] sm:$0x1]  ;;  %v1100_v9 = vor.u32 %v1099_v2, %v1098_v1  ;;  %v1104_v23 = vor.u32 %v1103_v20, %v1102_v19  ;;  %v3166_v19 = vld [vmem:[#allocation11 + $0xa8] sm:$0xff] }
  0xe9   :  { %v1097_v11 = vor.u32 %v1096_v6, %v1093_v5  ;;  %v851_v31 = vunpack.c.l.b16 %v820_v7  ;;  %v519_v13 = vsel %vm484_vm2, %v509_v48, %v518_v10  ;;  %v985_v26 = vrot.slane %v3675_v28, 1  ;;  %v3160_v6 = vld [vmem:[#allocation11 + $0x78] sm:$0xff] }
  0xea   :  { %472 = vmatmul.bf16.gmra.mxu2 %v405_v17  ;;  %v876_v8 = vsel %vm856_vm3, %v871_v0, %v875_v4  ;;  %v879_v17 = vor.u32 %v877_v15, %v875_v4  ;;  %v1088_v30 = vpack.c.b16 %v1087_v27, %v1087_v27  ;;  %v987_v37 = vrot.slane %v3120_v56, 1  ;;  %v3152_v7 = vld [vmem:[#allocation11 + $0x38] sm:$0xff]  ;;  %1353 = vmatpush.bf16.msra.mxu1 %v3160_v6  ;;  %v3157_v27 = vld [vmem:[#allocation11 + $0x60] sm:$0xff] }
  0xeb   :  { %1045 = vmatpush.bf16.msra.mxu3 %v3133_v22  ;;  %v1101_v12 = vsel %vm1089_vm4, %v1097_v11, %v1100_v9  ;;  %v855_v14 = vpack.c.b16 %v851_v31, %v851_v31  ;;  %1436 = vmatpush.bf16.msra.mxu2 %v3152_v7  ;;  %v3167_v11 = vld [vmem:[#allocation11 + $0xb0] sm:$0xff]  ;;  %v3184_v7 = vld [vmem:[#allocation11 + $0x128] sm:$0xff] }
  0xec   :  { %v1107_v32 = vshrl.u32 %v1088_v30, 16  ;;  %v1110_v33 = vshll.u32 %v1088_v30, 16  ;;  %v988_v28 = vsel %vm983_vm5, %v985_v26, %v987_v37  ;;  %v3148_v30 = vld [vmem:[#allocation11 + $0x18] sm:$0xff] }
  0xed   :  { %v881_v16 = vshll.u32 %v855_v14, 16  ;;  %v989_v39 = vrot.slane %v855_v14, 1 }
  0xee   :  { %704 = vmatmul.bf16.gmra.mxu0 %v630_v25  ;;  %579 = vmatmul.bf16.vlgmr.msrb.gmra.mxu3 %v501_v24  ;;  %v984_v25 = vrot.slane %v982_v55, 1  ;;  %v1105_v24 = vsel %vm1089_vm4, %v1100_v9, %v1104_v23  ;;  %v1112_v35 = vrot.slane %v1110_v33, 2 }
  0xef   :  { %1046 = vmatpush.bf16.msra.mxu3 %v3132_v29  ;;  %v883_v18 = vrot.slane %v881_v16, 1  ;;  %v990_v40 = vsel %vm983_vm5, %v987_v37, %v989_v39  ;;  %v3158_v16 = vld [vmem:[#allocation11 + $0x68] sm:$0xff]  ;;  %v3155_v37 = vld [vmem:[#allocation11 + $0x50] sm:$0xff] }
  0xf0   :  { %v986_v29 = vsel %vm983_vm5, %v984_v25, %v985_v26  ;;  %v3149_v26 = vld [vmem:[#allocation11 + $0x20] sm:$0xff] }
  0xf1   :  { %v884_v22 = vsel %vm856_vm3, %v879_v17, %v883_v18  ;;  %v3150_v17 = vld [vmem:[#allocation11 + $0x28] sm:$0xff] }
  0xf3   :  { %1047 = vmatpush.bf16.msra.mxu3 %v3131_v34  ;;  %v1109_v34 = vrot.slane %v1107_v32, 1  ;;  %v3156_v32 = vld [vmem:[#allocation11 + $0x58] sm:$0xff] }
  0xf5   :  { %v1113_v36 = vor.u32 %v1112_v35, %v1109_v34  ;;  %v3163_v34 = vld [vmem:[#allocation11 + $0x90] sm:$0xff] }
  0xf7   :  { %1048 = vmatpush.bf16.msra.mxu3 %v3130_v51  ;;  %v1114_v38 = vsel %vm1089_vm4, %v1104_v23, %v1113_v36  ;;  %v3147_v36 = vld [vmem:[#allocation11 + $0x10] sm:$0xff] }
  0xf8   :  { %805 = vmatmul.bf16.gmra.mxu1 %v736_v42 }
  0xfa   :  { %944 = vmatmul.bf16.vlgmr.msrb.gmra.mxu2 %v868_v46 }
  0xfb   :  { %1049 = vmatpush.bf16.msra.mxu3 %v3129_v54 }
  0xfe   :  { %708 = vmatmul.bf16.gmra.mxu0 %v639_v52  ;;  %584 = vmatmul.bf16.gmra.mxu3 %v510_v53 }
 0x10a   :  { %949 = vmatmul.bf16.gmra.mxu2 %v876_v8  ;;  %v3168_v8 = vld [vmem:[#allocation11 + $0xb8] sm:$0xff] }
 0x10b   :  { %1529 = vmatpush.bf16.msrb.mxu3 %v3168_v8  ;;  %v1208_v8 = vld [vmem:[#allocation2] sm:$0x8] }
 0x10e   :  { %1174 = vmatmul.bf16.vlgmr.msra.gmra.mxu0 %v1101_v12  ;;  %588 = vmatmul.bf16.gmra.mxu3 %v519_v13  ;;  %v3159_v12 = vld [vmem:[#allocation11 + $0x70] sm:$0xff] }
 0x10f   :  { %v3151_v13 = vld [vmem:[#allocation11 + $0x30] sm:$0xff]  ;;  %1530 = vmatpush.bf16.msrb.mxu3 %v3167_v11  ;;  %1354 = vmatpush.bf16.msra.mxu1 %v3159_v12  ;;  %v3183_v11 = vld [vmem:[#allocation11 + $0x120] sm:$0xff] }
 0x110   :  { %1437 = vmatpush.bf16.msra.mxu2 %v3151_v13 }
 0x113   :  { %1531 = vmatpush.bf16.msrb.mxu3 %v3166_v19  ;;  %1355 = vmatpush.bf16.msra.mxu1 %v3158_v16  ;;  %v3171_v16 = vld [vmem:[#allocation11 + $0xc0] sm:$0xff] }
 0x114   :  { %1438 = vmatpush.bf16.msra.mxu2 %v3150_v17 }
 0x117   :  { %1356 = vmatpush.bf16.msra.mxu1 %v3157_v27 }
 0x118   :  { %1439 = vmatpush.bf16.msra.mxu2 %v3149_v26 }
 0x11a   :  { %953 = vmatmul.bf16.gmra.mxu2 %v884_v22  ;;  %v3165_v22 = vld [vmem:[#allocation11 + $0xa0] sm:$0xff] }
 0x11b   :  { %1532 = vmatpush.bf16.msrb.mxu3 %v3165_v22  ;;  %1357 = vmatpush.bf16.msra.mxu1 %v3156_v32 }
 0x11c   :  { %1440 = vmatpush.bf16.msra.mxu2 %v3148_v30 }
 0x11e   :  { %1179 = vmatmul.bf16.gmra.mxu0 %v1105_v24  ;;  %1050 = vmatmul.bf16.vlgmr.msra.gmra.mxu3 %v986_v29  ;;  %v3164_v24 = vld [vmem:[#allocation11 + $0x98] sm:$0xff] }
 0x11f   :  { %1533 = vmatpush.bf16.msrb.mxu3 %v3164_v24  ;;  %1358 = vmatpush.bf16.msra.mxu1 %v3155_v37 }
 0x120   :  { %1441 = vmatpush.bf16.msra.mxu2 %v3147_v36 }
 0x123   :  { %1534 = vmatpush.bf16.msrb.mxu3 %v3163_v34 }
 0x12e   :  { %1183 = vmatmul.bf16.gmra.mxu0 %v1114_v38  ;;  %1055 = vmatmul.bf16.gmra.mxu3 %v988_v28  ;;  %v3162_v28 = vld [vmem:[#allocation11 + $0x88] sm:$0xff] }
 0x12f   :  { %1535 = vmatpush.bf16.msrb.mxu3 %v3162_v28 }
 0x13e   :  { %1059 = vmatmul.bf16.gmra.mxu3 %v990_v40  ;;  %v3146_v40 = vld [vmem:[#allocation11 + $0x8] sm:$0xff] }
 0x13f   :  { %1442 = vmatpush.bf16.msra.mxu2 %v3146_v40 }
 0x155   :  { %v797_v41 = vpop.f32.mrf.mxu1 }
 0x15b   :  { %v700_v42 = vpop.f32.mrf.mxu0 }
 0x15d   :  { %v799_v43 = vpop.f32.mrf.mxu1  ;;  %v468_v44 = vpop.f32.mrf.mxu2 }
 0x161   :  { %v477_v45 = vpop.f32.mrf.mxu3 }
 0x163   :  { %v702_v46 = vpop.f32.mrf.mxu0 }
 0x165   :  { %v802_v47 = vpop.f32.mrf.mxu1  ;;  %v470_v48 = vpop.f32.mrf.mxu2 }
 0x166   :  { %v3153_v47 = vld [vmem:[#allocation11 + $0x40] sm:$0xff] }
 0x169   :  { %v479_v50 = vpop.f32.mrf.mxu3 }
 0x16b   :  { %v705_v51 = vpop.f32.mrf.mxu0 }
 0x16c   :  { %v3710_v51 = vld [vmem:[#allocation9] ss:$0 sm:$0xff] }
 0x16d   :  { %v803_v49 = vpop.f32.mrf.mxu1  ;;  %v473_v52 = vpop.f32.mrf.mxu2 }
 0x171   :  { %v580_v53 = vpop.f32.mrf.mxu3 }
 0x172   :  { %v581_v54 = vadd.f32 %v580_v53, %v468_v44  ;;  %v3161_v44 = vld [vmem:[#allocation11 + $0x80] sm:$0xff] }
 0x173   :  { %v706_v55 = vpop.f32.mrf.mxu0  ;;  %1536 = vmatpush.bf16.msrb.mxu3 %v3161_v44 }
 0x174   :  { %v713_v57 = vadd.f32 %v700_v42, %v581_v54  ;;  %v3178_v42 = vld [vmem:[#allocation11 + $0xf8] sm:$0xff] }
 0x175   :  { %v806_v56 = vpop.f32.mrf.mxu1  ;;  %v474_v58 = vpop.f32.mrf.mxu2  ;;  %1676 = vmatpush.bf16.msrb.mxu0 %v3178_v42  ;;  %v3181_v42 = vld [vmem:[#allocation11 + $0x110] sm:$0xff] }
 0x176   :  { %v3695_v59 = vadd.f32 %v797_v41, %v713_v57  ;;  %v3154_v41 = vld [vmem:[#allocation11 + $0x48] sm:$0xff] }
 0x177   :  { %1359 = vmatpush.bf16.msra.mxu1 %v3154_v41  ;;  %v3176_v57 = vld [vmem:[#allocation11 + $0xe8] sm:$0xff] }
 0x179   :  { %v582_v60 = vpop.f32.mrf.mxu3 }
 0x17a   :  { %v583_v61 = vadd.f32 %v582_v60, %v470_v48  ;;  %v3177_v48 = vld [vmem:[#allocation11 + $0xf0] sm:$0xff]  ;;  %v3175_v60 = vld [vmem:[#allocation11 + $0xe0] sm:$0xff] }
 0x17b   :  { %v709_v62 = vpop.f32.mrf.mxu0  ;;  %1677 = vmatpush.bf16.msrb.mxu0 %v3177_v48  ;;  %1360 = vmatpush.bf16.msra.mxu1 %v3153_v47 }
 0x17c   :  { %v714_v0 = vadd.f32 %v702_v46, %v583_v61  ;;  %v3145_v46 = vld [vmem:[#allocation11] sm:$0xff]  ;;  %v3186_v61 = vld [vmem:[#allocation11 + $0x138] sm:$0xff] }
 0x17d   :  { %v808_v63 = vpop.f32.mrf.mxu1  ;;  %v945_v1 = vpop.f32.mrf.mxu2  ;;  %1443 = vmatpush.bf16.msra.mxu2 %v3145_v46 }
 0x17e   :  { %v3697_v2 = vadd.f32 %v799_v43, %v714_v0  ;;  %v958_v43 = vadd.f32 %v945_v1, %v3695_v59  ;;  %v3185_v0 = vld [vmem:[#allocation11 + $0x130] sm:$0xff] }
 0x17f   :  { %1678 = vmatpush.bf16.msrb.mxu0 %v3176_v57  ;;  %1781 = vmatpush.bf16.msrb.mxu1 %v3186_v61 }
 0x181   :  { %v585_v3 = vpop.f32.mrf.mxu3 }
 0x182   :  { %v3174_v3 = vld [vmem:[#allocation11 + $0xd8] sm:$0xff] }
 0x183   :  { %v711_v4 = vpop.f32.mrf.mxu0  ;;  %1679 = vmatpush.bf16.msrb.mxu0 %v3175_v60  ;;  %1782 = vmatpush.bf16.msrb.mxu1 %v3185_v0  ;;  %v1231_v60 = vld [vmem:[#allocation2 + $0x18] sm:$0xf] }
 0x185   :  { %v3699_v5 = vpop.f32.mrf.mxu2 }
 0x187   :  { %1680 = vmatpush.bf16.msrb.mxu0 %v3174_v3  ;;  %1783 = vmatpush.bf16.msrb.mxu1 %v3184_v7  ;;  %v1214_v3 = vld [vmem:[#allocation2 + $0x18] sm:$0x7] }
 0x188   :  { %v1376_v7 = vunpack.c.l.b16 %v1214_v3 }
 0x189   :  { %v586_v9 = vpop.f32.mrf.mxu3 }
 0x18a   :  { %v587_v10 = vadd.f32 %v586_v9, %v474_v58  ;;  %v3172_v9 = vld [vmem:[#allocation11 + $0xc8] sm:$0xff] }
 0x18b   :  { %v1175_v31 = vpop.f32.mrf.mxu0  ;;  %1784 = vmatpush.bf16.msrb.mxu1 %v3183_v11  ;;  %v1377_v11 = vpack.c.b16 %v1376_v7, %v1376_v7  ;;  %v3198_v7 = vld [vmem:[#allocation12 + $0x58] sm:$0xff] }
 0x18c   :  { %v715_v14 = vadd.f32 %v706_v55, %v587_v10  ;;  %v959_v55 = vadd.f32 %v3699_v5, %v3697_v2  ;;  %v3173_v2 = vld [vmem:[#allocation11 + $0xd0] sm:$0xff]  ;;  %v1256_v10 = vunpack.c.l.b16 %v1208_v8 }
 0x18d   :  { %v950_v15 = vpop.f32.mrf.mxu2  ;;  %1681 = vmatpush.bf16.msrb.mxu0 %v3173_v2 }
 0x18e   :  { %v3701_v18 = vadd.f32 %v803_v49, %v715_v14 }
 0x191   :  { %v589_v20 = vpop.f32.mrf.mxu3  ;;  %1682 = vmatpush.bf16.msrb.mxu0 %v3172_v9 }
 0x192   :  { %v590_v21 = vadd.f32 %v589_v20, %v477_v45 }
 0x193   :  { %v1177_v23 = vpop.f32.mrf.mxu0 }
 0x194   :  { %v716_v25 = vadd.f32 %v709_v62, %v590_v21  ;;  %v3182_v21 = vld [vmem:[#allocation11 + $0x118] sm:$0xff] }
 0x195   :  { %v3703_v29 = vpop.f32.mrf.mxu2  ;;  %1683 = vmatpush.bf16.msrb.mxu0 %v3171_v16  ;;  %1785 = vmatpush.bf16.msrb.mxu1 %v3182_v21 }
 0x196   :  { %v3705_v33 = vadd.f32 %v806_v56, %v716_v25  ;;  %v960_v17 = vadd.f32 %v3703_v29, %v3701_v18 }
 0x199   :  { %v591_v35 = vpop.f32.mrf.mxu3  ;;  %1786 = vmatpush.bf16.msrb.mxu1 %v3181_v42 }
 0x19b   :  { %v1180_v38 = vpop.f32.mrf.mxu0 }
 0x19d   :  { %v3707_v39 = vpop.f32.mrf.mxu2 }
 0x19e   :  { %v961_v35 = vadd.f32 %v3707_v39, %v3705_v33 }
 0x1a1   :  { %v1051_v45 = vpop.f32.mrf.mxu3 }
 0x1a2   :  { %v1064_v50 = vadd.f32 %v1051_v45, %v958_v43 }
 0x1a3   :  { %v3712_v49 = vpop.f32.mrf.mxu0 }
 0x1a4   :  { %v1188_v52 = vadd.f32 %v1175_v31, %v1064_v50  ;;  %v3180_v50 = vld [vmem:[#allocation11 + $0x108] sm:$0xff] }
 0x1a5   :  { %v956_v53 = vpop.f32.mrf.mxu2  ;;  %1787 = vmatpush.bf16.msrb.mxu1 %v3180_v50 }
 0x1a6   :  { %v1196_v54 = vadd.f32 %v3710_v51, %v1188_v52 }
 0x1a8   :  { %v1200_v56 = vpack.c.bf16 %v1196_v54, %v1196_v54 }
 0x1a9   :  { %v1053_v58 = vpop.f32.mrf.mxu3 }
 0x1aa   :  { %1202 = vst [vmem:[#allocation2 + $0x4] sm:$0xf] %v1200_v56  ;;  %v1065_v59 = vadd.f32 %v1053_v58, %v959_v55  ;;  %v3179_v55 = vld [vmem:[#allocation11 + $0x100] sm:$0xff] }
 0x1ab   :  { %v1184_v62 = vpop.f32.mrf.mxu0  ;;  %1788 = vmatpush.bf16.msrb.mxu1 %v3179_v55 }
 0x1ac   :  { %v1189_v63 = vadd.f32 %v1177_v23, %v1065_v59 }
 0x1ae   :  { %v1197_v1 = vadd.f32 %v3710_v51, %v1189_v63 }
 0x1b0   :  { %v1201_v4 = vpack.c.bf16 %v1197_v1, %v1197_v1 }
 0x1b1   :  { %v1056_v6 = vpop.f32.mrf.mxu3  ;;  %v1555_v45 = vld [vmem:[#allocation2 + $0x4] sm:$0xf] }
 0x1b2   :  { %1203 = vst [vmem:[#allocation2 + $0x8] sm:$0xf] %v1201_v4  ;;  %v1586_v47 = vunpack.c.l.b16 %v1555_v45 }
 0x1b3   :  { %v1186_v5 = vpop.f32.mrf.mxu0 }
 0x1b9   :  { %v1057_v31 = vpop.f32.mrf.mxu3  ;;  %v3718_v12 = vld [vmem:[#allocation2 + $0x4] sm:$0xff]  }
 0x1ba   :  { %v3278_v13 = vld [vmem:[#allocation2 + $0x8] sm:$0xff]   ;;  %v1257_v14 = vunpack.c.l.b16 %v3718_v12  ;;  %v1066_v26 = vadd.f32 %v1057_v31, %v960_v17  ;;  %v1587_v46 = vunpack.c.h.b16 %v3718_v12 }
 0x1bb   :  { %v3250_v15 = vunpack.c.l.b16 %v3278_v13  ;;  %v1276_v19 = vshrl.u32 %v3278_v13, 16  ;;  %v1279_v20 = vshll.u32 %v3278_v13, 16  ;;  %v1379_v27 = vrot.slane %v3278_v13, 3 }
 0x1bc   :  { %v1263_v22 = vpack.c.b16 %v1257_v14, %v1256_v10  ;;  %v1190_v38 = vadd.f32 %v3712_v49, %v1066_v26  ;;  %v1593_v52 = vpack.c.b16 %v1587_v46, %v1586_v47 }
 0x1bd   :  { %v1475_v23 = vpack.c.b16 %v3250_v15, %v1257_v14  ;;  %v1278_v25 = vrot.slane %v1276_v19, 3  ;;  %v1281_v34 = vrot.slane %v1279_v20, 4  ;;  %v1383_v14 = vrot.slane %v1377_v11, 3 }
 0x1be   :  { %v1378_v24 = vrot.slane %v1263_v22, 3  ;;  %v1268_v30 = vshrl.u32 %v1263_v22, 16  ;;  %v1271_v32 = vshll.u32 %v1263_v22, 16  ;;  %v1198_v33 = vadd.f32 %v3710_v51, %v1190_v38 }
 0x1bf   :  { %1537 = vmatmul.bf16.vlgmr.msrb.gmra.mxu3 %v1475_v23  ;;  %v1282_v41 = vor.u32 %v1281_v34, %v1278_v25  ;;  %v1600_v59 = vshll.u32 %v1593_v52, 16  ;;  %v1598_v4 = vshrl.u32 %v1593_v52, 16 }
 0x1c0   :  { %v1380_v18 = vsel %vm400_vm0, %v1378_v24, %v1379_v27  ;;  %v1270_v29 = vrot.slane %v1268_v30, 3  ;;  %v1273_v36 = vrot.slane %v1271_v32, 4  ;;  %v1561_v30 = vld [vmem:[#allocation2 + $0x1c] sm:$0x1] }
 0x1c1   :  { %1444 = vmatmul.bf16.vlgmr.msra.gmra.mxu2 %v1380_v18  ;;  %v1060_v37 = vpop.f32.mrf.mxu3  ;;  %v1602_v1 = vrot.slane %v1600_v59, 1  ;;  %v1592_v34 = vunpack.c.l.b16 %v1561_v30  ;;  %v3201_v59 = vld [vmem:[#allocation12 + $0x70] sm:$0xff] }
 0x1c2   :  { %v1067_v28 = vadd.f32 %v1060_v37, %v961_v35  ;;  %v1274_v40 = vor.u32 %v1273_v36, %v1270_v29  ;;  %v1702_v35 = vld [vmem:[#allocation2 + $0x4] sm:$0xe] }
 0x1c3   :  { %v1603_v8 = vor.u32 %v1602_v1, %v1598_v4  ;;  %v1721_v18 = vunpack.c.l.b16 %v1702_v35  ;;  %v1596_v29 = vpack.c.b16 %v1592_v34, %v1592_v34  ;;  %v3199_v4 = vld [vmem:[#allocation12 + $0x60] sm:$0xff] }
 0x1c4   :  { %v1191_v43 = vadd.f32 %v1184_v62, %v1067_v28  ;;  %v1283_v44 = vsel %vm614_vm1, %v1274_v40, %v1282_v41  ;;  %v1262_v62 = vunpack.c.l.b16 %v1231_v60  ;;  %v3193_v60 = vld [vmem:[#allocation12 + $0x30] sm:$0xff] }
 0x1c5   :  { %1361 = vmatmul.bf16.vlgmr.msra.gmra.mxu1 %v1283_v44  ;;  %v1722_v36 = vpack.c.b16 %v1587_v46, %v1721_v18  ;;  %v1621_v37 = vshll.u32 %v1596_v29, 16 }
 0x1c6   :  { %v1199_v39 = vadd.f32 %v3710_v51, %v1191_v43  ;;  %v1266_v5 = vpack.c.b16 %v1262_v62, %v1262_v62 }
 0x1c7   :  { %v1723_v40 = vrot.slane %v1722_v36, 1  ;;  %v1623_v42 = vrot.slane %v1621_v37, 1 }
 0x1c8   :  { %v3246_v48 = vpack.c.bf16 %v1199_v39, %v1198_v33  ;;  %v1294_v31 = vshrl.u32 %v1266_v5, 16  ;;  %v1297_v13 = vshll.u32 %v1266_v5, 16  ;;  %v1728_v39 = vrot.slane %v1596_v29, 1  ;;  %v3212_v5 = vld [vmem:[#allocation12 + $0xb0] sm:$0xff] }
 0x1c9   :  { %v1062_v49 = vpop.f32.mrf.mxu3 }
 0x1ca   :  { %3277 = vst [vmem:[#allocation2 + $0x10] sm:$0xff] %v3246_v48   ;;  %v1285_v53 = vshrl.u32 %v3246_v48, 16  ;;  %v1288_v54 = vshll.u32 %v3246_v48, 16  ;;  %v1381_v56 = vrot.slane %v3246_v48, 3  ;;  %v1296_v15 = vrot.slane %v1294_v31, 3 }
 0x1cb   :  { %v1299_v16 = vrot.slane %v1297_v13, 4  ;;  %v3255_v17 = vunpack.c.h.b16 %v3246_v48  ;;  %v3197_v13 = vld [vmem:[#allocation12 + $0x50] sm:$0xff] }
 0x1cc   :  { %v1287_v57 = vrot.slane %v1285_v53, 3  ;;  %v1290_v58 = vrot.slane %v1288_v54, 4  ;;  %v1382_v51 = vsel %vm400_vm0, %v1379_v27, %v1381_v56  ;;  %v1384_v20 = vsel %vm400_vm0, %v1381_v56, %v1383_v14  ;;  %v3202_v53 = vld [vmem:[#allocation12 + $0x78] sm:$0xff]  ;;  %v3189_v14 = vld [vmem:[#allocation12 + $0x10] sm:$0xff] }
 0x1cd   :  { %v1300_v21 = vor.u32 %v1299_v16, %v1296_v15  ;;  %v1477_v22 = vpack.c.b16 %v1262_v62, %v3255_v17  ;;  %v3194_v54 = vld [vmem:[#allocation12 + $0x38] sm:$0xff]  ;;  %1929 = vmatpush.bf16.msrb.mxu2 %v3202_v53  ;;  %v3200_v62 = vld [vmem:[#allocation12 + $0x68] sm:$0xff] }
 0x1ce   :  { %v1291_v61 = vor.u32 %v1290_v58, %v1287_v57  ;;  %2045 = vmatpush.bf16.msra.mxu3 %v3194_v54  ;;  %v3196_v17 = vld [vmem:[#allocation12 + $0x48] sm:$0xff] }
 0x1d0   :  { %v1292_v2 = vsel %vm614_vm1, %v1282_v41, %v1291_v61  ;;  %v1301_v25 = vsel %vm614_vm1, %v1291_v61, %v1300_v21  ;;  %v3213_v61 = vld [vmem:[#allocation12 + $0xb8] sm:$0xff] }
 0x1d1   :  { %v3291_v63 = vld [vmem:[#allocation2 + $0xc] sm:$0xff]   ;;  %1449 = vmatmul.bf16.gmra.mxu2 %v1382_v51  ;;  %v3170_v19 = vld [vmem:[#allocation2 + $0x14] sm:$0xff]  ;;  %2190 = vmatpush.bf16.msra.mxu0 %v3213_v61 }
 0x1d2   :  { %v3169_v0 = vld [vmem:[#allocation2 + $0xc] sm:$0xff]  ;;  %1542 = vmatmul.bf16.gmra.mxu3 %v3291_v63  ;;  %v1613_v26 = vshll.u32 %v3170_v19, 16  ;;  %v1617_v28 = vshrl.u32 %v3170_v19, 16  ;;  %v1726_v45 = vrot.slane %v3170_v19, 1  ;;  %1930 = vmatpush.bf16.msrb.mxu2 %v3201_v59 }
 0x1d3   :  { %v1605_v6 = vshll.u32 %v3169_v0, 16  ;;  %v1609_v23 = vshrl.u32 %v3169_v0, 16  ;;  %v1724_v38 = vrot.slane %v3169_v0, 1  ;;  %2046 = vmatpush.bf16.msra.mxu3 %v3193_v60  ;;  %v3192_v63 = vld [vmem:[#allocation12 + $0x28] sm:$0xff] }
 0x1d4   :  { %v1615_v24 = vrot.slane %v1613_v26, 1  ;;  %v1729_v12 = vsel %vm983_vm5, %v1726_v45, %v1728_v39  ;;  %v3188_v19 = vld [vmem:[#allocation12 + $0x8] sm:$0xff] }
 0x1d5   :  { %1366 = vmatmul.bf16.gmra.mxu1 %v1292_v2  ;;  %v1607_v9 = vrot.slane %v1605_v6, 1  ;;  %v1725_v43 = vsel %vm983_vm5, %v1723_v40, %v1724_v38  ;;  %v1727_v33 = vsel %vm983_vm5, %v1724_v38, %v1726_v45  ;;  %v3191_v6 = vld [vmem:[#allocation12 + $0x20] sm:$0xff]  ;;  %2191 = vmatpush.bf16.msra.mxu0 %v3212_v5  ;;  %v3208_v40 = vld [vmem:[#allocation12 + $0x90] sm:$0xff] }
 0x1d6   :  { %v1619_v41 = vor.u32 %v1617_v28, %v1615_v24  ;;  %1931 = vmatpush.bf16.msrb.mxu2 %v3200_v62 }
 0x1d7   :  { %v1608_v10 = vsel %vm856_vm3, %v1603_v8, %v1607_v9  ;;  %v1611_v27 = vor.u32 %v1609_v23, %v1607_v9  ;;  %2047 = vmatpush.bf16.msra.mxu3 %v3192_v63  ;;  %v3190_v8 = vld [vmem:[#allocation12 + $0x18] sm:$0xff] }
 0x1d8   :  { %1684 = vmatmul.bf16.vlgmr.msrb.gmra.mxu0 %v1608_v10  ;;  %v1624_v44 = vsel %vm856_vm3, %v1619_v41, %v1623_v42  ;;  %v3211_v10 = vld [vmem:[#allocation12 + $0xa8] sm:$0xff] }
 0x1d9   :  { %v1616_v32 = vsel %vm856_vm3, %v1611_v27, %v1615_v24  ;;  %2192 = vmatpush.bf16.msra.mxu0 %v3211_v10  ;;  %v3195_v27 = vld [vmem:[#allocation12 + $0x40] sm:$0xff]  ;;  %v3209_v24 = vld [vmem:[#allocation12 + $0x98] sm:$0xff] }
 0x1da   :  { %1932 = vmatpush.bf16.msrb.mxu2 %v3199_v4 }
 0x1db   :  { %2048 = vmatpush.bf16.msra.mxu3 %v3191_v6 }
 0x1de   :  { %1933 = vmatpush.bf16.msrb.mxu2 %v3198_v7 }
 0x1df   :  { %2049 = vmatpush.bf16.msra.mxu3 %v3190_v8 }
 0x1e1   :  { %1453 = vmatmul.bf16.gmra.mxu2 %v1384_v20 }
 0x1e2   :  { %1546 = vmatmul.bf16.gmra.mxu3 %v1477_v22  ;;  %1934 = vmatpush.bf16.msrb.mxu2 %v3197_v13  ;;  %v3210_v22 = vld [vmem:[#allocation12 + $0xa0] sm:$0xff] }
 0x1e3   :  { %2050 = vmatpush.bf16.msra.mxu3 %v3189_v14  ;;  %2193 = vmatpush.bf16.msra.mxu0 %v3210_v22 }
 0x1e5   :  { %1370 = vmatmul.bf16.gmra.mxu1 %v1301_v25  ;;  %v3187_v25 = vld [vmem:[#allocation12] sm:$0xff] }
 0x1e6   :  { %1935 = vmatpush.bf16.msrb.mxu2 %v3196_v17 }
 0x1e7   :  { %2051 = vmatpush.bf16.msra.mxu3 %v3188_v19  ;;  %2194 = vmatpush.bf16.msra.mxu0 %v3209_v24 }
 0x1e8   :  { %1689 = vmatmul.bf16.gmra.mxu0 %v1616_v32  ;;  %v3324_v32 = vld [vmem:[%s3796_s6] ss:$0 sm:$0xff] }
 0x1ea   :  { %1936 = vmatpush.bf16.msrb.mxu2 %v3195_v27 }
 0x1eb   :  { %2052 = vmatpush.bf16.msra.mxu3 %v3187_v25  ;;  %2195 = vmatpush.bf16.msra.mxu0 %v3208_v40 }
 0x1f5   :  { %1789 = vmatmul.bf16.vlgmr.msrb.gmra.mxu1 %v1725_v43  ;;  %v3207_v43 = vld [vmem:[#allocation12 + $0x88] sm:$0xff] }
 0x1f6   :  { %2196 = vmatpush.bf16.msra.mxu0 %v3207_v43  ;;  %v3065_v43 = vld [vmem:[#allocation14 + $0x70] sm:$0xf] }
 0x1f8   :  { %1693 = vmatmul.bf16.gmra.mxu0 %v1624_v44  ;;  %v1823_v44 = vld [vmem:[#allocation2] sm:$0x8] }
 0x205   :  { %1794 = vmatmul.bf16.gmra.mxu1 %v1727_v33 }
 0x215   :  { %1798 = vmatmul.bf16.gmra.mxu1 %v1729_v12  ;;  %v1954_v12 = vunpack.c.l.b16 %v1823_v44 }
 0x242   :  { %v1362_v46 = vpop.f32.mrf.mxu1  ;;  %v1538_v48 = vpop.f32.mrf.mxu3 }
 0x244   :  { %v1445_v47 = vpop.f32.mrf.mxu2 }
 0x245   :  { %v1446_v16 = vadd.f32 %v1445_v47, %v1362_v46  ;;  %v3206_v46 = vld [vmem:[#allocation12 + $0x80] sm:$0xff] }
 0x246   :  { %2197 = vmatpush.bf16.msra.mxu0 %v3206_v46 }
 0x247   :  { %v1551_v26 = vadd.f32 %v1538_v48, %v1446_v16  ;;  %v1829_v16 = vld [vmem:[#allocation2 + $0x18] sm:$0xf] }
 0x248   :  { %v1874_v22 = vunpack.c.l.b16 %v1829_v16  ;;  %v3223_v16 = vld [vmem:[#allocation14 + $0x44] sm:$0xf0] }
 0x24a   :  { %v3745_v50 = vpop.f32.mrf.mxu1  ;;  %v3747_v52 = vpop.f32.mrf.mxu3  ;;  %v1958_v27 = vpack.c.b16 %v1874_v22, %v1874_v22 }
 0x24c   :  { %v1447_v49 = vpop.f32.mrf.mxu2 }
 0x24d   :  { %v1448_v35 = vadd.f32 %v1447_v49, %v3745_v50 }
 0x24f   :  { %v1552_v37 = vadd.f32 %v3747_v52, %v1448_v35 }
 0x252   :  { %v1367_v55 = vpop.f32.mrf.mxu1 }
 0x254   :  { %v1450_v56 = vpop.f32.mrf.mxu2 }
 0x255   :  { %v1685_v57 = vpop.f32.mrf.mxu0  ;;  %v1543_v58 = vpop.f32.mrf.mxu3 }
 0x256   :  { %v1698_v30 = vadd.f32 %v1685_v57, %v1551_v26 }
 0x25a   :  { %v3749_v51 = vpop.f32.mrf.mxu1 }
 0x25c   :  { %v3751_v0 = vpop.f32.mrf.mxu2 }
 0x25d   :  { %v1687_v1 = vpop.f32.mrf.mxu0  ;;  %v3753_v3 = vpop.f32.mrf.mxu3  ;;  %v1452_v54 = vadd.f32 %v3751_v0, %v3749_v51 }
 0x25e   :  { %v1699_v28 = vadd.f32 %v1687_v1, %v1552_v37 }
 0x25f   :  { %v1553_v6 = vadd.f32 %v3753_v3, %v1452_v54 }
 0x262   :  { %v3755_v2 = vpop.f32.mrf.mxu1 }
 0x264   :  { %v3757_v9 = vpop.f32.mrf.mxu2 }
 0x265   :  { %v1690_v11 = vpop.f32.mrf.mxu0  ;;  %v3759_v31 = vpop.f32.mrf.mxu3  ;;  %v1455_v62 = vadd.f32 %v3757_v9, %v3755_v2 }
 0x267   :  { %v1554_v51 = vadd.f32 %v3759_v31, %v1455_v62 }
 0x26a   :  { %v1373_v15 = vpop.f32.mrf.mxu1 }
 0x26c   :  { %v1456_v20 = vpop.f32.mrf.mxu2 }
 0x26d   :  { %v1691_v21 = vpop.f32.mrf.mxu0  ;;  %v1549_v23 = vpop.f32.mrf.mxu3 }
 0x26e   :  { %v1700_v8 = vadd.f32 %v1691_v21, %v1553_v6  ;;  %v3057_v6 = vld [vmem:[#allocation14 + $0x60] sm:$0xf] }
 0x272   :  { %v1790_v34 = vpop.f32.mrf.mxu1 }
 0x273   :  { %v1803_v18 = vadd.f32 %v1790_v34, %v1698_v30 }
 0x275   :  { %v1694_v29 = vpop.f32.mrf.mxu0  ;;  %v1811_v36 = vadd.f32 %v3324_v32, %v1803_v18  ;;  %v1986_v18 = vshrl.u32 %v1958_v27, 16 }
 0x276   :  { %v1701_v10 = vadd.f32 %v1694_v29, %v1554_v51  ;;  %v1989_v29 = vshll.u32 %v1958_v27, 16  ;;  %v3051_v51 = vld [vmem:[#allocation14 + $0x58] sm:$0xf0] }
 0x277   :  { %v1815_v38 = vpack.c.bf16 %v1811_v36, %v1811_v36 }
 0x278   :  { %v1991_v40 = vrot.slane %v1989_v29, 4  ;;  %v3217_v29 = vld [vmem:[#allocation14 + $0x14] sm:$0xf0] }
 0x279   :  { %1817 = vst [vmem:[#allocation2 + $0x4] sm:$0xf] %v1815_v38 }
 0x27a   :  { %v1792_v41 = vpop.f32.mrf.mxu1 }
 0x27b   :  { %v1804_v42 = vadd.f32 %v1792_v41, %v1699_v28  ;;  %v1988_v28 = vrot.slane %v1986_v18, 3  ;;  %v3228_v41 = vld [vmem:[#allocation14 + $0x74] sm:$0xf]  ;;  %v3017_v18 = vld [vmem:[#allocation14 + $0x10] sm:$0xf] }
 0x27d   :  { %v1696_v45 = vpop.f32.mrf.mxu0  ;;  %v1812_v33 = vadd.f32 %v3324_v32, %v1804_v42  ;;  %v3067_v42 = vld [vmem:[#allocation14 + $0x78] sm:$0xf0] }
 0x27e   :  { %v3070_v44 = vor.u32 %v3228_v41, %v3067_v42  ;;  %v3229_v45 = vld [vmem:[#allocation14 + $0x74] sm:$0xf0] }
 0x27f   :  { %v1816_v39 = vpack.c.bf16 %v1812_v33, %v1812_v33  ;;  %v3226_v33 = vld [vmem:[#allocation14 + $0x64] sm:$0xf] }
 0x280   :  { %v1824_v47 = vld [vmem:[#allocation2 + $0x4] sm:$0xf]  ;;  %2357 = vmatpush.bf16.msra.mxu2 %v3070_v44 }
 0x281   :  { %1818 = vst [vmem:[#allocation2 + $0x8] sm:$0xf] %v1816_v39  ;;  %v1869_v48 = vunpack.c.l.b16 %v1824_v47  ;;  %v3059_v39 = vld [vmem:[#allocation14 + $0x68] sm:$0xf0]  ;;  %v1992_v47 = vor.u32 %v1991_v40, %v1988_v28  ;;  %v3009_v28 = vld [vmem:[#allocation14] sm:$0xf] }
 0x282   :  { %v1795_v50 = vpop.f32.mrf.mxu1  ;;  %v3062_v46 = vor.u32 %v3226_v33, %v3059_v39  ;;  %v3215_v40 = vld [vmem:[#allocation14 + $0x4] sm:$0xf0] }
 0x283   :  { %v1955_v49 = vpack.c.b16 %v1869_v48, %v1954_v12  ;;  %v3066_v12 = vor.u32 %v3229_v45, %v3065_v43  ;;  %v3010_v42 = vor.u32 %v3215_v40, %v3009_v28  ;;  %v2382_v28 = vld [vmem:[#allocation3 + $0x18] sm:$0xff] }
 0x284   :  { %2358 = vmatpush.bf16.msra.mxu2 %v3062_v46 }
 0x285   :  { %v1960_v52 = vshrl.u32 %v1955_v49, 16  ;;  %v1963_v53 = vshll.u32 %v1955_v49, 16  ;;  %2335 = vmatpush.bf16.msra.mxu1 %v3066_v12 }
 0x287   :  { %v1962_v56 = vrot.slane %v1960_v52, 3  ;;  %v1965_v58 = vrot.slane %v1963_v53, 4 }
 0x288   :  { %v3286_v55 = vld [vmem:[#allocation2 + $0x8] sm:$0xff]  }
 0x289   :  { %v3263_v57 = vunpack.c.l.b16 %v3286_v55  ;;  %v1968_v59 = vshrl.u32 %v3286_v55, 16  ;;  %v1971_v60 = vshll.u32 %v3286_v55, 16  ;;  %v1966_v5 = vor.u32 %v1965_v58, %v1962_v56  ;;  %v3203_v17 = vld [vmem:[#allocation2 + $0x4] sm:$0xff]  ;;  %v2075_v56 = vld [vmem:[#allocation2 + $0x1c] sm:$0x1] }
 0x28a   :  { %v1796_v61 = vpop.f32.mrf.mxu1  ;;  %v2114_v31 = vshll.u32 %v3203_v17, 16 }
 0x28b   :  { %v1875_v63 = vpack.c.b16 %v3263_v57, %v1869_v48  ;;  %v1970_v1 = vrot.slane %v1968_v59, 3  ;;  %v1973_v4 = vrot.slane %v1971_v60, 4  ;;  %v1805_v11 = vadd.f32 %v1796_v61, %v1700_v8 }
 0x28c   :  { %v2116_v34 = vrot.slane %v2114_v31, 1  ;;  %v2106_v59 = vunpack.c.l.b16 %v2075_v56  ;;  %v3027_v31 = vld [vmem:[#allocation14 + $0x28] sm:$0xf0] }
 0x28d   :  { %1937 = vmatmul.bf16.vlgmr.msrb.gmra.mxu2 %v1875_v63  ;;  %v1974_v7 = vor.u32 %v1973_v4, %v1970_v1  ;;  %v1813_v15 = vadd.f32 %v3324_v32, %v1805_v11  ;;  %v3225_v11 = vld [vmem:[#allocation14 + $0x54] sm:$0xf0] }
 0x28e   :  { %v2110_v60 = vpack.c.b16 %v2106_v59, %v2106_v59 }
 0x28f   :  { %v1975_v0 = vsel %vm614_vm1, %v1966_v5, %v1974_v7  ;;  %v3227_v5 = vld [vmem:[#allocation14 + $0x64] sm:$0xf0] }
 0x290   :  { %2053 = vmatmul.bf16.vlgmr.msra.gmra.mxu3 %v1975_v0  ;;  %v2135_v61 = vshll.u32 %v2110_v60, 16  ;;  %v3058_v8 = vor.u32 %v3227_v5, %v3057_v6 }
 0x292   :  { %v1799_v13 = vpop.f32.mrf.mxu1  ;;  %v2137_v1 = vrot.slane %v2135_v61, 1  ;;  %2336 = vmatpush.bf16.msra.mxu1 %v3058_v8 }
 0x293   :  { %v1806_v14 = vadd.f32 %v1799_v13, %v1701_v10  ;;  %v3049_v10 = vld [vmem:[#allocation14 + $0x50] sm:$0xf]  ;;  %v3222_v13 = vld [vmem:[#allocation14 + $0x44] sm:$0xf] }
 0x295   :  { %v1814_v2 = vadd.f32 %v3324_v32, %v1806_v14  ;;  %v2112_v32 = vshrl.u32 %v3203_v17, 16  ;;  %v3050_v14 = vor.u32 %v3225_v11, %v3049_v10  ;;  %v3220_v17 = vld [vmem:[#allocation14 + $0x34] sm:$0xf] }
 0x297   :  { %v3259_v9 = vpack.c.bf16 %v1814_v2, %v1813_v15  ;;  %v2117_v36 = vor.u32 %v2116_v34, %v2112_v32  ;;  %v3043_v15 = vld [vmem:[#allocation14 + $0x48] sm:$0xf0]  ;;  %2337 = vmatpush.bf16.msra.mxu1 %v3050_v14  ;;  %v3019_v32 = vld [vmem:[#allocation14 + $0x18] sm:$0xf0] }
 0x298   :  { %v3046_v2 = vor.u32 %v3222_v13, %v3043_v15 }
 0x299   :  { %3285 = vst [vmem:[#allocation2 + $0x10] sm:$0xff] %v3259_v9   ;;  %v1977_v3 = vshrl.u32 %v3259_v9, 16  ;;  %v1980_v19 = vshll.u32 %v3259_v9, 16  ;;  %v3268_v48 = vunpack.c.h.b16 %v3259_v9  ;;  %v3041_v9 = vld [vmem:[#allocation14 + $0x40] sm:$0xf] }
 0x29a   :  { %v1801_v20 = vpop.f32.mrf.mxu1 }
 0x29b   :  { %v1979_v21 = vrot.slane %v1977_v3, 3  ;;  %v1982_v23 = vrot.slane %v1980_v19, 4  ;;  %v1877_v52 = vpack.c.b16 %v1874_v22, %v3268_v48  ;;  %v3042_v3 = vor.u32 %v3223_v16, %v3041_v9  ;;  %v3035_v19 = vld [vmem:[#allocation14 + $0x38] sm:$0xf0]  ;;  %v3033_v20 = vld [vmem:[#allocation14 + $0x30] sm:$0xf] }
 0x29c   :  { %v3221_v22 = vld [vmem:[#allocation14 + $0x34] sm:$0xf0] }
 0x29d   :  { %v1983_v26 = vor.u32 %v1982_v23, %v1979_v21  ;;  %v3038_v21 = vor.u32 %v3220_v17, %v3035_v19  ;;  %v3218_v23 = vld [vmem:[#allocation14 + $0x24] sm:$0xf]  ;;  %2338 = vmatpush.bf16.msra.mxu1 %v3042_v3  ;;  %v2249_v3 = vld [vmem:[%s3800_s10] sm:$0x3]  ;;  %s3542_s10 = smov [#allocation15]  }
 0x29e   :  { %v3030_v27 = vor.u32 %v3218_v23, %v3027_v31  ;;  %v2251_v19 = vperm.slane %v2249_v3, 0  ;;  %v2252_v31 = vperm.slane %v2249_v3, 1  ;;  %s2417_s16 = sshll.u32 %s3542_s10, 4  ;;  %s2418_s16 = int_to_ptr.vmem [resolvable:$true] %s2417_s16 }
 0x29f   :  { %v1984_v25 = vsel %vm614_vm1, %v1974_v7, %v1983_v26  ;;  %v1993_v49 = vsel %vm614_vm1, %v1983_v26, %v1992_v47  ;;  %v3224_v7 = vld [vmem:[#allocation14 + $0x54] sm:$0xf]  ;;  %v3034_v26 = vor.u32 %v3221_v22, %v3033_v20 }
 0x2a0   :  { %v3306_v24 = vld [vmem:[#allocation2 + $0xc] sm:$0xff]   ;;  %2058 = vmatmul.bf16.gmra.mxu3 %v1984_v25  ;;  %v3205_v50 = vld [vmem:[#allocation2 + $0x14] sm:$0xff]  ;;  %v3054_v0 = vor.u32 %v3224_v7, %v3051_v51  ;;  %v3025_v25 = vld [vmem:[#allocation14 + $0x20] sm:$0xf] }
 0x2a1   :  { %v3204_v30 = vld [vmem:[#allocation2 + $0xc] sm:$0xff]  ;;  %1942 = vmatmul.bf16.gmra.mxu2 %v3306_v24  ;;  %v2127_v54 = vshll.u32 %v3205_v50, 16  ;;  %v2131_v62 = vshrl.u32 %v3205_v50, 16  ;;  %2339 = vmatpush.bf16.msra.mxu1 %v3034_v26  ;;  %v3325_v50 = vld [vmem:[%s3798_s8] ss:$0 sm:$0xff] }
 0x2a2   :  { %v2119_v35 = vshll.u32 %v3204_v30, 16  ;;  %v2123_v53 = vshrl.u32 %v3204_v30, 16  ;;  %2359 = vmatpush.bf16.msra.mxu2 %v3054_v0  ;;  %v3219_v24 = vld [vmem:[#allocation14 + $0x24] sm:$0xf0]  ;;  %v3216_v30 = vld [vmem:[#allocation14 + $0x14] sm:$0xf] }
 0x2a3   :  { %v2129_v57 = vrot.slane %v2127_v54, 1  ;;  %v3026_v34 = vor.u32 %v3219_v24, %v3025_v25  ;;  %v2380_v24 = vld [vmem:[#allocation3 + $0x8] sm:$0xff] }
 0x2a4   :  { %v2121_v37 = vrot.slane %v2119_v35, 1  ;;  %v3022_v35 = vor.u32 %v3216_v30, %v3019_v32 }
 0x2a5   :  { %v2133_v63 = vor.u32 %v2131_v62, %v2129_v57  ;;  %2340 = vmatpush.bf16.msra.mxu1 %v3026_v34 }
 0x2a6   :  { %v2122_v38 = vsel %vm856_vm3, %v2117_v36, %v2121_v37  ;;  %v2125_v55 = vor.u32 %v2123_v53, %v2121_v37  ;;  %2360 = vmatpush.bf16.msra.mxu2 %v3046_v2  ;;  %v3214_v36 = vld [vmem:[#allocation14 + $0x4] sm:$0xf]  ;;  %v3018_v37 = vor.u32 %v3217_v29, %v3017_v18 }
 0x2a7   :  { %2198 = vmatmul.bf16.vlgmr.msra.gmra.mxu0 %v2122_v38  ;;  %v2138_v4 = vsel %vm856_vm3, %v2133_v63, %v2137_v1  ;;  %v3011_v38 = vld [vmem:[#allocation14 + $0x8] sm:$0xf0] }
 0x2a8   :  { %v2130_v58 = vsel %vm856_vm3, %v2125_v55, %v2129_v57  ;;  %v3014_v41 = vor.u32 %v3214_v36, %v3011_v38 }
 0x2a9   :  { %2341 = vmatpush.bf16.msra.mxu1 %v3018_v37 }
 0x2aa   :  { %2361 = vmatpush.bf16.msra.mxu2 %v3038_v21  ;;  %v2379_v21 = vld [vmem:[#allocation3] sm:$0xff] }
 0x2ad   :  { %2342 = vmatpush.bf16.msra.mxu1 %v3010_v42 }
 0x2ae   :  { %2362 = vmatpush.bf16.msra.mxu2 %v3030_v27 }
 0x2b0   :  { %2063 = vmatmul.bf16.gmra.mxu3 %v1993_v49 }
 0x2b1   :  { %1947 = vmatmul.bf16.gmra.mxu2 %v1877_v52 }
 0x2b2   :  { %2363 = vmatpush.bf16.msra.mxu2 %v3022_v35  ;;  %v2381_v35 = vld [vmem:[#allocation3 + $0x10] sm:$0xff] }
 0x2b6   :  { %2364 = vmatpush.bf16.msra.mxu2 %v3014_v41 }
 0x2b7   :  { %2203 = vmatmul.bf16.gmra.mxu0 %v2130_v58 }
 0x2c7   :  { %2208 = vmatmul.bf16.gmra.mxu0 %v2138_v4 }
 0x310   :  { %v1938_v43 = vpop.f32.mrf.mxu2 }
 0x313   :  { %v2054_v44 = vpop.f32.mrf.mxu3 }
 0x314   :  { %v2055_v12 = vadd.f32 %v2054_v44, %v1938_v43 }
 0x318   :  { %v1940_v45 = vpop.f32.mrf.mxu2 }
 0x31b   :  { %v2056_v33 = vpop.f32.mrf.mxu3 }
 0x31c   :  { %v2057_v47 = vadd.f32 %v2056_v33, %v1940_v45  ;;  %v2396_v33 = vld [vmem:[#allocation3 + $0x20] sm:$0xff] }
 0x323   :  { %v2059_v49 = vpop.f32.mrf.mxu3 }
 0x324   :  { %v2199_v39 = vpop.f32.mrf.mxu0  ;;  %v1943_v46 = vpop.f32.mrf.mxu2 }
 0x325   :  { %v2214_v48 = vadd.f32 %v2199_v39, %v2055_v12  ;;  %v2060_v60 = vadd.f32 %v2059_v49, %v1943_v46 }
 0x327   :  { %v2224_v54 = vadd.f32 %v3325_v50, %v2214_v48  ;;  %v2397_v48 = vld [vmem:[#allocation3 + $0x28] sm:$0xff] }
 0x32b   :  { %v2061_v59 = vpop.f32.mrf.mxu3 }
 0x32c   :  { %v2201_v52 = vpop.f32.mrf.mxu0  ;;  %v1945_v57 = vpop.f32.mrf.mxu2 }
 0x32d   :  { %v2215_v53 = vadd.f32 %v2201_v52, %v2057_v47  ;;  %v2062_v61 = vadd.f32 %v2061_v59, %v1945_v57  ;;  %v2399_v59 = vld [vmem:[#allocation3 + $0x38] sm:$0xff] }
 0x32f   :  { %v2225_v55 = vadd.f32 %v3325_v50, %v2215_v53  ;;  %v2398_v53 = vld [vmem:[#allocation3 + $0x30] sm:$0xff] }
 0x331   :  { %v2246_v56 = vpack.c.bf16 %v2225_v55, %v2224_v54 }
 0x333   :  { %2343 = vmatmul.bf16.vlgmr.msra.gmra.mxu1 %v2246_v56  ;;  %2365 = vmatmul.bf16.vlgmr.msra.gmra.mxu2 %v2246_v56  ;;  %v2064_v7 = vpop.f32.mrf.mxu3 }
 0x334   :  { %v2204_v58 = vpop.f32.mrf.mxu0  ;;  %v1948_v4 = vpop.f32.mrf.mxu2 }
 0x335   :  { %v2216_v62 = vadd.f32 %v2204_v58, %v2060_v60  ;;  %v2065_v10 = vadd.f32 %v2064_v7, %v1948_v4 }
 0x337   :  { %v2226_v6 = vadd.f32 %v3325_v50, %v2216_v62 }
 0x33b   :  { %v2066_v11 = vpop.f32.mrf.mxu3 }
 0x33c   :  { %v2206_v63 = vpop.f32.mrf.mxu0  ;;  %v1950_v0 = vpop.f32.mrf.mxu2 }
 0x33d   :  { %v2217_v1 = vadd.f32 %v2206_v63, %v2062_v61  ;;  %v2067_v13 = vadd.f32 %v2066_v11, %v1950_v0 }
 0x33f   :  { %v2227_v5 = vadd.f32 %v3325_v50, %v2217_v1 }
 0x341   :  { %v2247_v8 = vpack.c.bf16 %v2227_v5, %v2226_v6 }
 0x343   :  { %2348 = vmatmul.bf16.gmra.mxu1 %v2247_v8  ;;  %2370 = vmatmul.bf16.gmra.mxu2 %v2247_v8 }
 0x344   :  { %v2209_v51 = vpop.f32.mrf.mxu0 }
 0x345   :  { %v2218_v14 = vadd.f32 %v2209_v51, %v2065_v10 }
 0x347   :  { %v2228_v9 = vadd.f32 %v3325_v50, %v2218_v14 }
 0x34c   :  { %v2211_v15 = vpop.f32.mrf.mxu0 }
 0x34d   :  { %v2219_v2 = vadd.f32 %v2211_v15, %v2067_v13 }
 0x34f   :  { %v2229_v16 = vadd.f32 %v3325_v50, %v2219_v2 }
 0x351   :  { %v2248_v17 = vpack.c.bf16 %v2229_v16, %v2228_v9 }
 0x353   :  { %2352 = vmatmul.bf16.gmra.mxu1 %v2248_v17  ;;  %2374 = vmatmul.bf16.gmra.mxu2 %v2248_v17 }
 0x3b0   :  { %v2344_v20 = vpop.f32.mrf.mxu1 }
 0x3b1   :  { %v2345_v22 = vadd.f32 %v2344_v20, %v2251_v19 }
 0x3b3   :  { %v2383_v23 = vmax.f32 %v2345_v22, 0.0 }
 0x3b5   :  { %v2387_v26 = vadd.f32 %v2383_v23, %v2379_v21 }
 0x3b6   :  { %v2366_v27 = vpop.f32.mrf.mxu2 }
 0x3b7   :  { %2391 = vst [vmem:[#allocation15] sm:$0xff] %v2387_v26  ;;  %v2367_v25 = vadd.f32 %v2366_v27, %v2252_v31 }
 0x3b8   :  { %v2346_v30 = vpop.f32.mrf.mxu1 }
 0x3b9   :  { %v2384_v34 = vmax.f32 %v2367_v25, 0.0  ;;  %v2347_v32 = vadd.f32 %v2346_v30, %v2251_v19 }
 0x3bb   :  { %v2388_v18 = vadd.f32 %v2384_v34, %v2380_v24  ;;  %v2385_v29 = vmax.f32 %v2347_v32, 0.0 }
 0x3bd   :  { %2392 = vst [vmem:[#allocation15 + $0x8] sm:$0xff] %v2388_v18  ;;  %v2389_v36 = vadd.f32 %v2385_v29, %v2381_v35 }
 0x3be   :  { %v2368_v37 = vpop.f32.mrf.mxu2 }
 0x3bf   :  { %2393 = vst [vmem:[#allocation15 + $0x10] sm:$0xff] %v2389_v36  ;;  %v2369_v38 = vadd.f32 %v2368_v37, %v2252_v31 }
 0x3c0   :  { %v2349_v40 = vpop.f32.mrf.mxu1 }
 0x3c1   :  { %v2386_v41 = vmax.f32 %v2369_v38, 0.0 }
 0x3c3   :  { %v2390_v42 = vadd.f32 %v2386_v41, %v2382_v28 }
 0x3c5   :  { %2394 = vst [vmem:[#allocation15 + $0x18] sm:$0xff] %v2390_v42 }
 0x3c6   :  { %v2371_v43 = vpop.f32.mrf.mxu2 }
 0x3c8   :  { %v2350_v44 = vpop.f32.mrf.mxu1 }
 0x3c9   :  { %v2351_v45 = vadd.f32 %v2350_v44, %v2251_v19 }
 0x3cb   :  { %v2400_v39 = vmax.f32 %v2351_v45, 0.0 }
 0x3cd   :  { %v2404_v12 = vadd.f32 %v2400_v39, %v2396_v33 }
 0x3ce   :  { %v2372_v46 = vpop.f32.mrf.mxu2 }
 0x3cf   :  { %2409 = vst [vmem:[#allocation15 + $0x20] sm:$0xff] %v2404_v12  ;;  %v2373_v47 = vadd.f32 %v2372_v46, %v2252_v31 }
 0x3d0   :  { %v2353_v50 = vpop.f32.mrf.mxu1 }
 0x3d1   :  { %v2401_v49 = vmax.f32 %v2373_v47, 0.0  ;;  %v2354_v52 = vadd.f32 %v2353_v50, %v2251_v19 }
 0x3d3   :  { %v2405_v54 = vadd.f32 %v2401_v49, %v2397_v48  ;;  %v2402_v55 = vmax.f32 %v2354_v52, 0.0 }
 0x3d5   :  { %2410 = vst [vmem:[#allocation15 + $0x28] sm:$0xff] %v2405_v54  ;;  %v2406_v56 = vadd.f32 %v2402_v55, %v2398_v53 }
 0x3d6   :  { %v2375_v57 = vpop.f32.mrf.mxu2 }
 0x3d7   :  { %2411 = vst [vmem:[#allocation15 + $0x30] sm:$0xff] %v2406_v56  ;;  %v2376_v58 = vadd.f32 %v2375_v57, %v2252_v31 }
 0x3d8   :  { %v2355_v60 = vpop.f32.mrf.mxu1 }
 0x3d9   :  { %v2403_v61 = vmax.f32 %v2376_v58, 0.0 }
 0x3db   :  { %v2407_v62 = vadd.f32 %v2403_v61, %v2399_v59 }
 0x3dd   :  { %2412 = vst [vmem:[#allocation15 + $0x38] sm:$0xff] %v2407_v62 }
 0x3de   :  { %v2377_v63 = vpop.f32.mrf.mxu2  ;;  %2425 = dma.vmem_to_hbm [thread:$0]  %s2418_s16, 1024, %s2420_s20, [#allocation5], %s3534_s18, %s3534_s18, %s3535_s7  }
 0x3df   :  { %3526 = dma.done.wait [#allocation5], 1024  }
 0x3e0   :  { %3527 = vsyncadd [#allocation5], 4294966272 }
 0x3e1   :  { %2430 = vsyncpa [#allocation4], 1 }
 0x3e2   :  { %2431 = vsyncpa [#allocation7], 1 }
 0x3e3   :  { %2432 = vsyncpa [#allocation10], 1 }
 0x3e4   :  { %2433 = vsyncpa [#allocation13], 1 }
 0x3e5   :  { %2434 = vsyncpa [#allocation5], 1 }

</bundles_post_ra>
